<compile_context>
chip_gen: v6e
topology: v6e:2x2x1
jax: 0.10.0
libtpu: 0.0.40
codegen_flags: <defaults>
</compile_context>

<pallas_src>
import jax
import jax.numpy as jnp
from jax import lax
from jax.experimental import pallas as pl
from jax.experimental.pallas import tpu as pltpu

N_EMBD = 32
BLOCK_SIZE = 8
NUM_HEADS = 4
HEAD_SIZE = N_EMBD // NUM_HEADS
VOCAB_SIZE = 65
VOCAB_PAD = 128          # lane-dense lm_head output (sliced back to 65 outside)
N_LAYERS = 3
LN_EPS = 1e-5            # PyTorch nn.LayerNorm default


def _layernorm(x, g, b):
    mu = jnp.mean(x, axis=-1, keepdims=True)
    var = jnp.mean((x - mu) ** 2, axis=-1, keepdims=True)
    return (x - mu) * lax.rsqrt(var + LN_EPS) * g + b


def fused_forward_kernel(
        x_ref,          # (N, C)   N = B*T flattened rows
        bias_ref,       # (N, N)   additive block-diag causal mask (0 / -1e30)
        ln1g_ref, ln1b_ref,                  # (L, 1, C)
        wk_ref, wq_ref, wv_ref,              # (L, C, C)
        wproj_ref, bproj_ref,                # (L, C, C), (L, 1, C)
        ln2g_ref, ln2b_ref,                  # (L, 1, C)
        w1_ref, b1_ref, w2_ref, b2_ref,      # (L, C, C), (L, 1, C), ...
        lnfg_ref, lnfb_ref,                  # (1, C)
        wlm_ref, blm_ref,                    # (C, VOCAB_PAD), (1, VOCAB_PAD)
        out_ref):                            # (N, VOCAB_PAD)
    x = x_ref[...].astype(jnp.float32)                     # (N, C)
    N, C = x.shape
    L = wk_ref.shape[0]
    scale = float(C) ** -0.5          # matches torch source: C ** (-0.5), C = n_embd
    bias = bias_ref[...]              # hoisted once; reused by every layer/head

    for l in range(L):                # static unroll over the 3 transformer blocks
        # --- multi-head causal self-attention on ln1(x) ---
        h = _layernorm(x, ln1g_ref[l], ln1b_ref[l])
        k = jnp.dot(h, wk_ref[l], preferred_element_type=jnp.float32)   # (N, C)
        q = jnp.dot(h, wq_ref[l], preferred_element_type=jnp.float32)
        v = jnp.dot(h, wv_ref[l], preferred_element_type=jnp.float32)

        head_outs = []
        for hd in range(NUM_HEADS):   # short static loop over heads
            s = hd * HEAD_SIZE
            qh = q[:, s:s + HEAD_SIZE]
            kh = k[:, s:s + HEAD_SIZE]
            vh = v[:, s:s + HEAD_SIZE]
            wei = jnp.dot(qh, kh.T, preferred_element_type=jnp.float32) * scale + bias
            wei = wei - jnp.max(wei, axis=-1, keepdims=True)
            e = jnp.exp(wei)
            p = e * pl.reciprocal(jnp.sum(e, axis=-1, keepdims=True), approx=True)
            head_outs.append(jnp.dot(p, vh, preferred_element_type=jnp.float32))
        attn = jnp.concatenate(head_outs, axis=-1)           # (N, C), heads cat on lanes
        attn = (jnp.dot(attn, wproj_ref[l], preferred_element_type=jnp.float32)
                + bproj_ref[l])
        x = x + attn

        # --- feed-forward on ln2(x) ---
        h2 = _layernorm(x, ln2g_ref[l], ln2b_ref[l])
        f = jnp.dot(h2, w1_ref[l], preferred_element_type=jnp.float32) + b1_ref[l]
        f = jnp.maximum(f, 0.0)                              # ReLU
        f = jnp.dot(f, w2_ref[l], preferred_element_type=jnp.float32) + b2_ref[l]
        # TODO(synk): nn.Dropout(dropout) uses an undefined `dropout` in the source;
        # treated as eval-mode identity.
        x = x + f

    # --- final LayerNorm + lm_head (lane-dense padded output) ---
    xf = _layernorm(x, lnfg_ref[...], lnfb_ref[...])
    out_ref[...] = (jnp.dot(xf, wlm_ref[...], preferred_element_type=jnp.float32)
                    + blm_ref[...]).astype(out_ref.dtype)


def _full_spec(a):
    nd = a.ndim
    return pl.BlockSpec(a.shape, lambda i, _nd=nd: (0,) * _nd)


def init_params(key):
    keys = jax.random.split(key, 64)
    ki = iter(keys)

    def mat(shape, scale=0.02):
        return jax.random.normal(next(ki), shape, jnp.float32) * scale

    L = N_LAYERS
    layers = {
        "ln1_g": jnp.ones((L, 1, N_EMBD), jnp.float32),
        "ln1_b": jnp.zeros((L, 1, N_EMBD), jnp.float32),
        # per-head Linear(n_embd, head_size, bias=False) x 4, packed column-wise per head
        "wk": mat((L, N_EMBD, N_EMBD)),
        "wq": mat((L, N_EMBD, N_EMBD)),
        "wv": mat((L, N_EMBD, N_EMBD)),
        "wproj": mat((L, N_EMBD, N_EMBD)),
        "bproj": mat((L, 1, N_EMBD)),
        "ln2_g": jnp.ones((L, 1, N_EMBD), jnp.float32),
        "ln2_b": jnp.zeros((L, 1, N_EMBD), jnp.float32),
        "w1": mat((L, N_EMBD, N_EMBD)),
        "b1": mat((L, 1, N_EMBD)),
        "w2": mat((L, N_EMBD, N_EMBD)),
        "b2": mat((L, 1, N_EMBD)),
    }
    wlm = mat((N_EMBD, VOCAB_SIZE))
    blm = mat((1, VOCAB_SIZE))
    wlm_p = jnp.zeros((N_EMBD, VOCAB_PAD), jnp.float32).at[:, :VOCAB_SIZE].set(wlm)
    blm_p = jnp.zeros((1, VOCAB_PAD), jnp.float32).at[:, :VOCAB_SIZE].set(blm)

    return {
        "tok_emb": jax.random.normal(next(ki), (VOCAB_SIZE, N_EMBD), jnp.float32),
        "pos_emb": jax.random.normal(next(ki), (BLOCK_SIZE, N_EMBD), jnp.float32),
        "layers": layers,
        "lnf_g": jnp.ones((1, N_EMBD), jnp.float32),
        "lnf_b": jnp.zeros((1, N_EMBD), jnp.float32),
        "wlm_p": wlm_p,
        "blm_p": blm_p,
    }


def bigram_forward(idx, params):
    """forward(idx, targets=None) -> logits (B, T, vocab_size); loss is None."""
    B, T = idx.shape
    assert T <= BLOCK_SIZE, "sequence length exceeds block_size"

    # embedding gather + positional add (glue, outside the kernel)
    tok = jnp.take(params["tok_emb"], idx, axis=0)           # (B, T, C)
    pos = params["pos_emb"][:T]                              # (T, C)
    x = (tok + pos[None, :, :]).reshape(B * T, N_EMBD).astype(jnp.float32)

    # block-diagonal causal additive mask over flattened B*T rows (computed once)
    n = B * T
    r = jnp.arange(n, dtype=jnp.int32)
    same_seq = (r[:, None] // T) == (r[None, :] // T)
    causal = (r[None, :] % T) <= (r[:, None] % T)
    attn_bias = jnp.where(same_seq & causal, 0.0, -1e30).astype(jnp.float32)

    Lp = params["layers"]
    args = [x, attn_bias,
            Lp["ln1_g"], Lp["ln1_b"], Lp["wk"], Lp["wq"], Lp["wv"],
            Lp["wproj"], Lp["bproj"], Lp["ln2_g"], Lp["ln2_b"],
            Lp["w1"], Lp["b1"], Lp["w2"], Lp["b2"],
            params["lnf_g"], params["lnf_b"], params["wlm_p"], params["blm_p"]]

    logits_padded = pl.pallas_call(
        fused_forward_kernel,
        out_shape=jax.ShapeDtypeStruct((n, VOCAB_PAD), jnp.float32),
        grid_spec=pltpu.PrefetchScalarGridSpec(
            num_scalar_prefetch=0, grid=(1,),
            in_specs=[_full_spec(a) for a in args],
            out_specs=pl.BlockSpec((n, VOCAB_PAD), lambda i: (0, 0))),
        compiler_params=pltpu.CompilerParams(
            dimension_semantics=("arbitrary",)),
    )(*args)

    logits = logits_padded[:, :VOCAB_SIZE].reshape(B, T, VOCAB_SIZE)
    return logits, None


if __name__ == "__main__":
    key = jax.random.PRNGKey(0)
    pkey, ikey = jax.random.split(key)
    params = init_params(pkey)

    B, T = 2, BLOCK_SIZE
    idx = jax.random.randint(ikey, (B, T), 0, VOCAB_SIZE, dtype=jnp.int32)

    logits, loss = bigram_forward(idx, params)
    logits = jax.block_until_ready(logits)
    assert logits.shape == (B, T, VOCAB_SIZE)
    assert loss is None
    print("KERNEL_OK")
</pallas_src>

<mosaic_0001>
module attributes {stable_mosaic.version = 11 : i64} {
  func.func @fused_forward_kernel(%arg0: i32, %arg1: memref<16x32xf32, #tpu.memory_space<vmem>>, %arg2: memref<16x16xf32, #tpu.memory_space<vmem>>, %arg3: memref<3x1x32xf32, #tpu.memory_space<vmem>>, %arg4: memref<3x1x32xf32, #tpu.memory_space<vmem>>, %arg5: memref<3x32x32xf32, #tpu.memory_space<vmem>>, %arg6: memref<3x32x32xf32, #tpu.memory_space<vmem>>, %arg7: memref<3x32x32xf32, #tpu.memory_space<vmem>>, %arg8: memref<3x32x32xf32, #tpu.memory_space<vmem>>, %arg9: memref<3x1x32xf32, #tpu.memory_space<vmem>>, %arg10: memref<3x1x32xf32, #tpu.memory_space<vmem>>, %arg11: memref<3x1x32xf32, #tpu.memory_space<vmem>>, %arg12: memref<3x32x32xf32, #tpu.memory_space<vmem>>, %arg13: memref<3x1x32xf32, #tpu.memory_space<vmem>>, %arg14: memref<3x32x32xf32, #tpu.memory_space<vmem>>, %arg15: memref<3x1x32xf32, #tpu.memory_space<vmem>>, %arg16: memref<1x32xf32, #tpu.memory_space<vmem>>, %arg17: memref<1x32xf32, #tpu.memory_space<vmem>>, %arg18: memref<32x128xf32, #tpu.memory_space<vmem>>, %arg19: memref<1x128xf32, #tpu.memory_space<vmem>>, %arg20: memref<16x128xf32, #tpu.memory_space<vmem>>) attributes {dimension_semantics = [#tpu.dimension_semantics<arbitrary>], iteration_bounds = array<i64: 1>, scalar_prefetch = 0 : i64, scratch_operands = 0 : i64, tpu.core_type = #tpu.core_type<tc>, window_params = [{pipeline_mode = #tpu.pipeline_mode<synchronous>, transform_indices = @transform_0, window_bounds = array<i64: 16, 32>}, {pipeline_mode = #tpu.pipeline_mode<synchronous>, transform_indices = @transform_1, window_bounds = array<i64: 16, 16>}, {pipeline_mode = #tpu.pipeline_mode<synchronous>, transform_indices = @transform_2, window_bounds = array<i64: 3, 1, 32>}, {pipeline_mode = #tpu.pipeline_mode<synchronous>, transform_indices = @transform_3, window_bounds = array<i64: 3, 1, 32>}, {pipeline_mode = #tpu.pipeline_mode<synchronous>, transform_indices = @transform_4, window_bounds = array<i64: 3, 32, 32>}, {pipeline_mode = #tpu.pipeline_mode<synchronous>, transform_indices = @transform_5, window_bounds = array<i64: 3, 32, 32>}, {pipeline_mode = #tpu.pipeline_mode<synchronous>, transform_indices = @transform_6, window_bounds = array<i64: 3, 32, 32>}, {pipeline_mode = #tpu.pipeline_mode<synchronous>, transform_indices = @transform_7, window_bounds = array<i64: 3, 32, 32>}, {pipeline_mode = #tpu.pipeline_mode<synchronous>, transform_indices = @transform_8, window_bounds = array<i64: 3, 1, 32>}, {pipeline_mode = #tpu.pipeline_mode<synchronous>, transform_indices = @transform_9, window_bounds = array<i64: 3, 1, 32>}, {pipeline_mode = #tpu.pipeline_mode<synchronous>, transform_indices = @transform_10, window_bounds = array<i64: 3, 1, 32>}, {pipeline_mode = #tpu.pipeline_mode<synchronous>, transform_indices = @transform_11, window_bounds = array<i64: 3, 32, 32>}, {pipeline_mode = #tpu.pipeline_mode<synchronous>, transform_indices = @transform_12, window_bounds = array<i64: 3, 1, 32>}, {pipeline_mode = #tpu.pipeline_mode<synchronous>, transform_indices = @transform_13, window_bounds = array<i64: 3, 32, 32>}, {pipeline_mode = #tpu.pipeline_mode<synchronous>, transform_indices = @transform_14, window_bounds = array<i64: 3, 1, 32>}, {pipeline_mode = #tpu.pipeline_mode<synchronous>, transform_indices = @transform_15, window_bounds = array<i64: 1, 32>}, {pipeline_mode = #tpu.pipeline_mode<synchronous>, transform_indices = @transform_16, window_bounds = array<i64: 1, 32>}, {pipeline_mode = #tpu.pipeline_mode<synchronous>, transform_indices = @transform_17, window_bounds = array<i64: 32, 128>}, {pipeline_mode = #tpu.pipeline_mode<synchronous>, transform_indices = @transform_18, window_bounds = array<i64: 1, 128>}, {pipeline_mode = #tpu.pipeline_mode<synchronous>, transform_indices = @transform_19, window_bounds = array<i64: 16, 128>}]} {
    %c0 = arith.constant 0 : index
    %c0_0 = arith.constant 0 : index
    %0 = vector.load %arg1[%c0, %c0_0] : memref<16x32xf32, #tpu.memory_space<vmem>>, vector<16x32xf32>
    %c0_1 = arith.constant 0 : index
    %c0_2 = arith.constant 0 : index
    %1 = vector.load %arg2[%c0_1, %c0_2] : memref<16x16xf32, #tpu.memory_space<vmem>>, vector<16x16xf32>
    %c0_3 = arith.constant 0 : index
    %c0_4 = arith.constant 0 : index
    %c0_5 = arith.constant 0 : index
    %2 = vector.load %arg3[%c0_3, %c0_4, %c0_5] : memref<3x1x32xf32, #tpu.memory_space<vmem>>, vector<1x1x32xf32>
    %3 = vector.shape_cast %2 : vector<1x1x32xf32> to vector<1x32xf32>
    %c0_6 = arith.constant 0 : index
    %c0_7 = arith.constant 0 : index
    %c0_8 = arith.constant 0 : index
    %4 = vector.load %arg4[%c0_6, %c0_7, %c0_8] : memref<3x1x32xf32, #tpu.memory_space<vmem>>, vector<1x1x32xf32>
    %5 = vector.shape_cast %4 : vector<1x1x32xf32> to vector<1x32xf32>
    %cst = arith.constant dense<0.000000e+00> : vector<16xf32>
    %6 = vector.multi_reduction <add>, %0, %cst [1] : vector<16x32xf32> to vector<16xf32>
    %7 = vector.shape_cast %6 : vector<16xf32> to vector<16x1xf32>
    %cst_9 = arith.constant 3.200000e+01 : f32
    %8 = vector.broadcast %cst_9 : f32 to vector<16x1xf32>
    %9 = arith.divf %7, %8 : vector<16x1xf32>
    %10 = vector.broadcast %9 : vector<16x1xf32> to vector<16x32xf32>
    %11 = arith.subf %0, %10 : vector<16x32xf32>
    %12 = arith.mulf %11, %11 : vector<16x32xf32>
    %cst_10 = arith.constant dense<0.000000e+00> : vector<16xf32>
    %13 = vector.multi_reduction <add>, %12, %cst_10 [1] : vector<16x32xf32> to vector<16xf32>
    %14 = vector.shape_cast %13 : vector<16xf32> to vector<16x1xf32>
    %cst_11 = arith.constant 3.200000e+01 : f32
    %15 = vector.broadcast %cst_11 : f32 to vector<16x1xf32>
    %16 = arith.divf %14, %15 : vector<16x1xf32>
    %17 = vector.broadcast %9 : vector<16x1xf32> to vector<16x32xf32>
    %18 = arith.subf %0, %17 : vector<16x32xf32>
    %cst_12 = arith.constant 9.99999974E-6 : f32
    %19 = vector.broadcast %cst_12 : f32 to vector<16x1xf32>
    %20 = arith.addf %16, %19 : vector<16x1xf32>
    %21 = math.rsqrt %20 : vector<16x1xf32>
    %22 = vector.broadcast %21 : vector<16x1xf32> to vector<16x32xf32>
    %23 = arith.mulf %18, %22 : vector<16x32xf32>
    %24 = vector.broadcast %3 : vector<1x32xf32> to vector<16x32xf32>
    %25 = arith.mulf %23, %24 : vector<16x32xf32>
    %26 = vector.broadcast %5 : vector<1x32xf32> to vector<16x32xf32>
    %27 = arith.addf %25, %26 : vector<16x32xf32>
    %c0_13 = arith.constant 0 : index
    %c0_14 = arith.constant 0 : index
    %c0_15 = arith.constant 0 : index
    %28 = vector.load %arg5[%c0_13, %c0_14, %c0_15] : memref<3x32x32xf32, #tpu.memory_space<vmem>>, vector<1x32x32xf32>
    %29 = vector.shape_cast %28 : vector<1x32x32xf32> to vector<32x32xf32>
    %cst_16 = arith.constant dense<0.000000e+00> : vector<16x32xf32>
    %30 = tpu.matmul %27, %29, %cst_16 {dimension_numbers = #tpu.dot_dimension_numbers<[1], [0], [0], [1], [0, 0, 1, 1], [], []>} : vector<16x32xf32>, vector<32x32xf32>, vector<16x32xf32> -> vector<16x32xf32>
    %c0_17 = arith.constant 0 : index
    %c0_18 = arith.constant 0 : index
    %c0_19 = arith.constant 0 : index
    %31 = vector.load %arg6[%c0_17, %c0_18, %c0_19] : memref<3x32x32xf32, #tpu.memory_space<vmem>>, vector<1x32x32xf32>
    %32 = vector.shape_cast %31 : vector<1x32x32xf32> to vector<32x32xf32>
    %cst_20 = arith.constant dense<0.000000e+00> : vector<16x32xf32>
    %33 = tpu.matmul %27, %32, %cst_20 {dimension_numbers = #tpu.dot_dimension_numbers<[1], [0], [0], [1], [0, 0, 1, 1], [], []>} : vector<16x32xf32>, vector<32x32xf32>, vector<16x32xf32> -> vector<16x32xf32>
    %c0_21 = arith.constant 0 : index
    %c0_22 = arith.constant 0 : index
    %c0_23 = arith.constant 0 : index
    %34 = vector.load %arg7[%c0_21, %c0_22, %c0_23] : memref<3x32x32xf32, #tpu.memory_space<vmem>>, vector<1x32x32xf32>
    %35 = vector.shape_cast %34 : vector<1x32x32xf32> to vector<32x32xf32>
    %cst_24 = arith.constant dense<0.000000e+00> : vector<16x32xf32>
    %36 = tpu.matmul %27, %35, %cst_24 {dimension_numbers = #tpu.dot_dimension_numbers<[1], [0], [0], [1], [0, 0, 1, 1], [], []>} : vector<16x32xf32>, vector<32x32xf32>, vector<16x32xf32> -> vector<16x32xf32>
    %37 = vector.extract_strided_slice %33 {offsets = [0, 0], sizes = [16, 8], strides = [1, 1]} : vector<16x32xf32> to vector<16x8xf32>
    %38 = vector.extract_strided_slice %30 {offsets = [0, 0], sizes = [16, 8], strides = [1, 1]} : vector<16x32xf32> to vector<16x8xf32>
    %39 = vector.extract_strided_slice %36 {offsets = [0, 0], sizes = [16, 8], strides = [1, 1]} : vector<16x32xf32> to vector<16x8xf32>
    %40 = tpu.transpose %38, [1, 0] : vector<16x8xf32> -> vector<8x16xf32>
    %cst_25 = arith.constant dense<0.000000e+00> : vector<16x16xf32>
    %41 = tpu.matmul %37, %40, %cst_25 {dimension_numbers = #tpu.dot_dimension_numbers<[1], [0], [0], [1], [0, 0, 1, 1], [], []>} : vector<16x8xf32>, vector<8x16xf32>, vector<16x16xf32> -> vector<16x16xf32>
    %cst_26 = arith.constant 0.176776692 : f32
    %42 = vector.broadcast %cst_26 : f32 to vector<16x16xf32>
    %43 = arith.mulf %41, %42 : vector<16x16xf32>
    %44 = arith.addf %43, %1 : vector<16x16xf32>
    %cst_27 = arith.constant dense<0xFF800000> : vector<16xf32>
    %45 = vector.multi_reduction <maximumf>, %44, %cst_27 [1] : vector<16x16xf32> to vector<16xf32>
    %46 = vector.shape_cast %45 : vector<16xf32> to vector<16x1xf32>
    %47 = vector.broadcast %46 : vector<16x1xf32> to vector<16x16xf32>
    %48 = arith.subf %44, %47 : vector<16x16xf32>
    %49 = math.exp %48 : vector<16x16xf32>
    %cst_28 = arith.constant dense<0.000000e+00> : vector<16xf32>
    %50 = vector.multi_reduction <add>, %49, %cst_28 [1] : vector<16x16xf32> to vector<16xf32>
    %51 = vector.shape_cast %50 : vector<16xf32> to vector<16x1xf32>
    %52 = tpu.reciprocal %51 {approx = true} : vector<16x1xf32> -> vector<16x1xf32>
    %53 = vector.broadcast %52 : vector<16x1xf32> to vector<16x16xf32>
    %54 = arith.mulf %49, %53 : vector<16x16xf32>
    %cst_29 = arith.constant dense<0.000000e+00> : vector<16x8xf32>
    %55 = tpu.matmul %54, %39, %cst_29 {dimension_numbers = #tpu.dot_dimension_numbers<[1], [0], [0], [1], [0, 0, 1, 1], [], []>} : vector<16x16xf32>, vector<16x8xf32>, vector<16x8xf32> -> vector<16x8xf32>
    %56 = vector.extract_strided_slice %33 {offsets = [0, 8], sizes = [16, 8], strides = [1, 1]} : vector<16x32xf32> to vector<16x8xf32>
    %57 = vector.extract_strided_slice %30 {offsets = [0, 8], sizes = [16, 8], strides = [1, 1]} : vector<16x32xf32> to vector<16x8xf32>
    %58 = vector.extract_strided_slice %36 {offsets = [0, 8], sizes = [16, 8], strides = [1, 1]} : vector<16x32xf32> to vector<16x8xf32>
    %59 = tpu.transpose %57, [1, 0] : vector<16x8xf32> -> vector<8x16xf32>
    %cst_30 = arith.constant dense<0.000000e+00> : vector<16x16xf32>
    %60 = tpu.matmul %56, %59, %cst_30 {dimension_numbers = #tpu.dot_dimension_numbers<[1], [0], [0], [1], [0, 0, 1, 1], [], []>} : vector<16x8xf32>, vector<8x16xf32>, vector<16x16xf32> -> vector<16x16xf32>
    %cst_31 = arith.constant 0.176776692 : f32
    %61 = vector.broadcast %cst_31 : f32 to vector<16x16xf32>
    %62 = arith.mulf %60, %61 : vector<16x16xf32>
    %63 = arith.addf %62, %1 : vector<16x16xf32>
    %cst_32 = arith.constant dense<0xFF800000> : vector<16xf32>
    %64 = vector.multi_reduction <maximumf>, %63, %cst_32 [1] : vector<16x16xf32> to vector<16xf32>
    %65 = vector.shape_cast %64 : vector<16xf32> to vector<16x1xf32>
    %66 = vector.broadcast %65 : vector<16x1xf32> to vector<16x16xf32>
    %67 = arith.subf %63, %66 : vector<16x16xf32>
    %68 = math.exp %67 : vector<16x16xf32>
    %cst_33 = arith.constant dense<0.000000e+00> : vector<16xf32>
    %69 = vector.multi_reduction <add>, %68, %cst_33 [1] : vector<16x16xf32> to vector<16xf32>
    %70 = vector.shape_cast %69 : vector<16xf32> to vector<16x1xf32>
    %71 = tpu.reciprocal %70 {approx = true} : vector<16x1xf32> -> vector<16x1xf32>
    %72 = vector.broadcast %71 : vector<16x1xf32> to vector<16x16xf32>
    %73 = arith.mulf %68, %72 : vector<16x16xf32>
    %cst_34 = arith.constant dense<0.000000e+00> : vector<16x8xf32>
    %74 = tpu.matmul %73, %58, %cst_34 {dimension_numbers = #tpu.dot_dimension_numbers<[1], [0], [0], [1], [0, 0, 1, 1], [], []>} : vector<16x16xf32>, vector<16x8xf32>, vector<16x8xf32> -> vector<16x8xf32>
    %75 = vector.extract_strided_slice %33 {offsets = [0, 16], sizes = [16, 8], strides = [1, 1]} : vector<16x32xf32> to vector<16x8xf32>
    %76 = vector.extract_strided_slice %30 {offsets = [0, 16], sizes = [16, 8], strides = [1, 1]} : vector<16x32xf32> to vector<16x8xf32>
    %77 = vector.extract_strided_slice %36 {offsets = [0, 16], sizes = [16, 8], strides = [1, 1]} : vector<16x32xf32> to vector<16x8xf32>
    %78 = tpu.transpose %76, [1, 0] : vector<16x8xf32> -> vector<8x16xf32>
    %cst_35 = arith.constant dense<0.000000e+00> : vector<16x16xf32>
    %79 = tpu.matmul %75, %78, %cst_35 {dimension_numbers = #tpu.dot_dimension_numbers<[1], [0], [0], [1], [0, 0, 1, 1], [], []>} : vector<16x8xf32>, vector<8x16xf32>, vector<16x16xf32> -> vector<16x16xf32>
    %cst_36 = arith.constant 0.176776692 : f32
    %80 = vector.broadcast %cst_36 : f32 to vector<16x16xf32>
    %81 = arith.mulf %79, %80 : vector<16x16xf32>
    %82 = arith.addf %81, %1 : vector<16x16xf32>
    %cst_37 = arith.constant dense<0xFF800000> : vector<16xf32>
    %83 = vector.multi_reduction <maximumf>, %82, %cst_37 [1] : vector<16x16xf32> to vector<16xf32>
    %84 = vector.shape_cast %83 : vector<16xf32> to vector<16x1xf32>
    %85 = vector.broadcast %84 : vector<16x1xf32> to vector<16x16xf32>
    %86 = arith.subf %82, %85 : vector<16x16xf32>
    %87 = math.exp %86 : vector<16x16xf32>
    %cst_38 = arith.constant dense<0.000000e+00> : vector<16xf32>
    %88 = vector.multi_reduction <add>, %87, %cst_38 [1] : vector<16x16xf32> to vector<16xf32>
    %89 = vector.shape_cast %88 : vector<16xf32> to vector<16x1xf32>
    %90 = tpu.reciprocal %89 {approx = true} : vector<16x1xf32> -> vector<16x1xf32>
    %91 = vector.broadcast %90 : vector<16x1xf32> to vector<16x16xf32>
    %92 = arith.mulf %87, %91 : vector<16x16xf32>
    %cst_39 = arith.constant dense<0.000000e+00> : vector<16x8xf32>
    %93 = tpu.matmul %92, %77, %cst_39 {dimension_numbers = #tpu.dot_dimension_numbers<[1], [0], [0], [1], [0, 0, 1, 1], [], []>} : vector<16x16xf32>, vector<16x8xf32>, vector<16x8xf32> -> vector<16x8xf32>
    %94 = vector.extract_strided_slice %33 {offsets = [0, 24], sizes = [16, 8], strides = [1, 1]} : vector<16x32xf32> to vector<16x8xf32>
    %95 = vector.extract_strided_slice %30 {offsets = [0, 24], sizes = [16, 8], strides = [1, 1]} : vector<16x32xf32> to vector<16x8xf32>
    %96 = vector.extract_strided_slice %36 {offsets = [0, 24], sizes = [16, 8], strides = [1, 1]} : vector<16x32xf32> to vector<16x8xf32>
    %97 = tpu.transpose %95, [1, 0] : vector<16x8xf32> -> vector<8x16xf32>
    %cst_40 = arith.constant dense<0.000000e+00> : vector<16x16xf32>
    %98 = tpu.matmul %94, %97, %cst_40 {dimension_numbers = #tpu.dot_dimension_numbers<[1], [0], [0], [1], [0, 0, 1, 1], [], []>} : vector<16x8xf32>, vector<8x16xf32>, vector<16x16xf32> -> vector<16x16xf32>
    %cst_41 = arith.constant 0.176776692 : f32
    %99 = vector.broadcast %cst_41 : f32 to vector<16x16xf32>
    %100 = arith.mulf %98, %99 : vector<16x16xf32>
    %101 = arith.addf %100, %1 : vector<16x16xf32>
    %cst_42 = arith.constant dense<0xFF800000> : vector<16xf32>
    %102 = vector.multi_reduction <maximumf>, %101, %cst_42 [1] : vector<16x16xf32> to vector<16xf32>
    %103 = vector.shape_cast %102 : vector<16xf32> to vector<16x1xf32>
    %104 = vector.broadcast %103 : vector<16x1xf32> to vector<16x16xf32>
    %105 = arith.subf %101, %104 : vector<16x16xf32>
    %106 = math.exp %105 : vector<16x16xf32>
    %cst_43 = arith.constant dense<0.000000e+00> : vector<16xf32>
    %107 = vector.multi_reduction <add>, %106, %cst_43 [1] : vector<16x16xf32> to vector<16xf32>
    %108 = vector.shape_cast %107 : vector<16xf32> to vector<16x1xf32>
    %109 = tpu.reciprocal %108 {approx = true} : vector<16x1xf32> -> vector<16x1xf32>
    %110 = vector.broadcast %109 : vector<16x1xf32> to vector<16x16xf32>
    %111 = arith.mulf %106, %110 : vector<16x16xf32>
    %cst_44 = arith.constant dense<0.000000e+00> : vector<16x8xf32>
    %112 = tpu.matmul %111, %96, %cst_44 {dimension_numbers = #tpu.dot_dimension_numbers<[1], [0], [0], [1], [0, 0, 1, 1], [], []>} : vector<16x16xf32>, vector<16x8xf32>, vector<16x8xf32> -> vector<16x8xf32>
    %113 = tpu.concatenate %55, %74, %93, %112 in 1 : vector<16x8xf32>, vector<16x8xf32>, vector<16x8xf32>, vector<16x8xf32> -> vector<16x32xf32>
    %c0_45 = arith.constant 0 : index
    %c0_46 = arith.constant 0 : index
    %c0_47 = arith.constant 0 : index
    %114 = vector.load %arg8[%c0_45, %c0_46, %c0_47] : memref<3x32x32xf32, #tpu.memory_space<vmem>>, vector<1x32x32xf32>
    %115 = vector.shape_cast %114 : vector<1x32x32xf32> to vector<32x32xf32>
    %cst_48 = arith.constant dense<0.000000e+00> : vector<16x32xf32>
    %116 = tpu.matmul %113, %115, %cst_48 {dimension_numbers = #tpu.dot_dimension_numbers<[1], [0], [0], [1], [0, 0, 1, 1], [], []>} : vector<16x32xf32>, vector<32x32xf32>, vector<16x32xf32> -> vector<16x32xf32>
    %c0_49 = arith.constant 0 : index
    %c0_50 = arith.constant 0 : index
    %c0_51 = arith.constant 0 : index
    %117 = vector.load %arg9[%c0_49, %c0_50, %c0_51] : memref<3x1x32xf32, #tpu.memory_space<vmem>>, vector<1x1x32xf32>
    %118 = vector.shape_cast %117 : vector<1x1x32xf32> to vector<1x32xf32>
    %119 = vector.broadcast %118 : vector<1x32xf32> to vector<16x32xf32>
    %120 = arith.addf %116, %119 : vector<16x32xf32>
    %121 = arith.addf %0, %120 : vector<16x32xf32>
    %c0_52 = arith.constant 0 : index
    %c0_53 = arith.constant 0 : index
    %c0_54 = arith.constant 0 : index
    %122 = vector.load %arg10[%c0_52, %c0_53, %c0_54] : memref<3x1x32xf32, #tpu.memory_space<vmem>>, vector<1x1x32xf32>
    %123 = vector.shape_cast %122 : vector<1x1x32xf32> to vector<1x32xf32>
    %c0_55 = arith.constant 0 : index
    %c0_56 = arith.constant 0 : index
    %c0_57 = arith.constant 0 : index
    %124 = vector.load %arg11[%c0_55, %c0_56, %c0_57] : memref<3x1x32xf32, #tpu.memory_space<vmem>>, vector<1x1x32xf32>
    %125 = vector.shape_cast %124 : vector<1x1x32xf32> to vector<1x32xf32>
    %cst_58 = arith.constant dense<0.000000e+00> : vector<16xf32>
    %126 = vector.multi_reduction <add>, %121, %cst_58 [1] : vector<16x32xf32> to vector<16xf32>
    %127 = vector.shape_cast %126 : vector<16xf32> to vector<16x1xf32>
    %cst_59 = arith.constant 3.200000e+01 : f32
    %128 = vector.broadcast %cst_59 : f32 to vector<16x1xf32>
    %129 = arith.divf %127, %128 : vector<16x1xf32>
    %130 = vector.broadcast %129 : vector<16x1xf32> to vector<16x32xf32>
    %131 = arith.subf %121, %130 : vector<16x32xf32>
    %132 = arith.mulf %131, %131 : vector<16x32xf32>
    %cst_60 = arith.constant dense<0.000000e+00> : vector<16xf32>
    %133 = vector.multi_reduction <add>, %132, %cst_60 [1] : vector<16x32xf32> to vector<16xf32>
    %134 = vector.shape_cast %133 : vector<16xf32> to vector<16x1xf32>
    %cst_61 = arith.constant 3.200000e+01 : f32
    %135 = vector.broadcast %cst_61 : f32 to vector<16x1xf32>
    %136 = arith.divf %134, %135 : vector<16x1xf32>
    %137 = vector.broadcast %129 : vector<16x1xf32> to vector<16x32xf32>
    %138 = arith.subf %121, %137 : vector<16x32xf32>
    %cst_62 = arith.constant 9.99999974E-6 : f32
    %139 = vector.broadcast %cst_62 : f32 to vector<16x1xf32>
    %140 = arith.addf %136, %139 : vector<16x1xf32>
    %141 = math.rsqrt %140 : vector<16x1xf32>
    %142 = vector.broadcast %141 : vector<16x1xf32> to vector<16x32xf32>
    %143 = arith.mulf %138, %142 : vector<16x32xf32>
    %144 = vector.broadcast %123 : vector<1x32xf32> to vector<16x32xf32>
    %145 = arith.mulf %143, %144 : vector<16x32xf32>
    %146 = vector.broadcast %125 : vector<1x32xf32> to vector<16x32xf32>
    %147 = arith.addf %145, %146 : vector<16x32xf32>
    %c0_63 = arith.constant 0 : index
    %c0_64 = arith.constant 0 : index
    %c0_65 = arith.constant 0 : index
    %148 = vector.load %arg12[%c0_63, %c0_64, %c0_65] : memref<3x32x32xf32, #tpu.memory_space<vmem>>, vector<1x32x32xf32>
    %149 = vector.shape_cast %148 : vector<1x32x32xf32> to vector<32x32xf32>
    %cst_66 = arith.constant dense<0.000000e+00> : vector<16x32xf32>
    %150 = tpu.matmul %147, %149, %cst_66 {dimension_numbers = #tpu.dot_dimension_numbers<[1], [0], [0], [1], [0, 0, 1, 1], [], []>} : vector<16x32xf32>, vector<32x32xf32>, vector<16x32xf32> -> vector<16x32xf32>
    %c0_67 = arith.constant 0 : index
    %c0_68 = arith.constant 0 : index
    %c0_69 = arith.constant 0 : index
    %151 = vector.load %arg13[%c0_67, %c0_68, %c0_69] : memref<3x1x32xf32, #tpu.memory_space<vmem>>, vector<1x1x32xf32>
    %152 = vector.shape_cast %151 : vector<1x1x32xf32> to vector<1x32xf32>
    %153 = vector.broadcast %152 : vector<1x32xf32> to vector<16x32xf32>
    %154 = arith.addf %150, %153 : vector<16x32xf32>
    %cst_70 = arith.constant 0.000000e+00 : f32
    %155 = vector.broadcast %cst_70 : f32 to vector<16x32xf32>
    %156 = arith.maximumf %154, %155 : vector<16x32xf32>
    %c0_71 = arith.constant 0 : index
    %c0_72 = arith.constant 0 : index
    %c0_73 = arith.constant 0 : index
    %157 = vector.load %arg14[%c0_71, %c0_72, %c0_73] : memref<3x32x32xf32, #tpu.memory_space<vmem>>, vector<1x32x32xf32>
    %158 = vector.shape_cast %157 : vector<1x32x32xf32> to vector<32x32xf32>
    %cst_74 = arith.constant dense<0.000000e+00> : vector<16x32xf32>
    %159 = tpu.matmul %156, %158, %cst_74 {dimension_numbers = #tpu.dot_dimension_numbers<[1], [0], [0], [1], [0, 0, 1, 1], [], []>} : vector<16x32xf32>, vector<32x32xf32>, vector<16x32xf32> -> vector<16x32xf32>
    %c0_75 = arith.constant 0 : index
    %c0_76 = arith.constant 0 : index
    %c0_77 = arith.constant 0 : index
    %160 = vector.load %arg15[%c0_75, %c0_76, %c0_77] : memref<3x1x32xf32, #tpu.memory_space<vmem>>, vector<1x1x32xf32>
    %161 = vector.shape_cast %160 : vector<1x1x32xf32> to vector<1x32xf32>
    %162 = vector.broadcast %161 : vector<1x32xf32> to vector<16x32xf32>
    %163 = arith.addf %159, %162 : vector<16x32xf32>
    %164 = arith.addf %121, %163 : vector<16x32xf32>
    %c1 = arith.constant 1 : index
    %c0_78 = arith.constant 0 : index
    %c0_79 = arith.constant 0 : index
    %165 = vector.load %arg3[%c1, %c0_78, %c0_79] : memref<3x1x32xf32, #tpu.memory_space<vmem>>, vector<1x1x32xf32>
    %166 = vector.shape_cast %165 : vector<1x1x32xf32> to vector<1x32xf32>
    %c1_80 = arith.constant 1 : index
    %c0_81 = arith.constant 0 : index
    %c0_82 = arith.constant 0 : index
    %167 = vector.load %arg4[%c1_80, %c0_81, %c0_82] : memref<3x1x32xf32, #tpu.memory_space<vmem>>, vector<1x1x32xf32>
    %168 = vector.shape_cast %167 : vector<1x1x32xf32> to vector<1x32xf32>
    %cst_83 = arith.constant dense<0.000000e+00> : vector<16xf32>
    %169 = vector.multi_reduction <add>, %164, %cst_83 [1] : vector<16x32xf32> to vector<16xf32>
    %170 = vector.shape_cast %169 : vector<16xf32> to vector<16x1xf32>
    %cst_84 = arith.constant 3.200000e+01 : f32
    %171 = vector.broadcast %cst_84 : f32 to vector<16x1xf32>
    %172 = arith.divf %170, %171 : vector<16x1xf32>
    %173 = vector.broadcast %172 : vector<16x1xf32> to vector<16x32xf32>
    %174 = arith.subf %164, %173 : vector<16x32xf32>
    %175 = arith.mulf %174, %174 : vector<16x32xf32>
    %cst_85 = arith.constant dense<0.000000e+00> : vector<16xf32>
    %176 = vector.multi_reduction <add>, %175, %cst_85 [1] : vector<16x32xf32> to vector<16xf32>
    %177 = vector.shape_cast %176 : vector<16xf32> to vector<16x1xf32>
    %cst_86 = arith.constant 3.200000e+01 : f32
    %178 = vector.broadcast %cst_86 : f32 to vector<16x1xf32>
    %179 = arith.divf %177, %178 : vector<16x1xf32>
    %180 = vector.broadcast %172 : vector<16x1xf32> to vector<16x32xf32>
    %181 = arith.subf %164, %180 : vector<16x32xf32>
    %cst_87 = arith.constant 9.99999974E-6 : f32
    %182 = vector.broadcast %cst_87 : f32 to vector<16x1xf32>
    %183 = arith.addf %179, %182 : vector<16x1xf32>
    %184 = math.rsqrt %183 : vector<16x1xf32>
    %185 = vector.broadcast %184 : vector<16x1xf32> to vector<16x32xf32>
    %186 = arith.mulf %181, %185 : vector<16x32xf32>
    %187 = vector.broadcast %166 : vector<1x32xf32> to vector<16x32xf32>
    %188 = arith.mulf %186, %187 : vector<16x32xf32>
    %189 = vector.broadcast %168 : vector<1x32xf32> to vector<16x32xf32>
    %190 = arith.addf %188, %189 : vector<16x32xf32>
    %c1_88 = arith.constant 1 : index
    %c0_89 = arith.constant 0 : index
    %c0_90 = arith.constant 0 : index
    %191 = vector.load %arg5[%c1_88, %c0_89, %c0_90] : memref<3x32x32xf32, #tpu.memory_space<vmem>>, vector<1x32x32xf32>
    %192 = vector.shape_cast %191 : vector<1x32x32xf32> to vector<32x32xf32>
    %cst_91 = arith.constant dense<0.000000e+00> : vector<16x32xf32>
    %193 = tpu.matmul %190, %192, %cst_91 {dimension_numbers = #tpu.dot_dimension_numbers<[1], [0], [0], [1], [0, 0, 1, 1], [], []>} : vector<16x32xf32>, vector<32x32xf32>, vector<16x32xf32> -> vector<16x32xf32>
    %c1_92 = arith.constant 1 : index
    %c0_93 = arith.constant 0 : index
    %c0_94 = arith.constant 0 : index
    %194 = vector.load %arg6[%c1_92, %c0_93, %c0_94] : memref<3x32x32xf32, #tpu.memory_space<vmem>>, vector<1x32x32xf32>
    %195 = vector.shape_cast %194 : vector<1x32x32xf32> to vector<32x32xf32>
    %cst_95 = arith.constant dense<0.000000e+00> : vector<16x32xf32>
    %196 = tpu.matmul %190, %195, %cst_95 {dimension_numbers = #tpu.dot_dimension_numbers<[1], [0], [0], [1], [0, 0, 1, 1], [], []>} : vector<16x32xf32>, vector<32x32xf32>, vector<16x32xf32> -> vector<16x32xf32>
    %c1_96 = arith.constant 1 : index
    %c0_97 = arith.constant 0 : index
    %c0_98 = arith.constant 0 : index
    %197 = vector.load %arg7[%c1_96, %c0_97, %c0_98] : memref<3x32x32xf32, #tpu.memory_space<vmem>>, vector<1x32x32xf32>
    %198 = vector.shape_cast %197 : vector<1x32x32xf32> to vector<32x32xf32>
    %cst_99 = arith.constant dense<0.000000e+00> : vector<16x32xf32>
    %199 = tpu.matmul %190, %198, %cst_99 {dimension_numbers = #tpu.dot_dimension_numbers<[1], [0], [0], [1], [0, 0, 1, 1], [], []>} : vector<16x32xf32>, vector<32x32xf32>, vector<16x32xf32> -> vector<16x32xf32>
    %200 = vector.extract_strided_slice %196 {offsets = [0, 0], sizes = [16, 8], strides = [1, 1]} : vector<16x32xf32> to vector<16x8xf32>
    %201 = vector.extract_strided_slice %193 {offsets = [0, 0], sizes = [16, 8], strides = [1, 1]} : vector<16x32xf32> to vector<16x8xf32>
    %202 = vector.extract_strided_slice %199 {offsets = [0, 0], sizes = [16, 8], strides = [1, 1]} : vector<16x32xf32> to vector<16x8xf32>
    %203 = tpu.transpose %201, [1, 0] : vector<16x8xf32> -> vector<8x16xf32>
    %cst_100 = arith.constant dense<0.000000e+00> : vector<16x16xf32>
    %204 = tpu.matmul %200, %203, %cst_100 {dimension_numbers = #tpu.dot_dimension_numbers<[1], [0], [0], [1], [0, 0, 1, 1], [], []>} : vector<16x8xf32>, vector<8x16xf32>, vector<16x16xf32> -> vector<16x16xf32>
    %cst_101 = arith.constant 0.176776692 : f32
    %205 = vector.broadcast %cst_101 : f32 to vector<16x16xf32>
    %206 = arith.mulf %204, %205 : vector<16x16xf32>
    %207 = arith.addf %206, %1 : vector<16x16xf32>
    %cst_102 = arith.constant dense<0xFF800000> : vector<16xf32>
    %208 = vector.multi_reduction <maximumf>, %207, %cst_102 [1] : vector<16x16xf32> to vector<16xf32>
    %209 = vector.shape_cast %208 : vector<16xf32> to vector<16x1xf32>
    %210 = vector.broadcast %209 : vector<16x1xf32> to vector<16x16xf32>
    %211 = arith.subf %207, %210 : vector<16x16xf32>
    %212 = math.exp %211 : vector<16x16xf32>
    %cst_103 = arith.constant dense<0.000000e+00> : vector<16xf32>
    %213 = vector.multi_reduction <add>, %212, %cst_103 [1] : vector<16x16xf32> to vector<16xf32>
    %214 = vector.shape_cast %213 : vector<16xf32> to vector<16x1xf32>
    %215 = tpu.reciprocal %214 {approx = true} : vector<16x1xf32> -> vector<16x1xf32>
    %216 = vector.broadcast %215 : vector<16x1xf32> to vector<16x16xf32>
    %217 = arith.mulf %212, %216 : vector<16x16xf32>
    %cst_104 = arith.constant dense<0.000000e+00> : vector<16x8xf32>
    %218 = tpu.matmul %217, %202, %cst_104 {dimension_numbers = #tpu.dot_dimension_numbers<[1], [0], [0], [1], [0, 0, 1, 1], [], []>} : vector<16x16xf32>, vector<16x8xf32>, vector<16x8xf32> -> vector<16x8xf32>
    %219 = vector.extract_strided_slice %196 {offsets = [0, 8], sizes = [16, 8], strides = [1, 1]} : vector<16x32xf32> to vector<16x8xf32>
    %220 = vector.extract_strided_slice %193 {offsets = [0, 8], sizes = [16, 8], strides = [1, 1]} : vector<16x32xf32> to vector<16x8xf32>
    %221 = vector.extract_strided_slice %199 {offsets = [0, 8], sizes = [16, 8], strides = [1, 1]} : vector<16x32xf32> to vector<16x8xf32>
    %222 = tpu.transpose %220, [1, 0] : vector<16x8xf32> -> vector<8x16xf32>
    %cst_105 = arith.constant dense<0.000000e+00> : vector<16x16xf32>
    %223 = tpu.matmul %219, %222, %cst_105 {dimension_numbers = #tpu.dot_dimension_numbers<[1], [0], [0], [1], [0, 0, 1, 1], [], []>} : vector<16x8xf32>, vector<8x16xf32>, vector<16x16xf32> -> vector<16x16xf32>
    %cst_106 = arith.constant 0.176776692 : f32
    %224 = vector.broadcast %cst_106 : f32 to vector<16x16xf32>
    %225 = arith.mulf %223, %224 : vector<16x16xf32>
    %226 = arith.addf %225, %1 : vector<16x16xf32>
    %cst_107 = arith.constant dense<0xFF800000> : vector<16xf32>
    %227 = vector.multi_reduction <maximumf>, %226, %cst_107 [1] : vector<16x16xf32> to vector<16xf32>
    %228 = vector.shape_cast %227 : vector<16xf32> to vector<16x1xf32>
    %229 = vector.broadcast %228 : vector<16x1xf32> to vector<16x16xf32>
    %230 = arith.subf %226, %229 : vector<16x16xf32>
    %231 = math.exp %230 : vector<16x16xf32>
    %cst_108 = arith.constant dense<0.000000e+00> : vector<16xf32>
    %232 = vector.multi_reduction <add>, %231, %cst_108 [1] : vector<16x16xf32> to vector<16xf32>
    %233 = vector.shape_cast %232 : vector<16xf32> to vector<16x1xf32>
    %234 = tpu.reciprocal %233 {approx = true} : vector<16x1xf32> -> vector<16x1xf32>
    %235 = vector.broadcast %234 : vector<16x1xf32> to vector<16x16xf32>
    %236 = arith.mulf %231, %235 : vector<16x16xf32>
    %cst_109 = arith.constant dense<0.000000e+00> : vector<16x8xf32>
    %237 = tpu.matmul %236, %221, %cst_109 {dimension_numbers = #tpu.dot_dimension_numbers<[1], [0], [0], [1], [0, 0, 1, 1], [], []>} : vector<16x16xf32>, vector<16x8xf32>, vector<16x8xf32> -> vector<16x8xf32>
    %238 = vector.extract_strided_slice %196 {offsets = [0, 16], sizes = [16, 8], strides = [1, 1]} : vector<16x32xf32> to vector<16x8xf32>
    %239 = vector.extract_strided_slice %193 {offsets = [0, 16], sizes = [16, 8], strides = [1, 1]} : vector<16x32xf32> to vector<16x8xf32>
    %240 = vector.extract_strided_slice %199 {offsets = [0, 16], sizes = [16, 8], strides = [1, 1]} : vector<16x32xf32> to vector<16x8xf32>
    %241 = tpu.transpose %239, [1, 0] : vector<16x8xf32> -> vector<8x16xf32>
    %cst_110 = arith.constant dense<0.000000e+00> : vector<16x16xf32>
    %242 = tpu.matmul %238, %241, %cst_110 {dimension_numbers = #tpu.dot_dimension_numbers<[1], [0], [0], [1], [0, 0, 1, 1], [], []>} : vector<16x8xf32>, vector<8x16xf32>, vector<16x16xf32> -> vector<16x16xf32>
    %cst_111 = arith.constant 0.176776692 : f32
    %243 = vector.broadcast %cst_111 : f32 to vector<16x16xf32>
    %244 = arith.mulf %242, %243 : vector<16x16xf32>
    %245 = arith.addf %244, %1 : vector<16x16xf32>
    %cst_112 = arith.constant dense<0xFF800000> : vector<16xf32>
    %246 = vector.multi_reduction <maximumf>, %245, %cst_112 [1] : vector<16x16xf32> to vector<16xf32>
    %247 = vector.shape_cast %246 : vector<16xf32> to vector<16x1xf32>
    %248 = vector.broadcast %247 : vector<16x1xf32> to vector<16x16xf32>
    %249 = arith.subf %245, %248 : vector<16x16xf32>
    %250 = math.exp %249 : vector<16x16xf32>
    %cst_113 = arith.constant dense<0.000000e+00> : vector<16xf32>
    %251 = vector.multi_reduction <add>, %250, %cst_113 [1] : vector<16x16xf32> to vector<16xf32>
    %252 = vector.shape_cast %251 : vector<16xf32> to vector<16x1xf32>
    %253 = tpu.reciprocal %252 {approx = true} : vector<16x1xf32> -> vector<16x1xf32>
    %254 = vector.broadcast %253 : vector<16x1xf32> to vector<16x16xf32>
    %255 = arith.mulf %250, %254 : vector<16x16xf32>
    %cst_114 = arith.constant dense<0.000000e+00> : vector<16x8xf32>
    %256 = tpu.matmul %255, %240, %cst_114 {dimension_numbers = #tpu.dot_dimension_numbers<[1], [0], [0], [1], [0, 0, 1, 1], [], []>} : vector<16x16xf32>, vector<16x8xf32>, vector<16x8xf32> -> vector<16x8xf32>
    %257 = vector.extract_strided_slice %196 {offsets = [0, 24], sizes = [16, 8], strides = [1, 1]} : vector<16x32xf32> to vector<16x8xf32>
    %258 = vector.extract_strided_slice %193 {offsets = [0, 24], sizes = [16, 8], strides = [1, 1]} : vector<16x32xf32> to vector<16x8xf32>
    %259 = vector.extract_strided_slice %199 {offsets = [0, 24], sizes = [16, 8], strides = [1, 1]} : vector<16x32xf32> to vector<16x8xf32>
    %260 = tpu.transpose %258, [1, 0] : vector<16x8xf32> -> vector<8x16xf32>
    %cst_115 = arith.constant dense<0.000000e+00> : vector<16x16xf32>
    %261 = tpu.matmul %257, %260, %cst_115 {dimension_numbers = #tpu.dot_dimension_numbers<[1], [0], [0], [1], [0, 0, 1, 1], [], []>} : vector<16x8xf32>, vector<8x16xf32>, vector<16x16xf32> -> vector<16x16xf32>
    %cst_116 = arith.constant 0.176776692 : f32
    %262 = vector.broadcast %cst_116 : f32 to vector<16x16xf32>
    %263 = arith.mulf %261, %262 : vector<16x16xf32>
    %264 = arith.addf %263, %1 : vector<16x16xf32>
    %cst_117 = arith.constant dense<0xFF800000> : vector<16xf32>
    %265 = vector.multi_reduction <maximumf>, %264, %cst_117 [1] : vector<16x16xf32> to vector<16xf32>
    %266 = vector.shape_cast %265 : vector<16xf32> to vector<16x1xf32>
    %267 = vector.broadcast %266 : vector<16x1xf32> to vector<16x16xf32>
    %268 = arith.subf %264, %267 : vector<16x16xf32>
    %269 = math.exp %268 : vector<16x16xf32>
    %cst_118 = arith.constant dense<0.000000e+00> : vector<16xf32>
    %270 = vector.multi_reduction <add>, %269, %cst_118 [1] : vector<16x16xf32> to vector<16xf32>
    %271 = vector.shape_cast %270 : vector<16xf32> to vector<16x1xf32>
    %272 = tpu.reciprocal %271 {approx = true} : vector<16x1xf32> -> vector<16x1xf32>
    %273 = vector.broadcast %272 : vector<16x1xf32> to vector<16x16xf32>
    %274 = arith.mulf %269, %273 : vector<16x16xf32>
    %cst_119 = arith.constant dense<0.000000e+00> : vector<16x8xf32>
    %275 = tpu.matmul %274, %259, %cst_119 {dimension_numbers = #tpu.dot_dimension_numbers<[1], [0], [0], [1], [0, 0, 1, 1], [], []>} : vector<16x16xf32>, vector<16x8xf32>, vector<16x8xf32> -> vector<16x8xf32>
    %276 = tpu.concatenate %218, %237, %256, %275 in 1 : vector<16x8xf32>, vector<16x8xf32>, vector<16x8xf32>, vector<16x8xf32> -> vector<16x32xf32>
    %c1_120 = arith.constant 1 : index
    %c0_121 = arith.constant 0 : index
    %c0_122 = arith.constant 0 : index
    %277 = vector.load %arg8[%c1_120, %c0_121, %c0_122] : memref<3x32x32xf32, #tpu.memory_space<vmem>>, vector<1x32x32xf32>
    %278 = vector.shape_cast %277 : vector<1x32x32xf32> to vector<32x32xf32>
    %cst_123 = arith.constant dense<0.000000e+00> : vector<16x32xf32>
    %279 = tpu.matmul %276, %278, %cst_123 {dimension_numbers = #tpu.dot_dimension_numbers<[1], [0], [0], [1], [0, 0, 1, 1], [], []>} : vector<16x32xf32>, vector<32x32xf32>, vector<16x32xf32> -> vector<16x32xf32>
    %c1_124 = arith.constant 1 : index
    %c0_125 = arith.constant 0 : index
    %c0_126 = arith.constant 0 : index
    %280 = vector.load %arg9[%c1_124, %c0_125, %c0_126] : memref<3x1x32xf32, #tpu.memory_space<vmem>>, vector<1x1x32xf32>
    %281 = vector.shape_cast %280 : vector<1x1x32xf32> to vector<1x32xf32>
    %282 = vector.broadcast %281 : vector<1x32xf32> to vector<16x32xf32>
    %283 = arith.addf %279, %282 : vector<16x32xf32>
    %284 = arith.addf %164, %283 : vector<16x32xf32>
    %c1_127 = arith.constant 1 : index
    %c0_128 = arith.constant 0 : index
    %c0_129 = arith.constant 0 : index
    %285 = vector.load %arg10[%c1_127, %c0_128, %c0_129] : memref<3x1x32xf32, #tpu.memory_space<vmem>>, vector<1x1x32xf32>
    %286 = vector.shape_cast %285 : vector<1x1x32xf32> to vector<1x32xf32>
    %c1_130 = arith.constant 1 : index
    %c0_131 = arith.constant 0 : index
    %c0_132 = arith.constant 0 : index
    %287 = vector.load %arg11[%c1_130, %c0_131, %c0_132] : memref<3x1x32xf32, #tpu.memory_space<vmem>>, vector<1x1x32xf32>
    %288 = vector.shape_cast %287 : vector<1x1x32xf32> to vector<1x32xf32>
    %cst_133 = arith.constant dense<0.000000e+00> : vector<16xf32>
    %289 = vector.multi_reduction <add>, %284, %cst_133 [1] : vector<16x32xf32> to vector<16xf32>
    %290 = vector.shape_cast %289 : vector<16xf32> to vector<16x1xf32>
    %cst_134 = arith.constant 3.200000e+01 : f32
    %291 = vector.broadcast %cst_134 : f32 to vector<16x1xf32>
    %292 = arith.divf %290, %291 : vector<16x1xf32>
    %293 = vector.broadcast %292 : vector<16x1xf32> to vector<16x32xf32>
    %294 = arith.subf %284, %293 : vector<16x32xf32>
    %295 = arith.mulf %294, %294 : vector<16x32xf32>
    %cst_135 = arith.constant dense<0.000000e+00> : vector<16xf32>
    %296 = vector.multi_reduction <add>, %295, %cst_135 [1] : vector<16x32xf32> to vector<16xf32>
    %297 = vector.shape_cast %296 : vector<16xf32> to vector<16x1xf32>
    %cst_136 = arith.constant 3.200000e+01 : f32
    %298 = vector.broadcast %cst_136 : f32 to vector<16x1xf32>
    %299 = arith.divf %297, %298 : vector<16x1xf32>
    %300 = vector.broadcast %292 : vector<16x1xf32> to vector<16x32xf32>
    %301 = arith.subf %284, %300 : vector<16x32xf32>
    %cst_137 = arith.constant 9.99999974E-6 : f32
    %302 = vector.broadcast %cst_137 : f32 to vector<16x1xf32>
    %303 = arith.addf %299, %302 : vector<16x1xf32>
    %304 = math.rsqrt %303 : vector<16x1xf32>
    %305 = vector.broadcast %304 : vector<16x1xf32> to vector<16x32xf32>
    %306 = arith.mulf %301, %305 : vector<16x32xf32>
    %307 = vector.broadcast %286 : vector<1x32xf32> to vector<16x32xf32>
    %308 = arith.mulf %306, %307 : vector<16x32xf32>
    %309 = vector.broadcast %288 : vector<1x32xf32> to vector<16x32xf32>
    %310 = arith.addf %308, %309 : vector<16x32xf32>
    %c1_138 = arith.constant 1 : index
    %c0_139 = arith.constant 0 : index
    %c0_140 = arith.constant 0 : index
    %311 = vector.load %arg12[%c1_138, %c0_139, %c0_140] : memref<3x32x32xf32, #tpu.memory_space<vmem>>, vector<1x32x32xf32>
    %312 = vector.shape_cast %311 : vector<1x32x32xf32> to vector<32x32xf32>
    %cst_141 = arith.constant dense<0.000000e+00> : vector<16x32xf32>
    %313 = tpu.matmul %310, %312, %cst_141 {dimension_numbers = #tpu.dot_dimension_numbers<[1], [0], [0], [1], [0, 0, 1, 1], [], []>} : vector<16x32xf32>, vector<32x32xf32>, vector<16x32xf32> -> vector<16x32xf32>
    %c1_142 = arith.constant 1 : index
    %c0_143 = arith.constant 0 : index
    %c0_144 = arith.constant 0 : index
    %314 = vector.load %arg13[%c1_142, %c0_143, %c0_144] : memref<3x1x32xf32, #tpu.memory_space<vmem>>, vector<1x1x32xf32>
    %315 = vector.shape_cast %314 : vector<1x1x32xf32> to vector<1x32xf32>
    %316 = vector.broadcast %315 : vector<1x32xf32> to vector<16x32xf32>
    %317 = arith.addf %313, %316 : vector<16x32xf32>
    %cst_145 = arith.constant 0.000000e+00 : f32
    %318 = vector.broadcast %cst_145 : f32 to vector<16x32xf32>
    %319 = arith.maximumf %317, %318 : vector<16x32xf32>
    %c1_146 = arith.constant 1 : index
    %c0_147 = arith.constant 0 : index
    %c0_148 = arith.constant 0 : index
    %320 = vector.load %arg14[%c1_146, %c0_147, %c0_148] : memref<3x32x32xf32, #tpu.memory_space<vmem>>, vector<1x32x32xf32>
    %321 = vector.shape_cast %320 : vector<1x32x32xf32> to vector<32x32xf32>
    %cst_149 = arith.constant dense<0.000000e+00> : vector<16x32xf32>
    %322 = tpu.matmul %319, %321, %cst_149 {dimension_numbers = #tpu.dot_dimension_numbers<[1], [0], [0], [1], [0, 0, 1, 1], [], []>} : vector<16x32xf32>, vector<32x32xf32>, vector<16x32xf32> -> vector<16x32xf32>
    %c1_150 = arith.constant 1 : index
    %c0_151 = arith.constant 0 : index
    %c0_152 = arith.constant 0 : index
    %323 = vector.load %arg15[%c1_150, %c0_151, %c0_152] : memref<3x1x32xf32, #tpu.memory_space<vmem>>, vector<1x1x32xf32>
    %324 = vector.shape_cast %323 : vector<1x1x32xf32> to vector<1x32xf32>
    %325 = vector.broadcast %324 : vector<1x32xf32> to vector<16x32xf32>
    %326 = arith.addf %322, %325 : vector<16x32xf32>
    %327 = arith.addf %284, %326 : vector<16x32xf32>
    %c2 = arith.constant 2 : index
    %c0_153 = arith.constant 0 : index
    %c0_154 = arith.constant 0 : index
    %328 = vector.load %arg3[%c2, %c0_153, %c0_154] : memref<3x1x32xf32, #tpu.memory_space<vmem>>, vector<1x1x32xf32>
    %329 = vector.shape_cast %328 : vector<1x1x32xf32> to vector<1x32xf32>
    %c2_155 = arith.constant 2 : index
    %c0_156 = arith.constant 0 : index
    %c0_157 = arith.constant 0 : index
    %330 = vector.load %arg4[%c2_155, %c0_156, %c0_157] : memref<3x1x32xf32, #tpu.memory_space<vmem>>, vector<1x1x32xf32>
    %331 = vector.shape_cast %330 : vector<1x1x32xf32> to vector<1x32xf32>
    %cst_158 = arith.constant dense<0.000000e+00> : vector<16xf32>
    %332 = vector.multi_reduction <add>, %327, %cst_158 [1] : vector<16x32xf32> to vector<16xf32>
    %333 = vector.shape_cast %332 : vector<16xf32> to vector<16x1xf32>
    %cst_159 = arith.constant 3.200000e+01 : f32
    %334 = vector.broadcast %cst_159 : f32 to vector<16x1xf32>
    %335 = arith.divf %333, %334 : vector<16x1xf32>
    %336 = vector.broadcast %335 : vector<16x1xf32> to vector<16x32xf32>
    %337 = arith.subf %327, %336 : vector<16x32xf32>
    %338 = arith.mulf %337, %337 : vector<16x32xf32>
    %cst_160 = arith.constant dense<0.000000e+00> : vector<16xf32>
    %339 = vector.multi_reduction <add>, %338, %cst_160 [1] : vector<16x32xf32> to vector<16xf32>
    %340 = vector.shape_cast %339 : vector<16xf32> to vector<16x1xf32>
    %cst_161 = arith.constant 3.200000e+01 : f32
    %341 = vector.broadcast %cst_161 : f32 to vector<16x1xf32>
    %342 = arith.divf %340, %341 : vector<16x1xf32>
    %343 = vector.broadcast %335 : vector<16x1xf32> to vector<16x32xf32>
    %344 = arith.subf %327, %343 : vector<16x32xf32>
    %cst_162 = arith.constant 9.99999974E-6 : f32
    %345 = vector.broadcast %cst_162 : f32 to vector<16x1xf32>
    %346 = arith.addf %342, %345 : vector<16x1xf32>
    %347 = math.rsqrt %346 : vector<16x1xf32>
    %348 = vector.broadcast %347 : vector<16x1xf32> to vector<16x32xf32>
    %349 = arith.mulf %344, %348 : vector<16x32xf32>
    %350 = vector.broadcast %329 : vector<1x32xf32> to vector<16x32xf32>
    %351 = arith.mulf %349, %350 : vector<16x32xf32>
    %352 = vector.broadcast %331 : vector<1x32xf32> to vector<16x32xf32>
    %353 = arith.addf %351, %352 : vector<16x32xf32>
    %c2_163 = arith.constant 2 : index
    %c0_164 = arith.constant 0 : index
    %c0_165 = arith.constant 0 : index
    %354 = vector.load %arg5[%c2_163, %c0_164, %c0_165] : memref<3x32x32xf32, #tpu.memory_space<vmem>>, vector<1x32x32xf32>
    %355 = vector.shape_cast %354 : vector<1x32x32xf32> to vector<32x32xf32>
    %cst_166 = arith.constant dense<0.000000e+00> : vector<16x32xf32>
    %356 = tpu.matmul %353, %355, %cst_166 {dimension_numbers = #tpu.dot_dimension_numbers<[1], [0], [0], [1], [0, 0, 1, 1], [], []>} : vector<16x32xf32>, vector<32x32xf32>, vector<16x32xf32> -> vector<16x32xf32>
    %c2_167 = arith.constant 2 : index
    %c0_168 = arith.constant 0 : index
    %c0_169 = arith.constant 0 : index
    %357 = vector.load %arg6[%c2_167, %c0_168, %c0_169] : memref<3x32x32xf32, #tpu.memory_space<vmem>>, vector<1x32x32xf32>
    %358 = vector.shape_cast %357 : vector<1x32x32xf32> to vector<32x32xf32>
    %cst_170 = arith.constant dense<0.000000e+00> : vector<16x32xf32>
    %359 = tpu.matmul %353, %358, %cst_170 {dimension_numbers = #tpu.dot_dimension_numbers<[1], [0], [0], [1], [0, 0, 1, 1], [], []>} : vector<16x32xf32>, vector<32x32xf32>, vector<16x32xf32> -> vector<16x32xf32>
    %c2_171 = arith.constant 2 : index
    %c0_172 = arith.constant 0 : index
    %c0_173 = arith.constant 0 : index
    %360 = vector.load %arg7[%c2_171, %c0_172, %c0_173] : memref<3x32x32xf32, #tpu.memory_space<vmem>>, vector<1x32x32xf32>
    %361 = vector.shape_cast %360 : vector<1x32x32xf32> to vector<32x32xf32>
    %cst_174 = arith.constant dense<0.000000e+00> : vector<16x32xf32>
    %362 = tpu.matmul %353, %361, %cst_174 {dimension_numbers = #tpu.dot_dimension_numbers<[1], [0], [0], [1], [0, 0, 1, 1], [], []>} : vector<16x32xf32>, vector<32x32xf32>, vector<16x32xf32> -> vector<16x32xf32>
    %363 = vector.extract_strided_slice %359 {offsets = [0, 0], sizes = [16, 8], strides = [1, 1]} : vector<16x32xf32> to vector<16x8xf32>
    %364 = vector.extract_strided_slice %356 {offsets = [0, 0], sizes = [16, 8], strides = [1, 1]} : vector<16x32xf32> to vector<16x8xf32>
    %365 = vector.extract_strided_slice %362 {offsets = [0, 0], sizes = [16, 8], strides = [1, 1]} : vector<16x32xf32> to vector<16x8xf32>
    %366 = tpu.transpose %364, [1, 0] : vector<16x8xf32> -> vector<8x16xf32>
    %cst_175 = arith.constant dense<0.000000e+00> : vector<16x16xf32>
    %367 = tpu.matmul %363, %366, %cst_175 {dimension_numbers = #tpu.dot_dimension_numbers<[1], [0], [0], [1], [0, 0, 1, 1], [], []>} : vector<16x8xf32>, vector<8x16xf32>, vector<16x16xf32> -> vector<16x16xf32>
    %cst_176 = arith.constant 0.176776692 : f32
    %368 = vector.broadcast %cst_176 : f32 to vector<16x16xf32>
    %369 = arith.mulf %367, %368 : vector<16x16xf32>
    %370 = arith.addf %369, %1 : vector<16x16xf32>
    %cst_177 = arith.constant dense<0xFF800000> : vector<16xf32>
    %371 = vector.multi_reduction <maximumf>, %370, %cst_177 [1] : vector<16x16xf32> to vector<16xf32>
    %372 = vector.shape_cast %371 : vector<16xf32> to vector<16x1xf32>
    %373 = vector.broadcast %372 : vector<16x1xf32> to vector<16x16xf32>
    %374 = arith.subf %370, %373 : vector<16x16xf32>
    %375 = math.exp %374 : vector<16x16xf32>
    %cst_178 = arith.constant dense<0.000000e+00> : vector<16xf32>
    %376 = vector.multi_reduction <add>, %375, %cst_178 [1] : vector<16x16xf32> to vector<16xf32>
    %377 = vector.shape_cast %376 : vector<16xf32> to vector<16x1xf32>
    %378 = tpu.reciprocal %377 {approx = true} : vector<16x1xf32> -> vector<16x1xf32>
    %379 = vector.broadcast %378 : vector<16x1xf32> to vector<16x16xf32>
    %380 = arith.mulf %375, %379 : vector<16x16xf32>
    %cst_179 = arith.constant dense<0.000000e+00> : vector<16x8xf32>
    %381 = tpu.matmul %380, %365, %cst_179 {dimension_numbers = #tpu.dot_dimension_numbers<[1], [0], [0], [1], [0, 0, 1, 1], [], []>} : vector<16x16xf32>, vector<16x8xf32>, vector<16x8xf32> -> vector<16x8xf32>
    %382 = vector.extract_strided_slice %359 {offsets = [0, 8], sizes = [16, 8], strides = [1, 1]} : vector<16x32xf32> to vector<16x8xf32>
    %383 = vector.extract_strided_slice %356 {offsets = [0, 8], sizes = [16, 8], strides = [1, 1]} : vector<16x32xf32> to vector<16x8xf32>
    %384 = vector.extract_strided_slice %362 {offsets = [0, 8], sizes = [16, 8], strides = [1, 1]} : vector<16x32xf32> to vector<16x8xf32>
    %385 = tpu.transpose %383, [1, 0] : vector<16x8xf32> -> vector<8x16xf32>
    %cst_180 = arith.constant dense<0.000000e+00> : vector<16x16xf32>
    %386 = tpu.matmul %382, %385, %cst_180 {dimension_numbers = #tpu.dot_dimension_numbers<[1], [0], [0], [1], [0, 0, 1, 1], [], []>} : vector<16x8xf32>, vector<8x16xf32>, vector<16x16xf32> -> vector<16x16xf32>
    %cst_181 = arith.constant 0.176776692 : f32
    %387 = vector.broadcast %cst_181 : f32 to vector<16x16xf32>
    %388 = arith.mulf %386, %387 : vector<16x16xf32>
    %389 = arith.addf %388, %1 : vector<16x16xf32>
    %cst_182 = arith.constant dense<0xFF800000> : vector<16xf32>
    %390 = vector.multi_reduction <maximumf>, %389, %cst_182 [1] : vector<16x16xf32> to vector<16xf32>
    %391 = vector.shape_cast %390 : vector<16xf32> to vector<16x1xf32>
    %392 = vector.broadcast %391 : vector<16x1xf32> to vector<16x16xf32>
    %393 = arith.subf %389, %392 : vector<16x16xf32>
    %394 = math.exp %393 : vector<16x16xf32>
    %cst_183 = arith.constant dense<0.000000e+00> : vector<16xf32>
    %395 = vector.multi_reduction <add>, %394, %cst_183 [1] : vector<16x16xf32> to vector<16xf32>
    %396 = vector.shape_cast %395 : vector<16xf32> to vector<16x1xf32>
    %397 = tpu.reciprocal %396 {approx = true} : vector<16x1xf32> -> vector<16x1xf32>
    %398 = vector.broadcast %397 : vector<16x1xf32> to vector<16x16xf32>
    %399 = arith.mulf %394, %398 : vector<16x16xf32>
    %cst_184 = arith.constant dense<0.000000e+00> : vector<16x8xf32>
    %400 = tpu.matmul %399, %384, %cst_184 {dimension_numbers = #tpu.dot_dimension_numbers<[1], [0], [0], [1], [0, 0, 1, 1], [], []>} : vector<16x16xf32>, vector<16x8xf32>, vector<16x8xf32> -> vector<16x8xf32>
    %401 = vector.extract_strided_slice %359 {offsets = [0, 16], sizes = [16, 8], strides = [1, 1]} : vector<16x32xf32> to vector<16x8xf32>
    %402 = vector.extract_strided_slice %356 {offsets = [0, 16], sizes = [16, 8], strides = [1, 1]} : vector<16x32xf32> to vector<16x8xf32>
    %403 = vector.extract_strided_slice %362 {offsets = [0, 16], sizes = [16, 8], strides = [1, 1]} : vector<16x32xf32> to vector<16x8xf32>
    %404 = tpu.transpose %402, [1, 0] : vector<16x8xf32> -> vector<8x16xf32>
    %cst_185 = arith.constant dense<0.000000e+00> : vector<16x16xf32>
    %405 = tpu.matmul %401, %404, %cst_185 {dimension_numbers = #tpu.dot_dimension_numbers<[1], [0], [0], [1], [0, 0, 1, 1], [], []>} : vector<16x8xf32>, vector<8x16xf32>, vector<16x16xf32> -> vector<16x16xf32>
    %cst_186 = arith.constant 0.176776692 : f32
    %406 = vector.broadcast %cst_186 : f32 to vector<16x16xf32>
    %407 = arith.mulf %405, %406 : vector<16x16xf32>
    %408 = arith.addf %407, %1 : vector<16x16xf32>
    %cst_187 = arith.constant dense<0xFF800000> : vector<16xf32>
    %409 = vector.multi_reduction <maximumf>, %408, %cst_187 [1] : vector<16x16xf32> to vector<16xf32>
    %410 = vector.shape_cast %409 : vector<16xf32> to vector<16x1xf32>
    %411 = vector.broadcast %410 : vector<16x1xf32> to vector<16x16xf32>
    %412 = arith.subf %408, %411 : vector<16x16xf32>
    %413 = math.exp %412 : vector<16x16xf32>
    %cst_188 = arith.constant dense<0.000000e+00> : vector<16xf32>
    %414 = vector.multi_reduction <add>, %413, %cst_188 [1] : vector<16x16xf32> to vector<16xf32>
    %415 = vector.shape_cast %414 : vector<16xf32> to vector<16x1xf32>
    %416 = tpu.reciprocal %415 {approx = true} : vector<16x1xf32> -> vector<16x1xf32>
    %417 = vector.broadcast %416 : vector<16x1xf32> to vector<16x16xf32>
    %418 = arith.mulf %413, %417 : vector<16x16xf32>
    %cst_189 = arith.constant dense<0.000000e+00> : vector<16x8xf32>
    %419 = tpu.matmul %418, %403, %cst_189 {dimension_numbers = #tpu.dot_dimension_numbers<[1], [0], [0], [1], [0, 0, 1, 1], [], []>} : vector<16x16xf32>, vector<16x8xf32>, vector<16x8xf32> -> vector<16x8xf32>
    %420 = vector.extract_strided_slice %359 {offsets = [0, 24], sizes = [16, 8], strides = [1, 1]} : vector<16x32xf32> to vector<16x8xf32>
    %421 = vector.extract_strided_slice %356 {offsets = [0, 24], sizes = [16, 8], strides = [1, 1]} : vector<16x32xf32> to vector<16x8xf32>
    %422 = vector.extract_strided_slice %362 {offsets = [0, 24], sizes = [16, 8], strides = [1, 1]} : vector<16x32xf32> to vector<16x8xf32>
    %423 = tpu.transpose %421, [1, 0] : vector<16x8xf32> -> vector<8x16xf32>
    %cst_190 = arith.constant dense<0.000000e+00> : vector<16x16xf32>
    %424 = tpu.matmul %420, %423, %cst_190 {dimension_numbers = #tpu.dot_dimension_numbers<[1], [0], [0], [1], [0, 0, 1, 1], [], []>} : vector<16x8xf32>, vector<8x16xf32>, vector<16x16xf32> -> vector<16x16xf32>
    %cst_191 = arith.constant 0.176776692 : f32
    %425 = vector.broadcast %cst_191 : f32 to vector<16x16xf32>
    %426 = arith.mulf %424, %425 : vector<16x16xf32>
    %427 = arith.addf %426, %1 : vector<16x16xf32>
    %cst_192 = arith.constant dense<0xFF800000> : vector<16xf32>
    %428 = vector.multi_reduction <maximumf>, %427, %cst_192 [1] : vector<16x16xf32> to vector<16xf32>
    %429 = vector.shape_cast %428 : vector<16xf32> to vector<16x1xf32>
    %430 = vector.broadcast %429 : vector<16x1xf32> to vector<16x16xf32>
    %431 = arith.subf %427, %430 : vector<16x16xf32>
    %432 = math.exp %431 : vector<16x16xf32>
    %cst_193 = arith.constant dense<0.000000e+00> : vector<16xf32>
    %433 = vector.multi_reduction <add>, %432, %cst_193 [1] : vector<16x16xf32> to vector<16xf32>
    %434 = vector.shape_cast %433 : vector<16xf32> to vector<16x1xf32>
    %435 = tpu.reciprocal %434 {approx = true} : vector<16x1xf32> -> vector<16x1xf32>
    %436 = vector.broadcast %435 : vector<16x1xf32> to vector<16x16xf32>
    %437 = arith.mulf %432, %436 : vector<16x16xf32>
    %cst_194 = arith.constant dense<0.000000e+00> : vector<16x8xf32>
    %438 = tpu.matmul %437, %422, %cst_194 {dimension_numbers = #tpu.dot_dimension_numbers<[1], [0], [0], [1], [0, 0, 1, 1], [], []>} : vector<16x16xf32>, vector<16x8xf32>, vector<16x8xf32> -> vector<16x8xf32>
    %439 = tpu.concatenate %381, %400, %419, %438 in 1 : vector<16x8xf32>, vector<16x8xf32>, vector<16x8xf32>, vector<16x8xf32> -> vector<16x32xf32>
    %c2_195 = arith.constant 2 : index
    %c0_196 = arith.constant 0 : index
    %c0_197 = arith.constant 0 : index
    %440 = vector.load %arg8[%c2_195, %c0_196, %c0_197] : memref<3x32x32xf32, #tpu.memory_space<vmem>>, vector<1x32x32xf32>
    %441 = vector.shape_cast %440 : vector<1x32x32xf32> to vector<32x32xf32>
    %cst_198 = arith.constant dense<0.000000e+00> : vector<16x32xf32>
    %442 = tpu.matmul %439, %441, %cst_198 {dimension_numbers = #tpu.dot_dimension_numbers<[1], [0], [0], [1], [0, 0, 1, 1], [], []>} : vector<16x32xf32>, vector<32x32xf32>, vector<16x32xf32> -> vector<16x32xf32>
    %c2_199 = arith.constant 2 : index
    %c0_200 = arith.constant 0 : index
    %c0_201 = arith.constant 0 : index
    %443 = vector.load %arg9[%c2_199, %c0_200, %c0_201] : memref<3x1x32xf32, #tpu.memory_space<vmem>>, vector<1x1x32xf32>
    %444 = vector.shape_cast %443 : vector<1x1x32xf32> to vector<1x32xf32>
    %445 = vector.broadcast %444 : vector<1x32xf32> to vector<16x32xf32>
    %446 = arith.addf %442, %445 : vector<16x32xf32>
    %447 = arith.addf %327, %446 : vector<16x32xf32>
    %c2_202 = arith.constant 2 : index
    %c0_203 = arith.constant 0 : index
    %c0_204 = arith.constant 0 : index
    %448 = vector.load %arg10[%c2_202, %c0_203, %c0_204] : memref<3x1x32xf32, #tpu.memory_space<vmem>>, vector<1x1x32xf32>
    %449 = vector.shape_cast %448 : vector<1x1x32xf32> to vector<1x32xf32>
    %c2_205 = arith.constant 2 : index
    %c0_206 = arith.constant 0 : index
    %c0_207 = arith.constant 0 : index
    %450 = vector.load %arg11[%c2_205, %c0_206, %c0_207] : memref<3x1x32xf32, #tpu.memory_space<vmem>>, vector<1x1x32xf32>
    %451 = vector.shape_cast %450 : vector<1x1x32xf32> to vector<1x32xf32>
    %cst_208 = arith.constant dense<0.000000e+00> : vector<16xf32>
    %452 = vector.multi_reduction <add>, %447, %cst_208 [1] : vector<16x32xf32> to vector<16xf32>
    %453 = vector.shape_cast %452 : vector<16xf32> to vector<16x1xf32>
    %cst_209 = arith.constant 3.200000e+01 : f32
    %454 = vector.broadcast %cst_209 : f32 to vector<16x1xf32>
    %455 = arith.divf %453, %454 : vector<16x1xf32>
    %456 = vector.broadcast %455 : vector<16x1xf32> to vector<16x32xf32>
    %457 = arith.subf %447, %456 : vector<16x32xf32>
    %458 = arith.mulf %457, %457 : vector<16x32xf32>
    %cst_210 = arith.constant dense<0.000000e+00> : vector<16xf32>
    %459 = vector.multi_reduction <add>, %458, %cst_210 [1] : vector<16x32xf32> to vector<16xf32>
    %460 = vector.shape_cast %459 : vector<16xf32> to vector<16x1xf32>
    %cst_211 = arith.constant 3.200000e+01 : f32
    %461 = vector.broadcast %cst_211 : f32 to vector<16x1xf32>
    %462 = arith.divf %460, %461 : vector<16x1xf32>
    %463 = vector.broadcast %455 : vector<16x1xf32> to vector<16x32xf32>
    %464 = arith.subf %447, %463 : vector<16x32xf32>
    %cst_212 = arith.constant 9.99999974E-6 : f32
    %465 = vector.broadcast %cst_212 : f32 to vector<16x1xf32>
    %466 = arith.addf %462, %465 : vector<16x1xf32>
    %467 = math.rsqrt %466 : vector<16x1xf32>
    %468 = vector.broadcast %467 : vector<16x1xf32> to vector<16x32xf32>
    %469 = arith.mulf %464, %468 : vector<16x32xf32>
    %470 = vector.broadcast %449 : vector<1x32xf32> to vector<16x32xf32>
    %471 = arith.mulf %469, %470 : vector<16x32xf32>
    %472 = vector.broadcast %451 : vector<1x32xf32> to vector<16x32xf32>
    %473 = arith.addf %471, %472 : vector<16x32xf32>
    %c2_213 = arith.constant 2 : index
    %c0_214 = arith.constant 0 : index
    %c0_215 = arith.constant 0 : index
    %474 = vector.load %arg12[%c2_213, %c0_214, %c0_215] : memref<3x32x32xf32, #tpu.memory_space<vmem>>, vector<1x32x32xf32>
    %475 = vector.shape_cast %474 : vector<1x32x32xf32> to vector<32x32xf32>
    %cst_216 = arith.constant dense<0.000000e+00> : vector<16x32xf32>
    %476 = tpu.matmul %473, %475, %cst_216 {dimension_numbers = #tpu.dot_dimension_numbers<[1], [0], [0], [1], [0, 0, 1, 1], [], []>} : vector<16x32xf32>, vector<32x32xf32>, vector<16x32xf32> -> vector<16x32xf32>
    %c2_217 = arith.constant 2 : index
    %c0_218 = arith.constant 0 : index
    %c0_219 = arith.constant 0 : index
    %477 = vector.load %arg13[%c2_217, %c0_218, %c0_219] : memref<3x1x32xf32, #tpu.memory_space<vmem>>, vector<1x1x32xf32>
    %478 = vector.shape_cast %477 : vector<1x1x32xf32> to vector<1x32xf32>
    %479 = vector.broadcast %478 : vector<1x32xf32> to vector<16x32xf32>
    %480 = arith.addf %476, %479 : vector<16x32xf32>
    %cst_220 = arith.constant 0.000000e+00 : f32
    %481 = vector.broadcast %cst_220 : f32 to vector<16x32xf32>
    %482 = arith.maximumf %480, %481 : vector<16x32xf32>
    %c2_221 = arith.constant 2 : index
    %c0_222 = arith.constant 0 : index
    %c0_223 = arith.constant 0 : index
    %483 = vector.load %arg14[%c2_221, %c0_222, %c0_223] : memref<3x32x32xf32, #tpu.memory_space<vmem>>, vector<1x32x32xf32>
    %484 = vector.shape_cast %483 : vector<1x32x32xf32> to vector<32x32xf32>
    %cst_224 = arith.constant dense<0.000000e+00> : vector<16x32xf32>
    %485 = tpu.matmul %482, %484, %cst_224 {dimension_numbers = #tpu.dot_dimension_numbers<[1], [0], [0], [1], [0, 0, 1, 1], [], []>} : vector<16x32xf32>, vector<32x32xf32>, vector<16x32xf32> -> vector<16x32xf32>
    %c2_225 = arith.constant 2 : index
    %c0_226 = arith.constant 0 : index
    %c0_227 = arith.constant 0 : index
    %486 = vector.load %arg15[%c2_225, %c0_226, %c0_227] : memref<3x1x32xf32, #tpu.memory_space<vmem>>, vector<1x1x32xf32>
    %487 = vector.shape_cast %486 : vector<1x1x32xf32> to vector<1x32xf32>
    %488 = vector.broadcast %487 : vector<1x32xf32> to vector<16x32xf32>
    %489 = arith.addf %485, %488 : vector<16x32xf32>
    %490 = arith.addf %447, %489 : vector<16x32xf32>
    %c0_228 = arith.constant 0 : index
    %c0_229 = arith.constant 0 : index
    %491 = vector.load %arg16[%c0_228, %c0_229] : memref<1x32xf32, #tpu.memory_space<vmem>>, vector<1x32xf32>
    %c0_230 = arith.constant 0 : index
    %c0_231 = arith.constant 0 : index
    %492 = vector.load %arg17[%c0_230, %c0_231] : memref<1x32xf32, #tpu.memory_space<vmem>>, vector<1x32xf32>
    %cst_232 = arith.constant dense<0.000000e+00> : vector<16xf32>
    %493 = vector.multi_reduction <add>, %490, %cst_232 [1] : vector<16x32xf32> to vector<16xf32>
    %494 = vector.shape_cast %493 : vector<16xf32> to vector<16x1xf32>
    %cst_233 = arith.constant 3.200000e+01 : f32
    %495 = vector.broadcast %cst_233 : f32 to vector<16x1xf32>
    %496 = arith.divf %494, %495 : vector<16x1xf32>
    %497 = vector.broadcast %496 : vector<16x1xf32> to vector<16x32xf32>
    %498 = arith.subf %490, %497 : vector<16x32xf32>
    %499 = arith.mulf %498, %498 : vector<16x32xf32>
    %cst_234 = arith.constant dense<0.000000e+00> : vector<16xf32>
    %500 = vector.multi_reduction <add>, %499, %cst_234 [1] : vector<16x32xf32> to vector<16xf32>
    %501 = vector.shape_cast %500 : vector<16xf32> to vector<16x1xf32>
    %cst_235 = arith.constant 3.200000e+01 : f32
    %502 = vector.broadcast %cst_235 : f32 to vector<16x1xf32>
    %503 = arith.divf %501, %502 : vector<16x1xf32>
    %504 = vector.broadcast %496 : vector<16x1xf32> to vector<16x32xf32>
    %505 = arith.subf %490, %504 : vector<16x32xf32>
    %cst_236 = arith.constant 9.99999974E-6 : f32
    %506 = vector.broadcast %cst_236 : f32 to vector<16x1xf32>
    %507 = arith.addf %503, %506 : vector<16x1xf32>
    %508 = math.rsqrt %507 : vector<16x1xf32>
    %509 = vector.broadcast %508 : vector<16x1xf32> to vector<16x32xf32>
    %510 = arith.mulf %505, %509 : vector<16x32xf32>
    %511 = vector.broadcast %491 : vector<1x32xf32> to vector<16x32xf32>
    %512 = arith.mulf %510, %511 : vector<16x32xf32>
    %513 = vector.broadcast %492 : vector<1x32xf32> to vector<16x32xf32>
    %514 = arith.addf %512, %513 : vector<16x32xf32>
    %c0_237 = arith.constant 0 : index
    %c0_238 = arith.constant 0 : index
    %515 = vector.load %arg18[%c0_237, %c0_238] : memref<32x128xf32, #tpu.memory_space<vmem>>, vector<32x128xf32>
    %cst_239 = arith.constant dense<0.000000e+00> : vector<16x128xf32>
    %516 = tpu.matmul %514, %515, %cst_239 {dimension_numbers = #tpu.dot_dimension_numbers<[1], [0], [0], [1], [0, 0, 1, 1], [], []>} : vector<16x32xf32>, vector<32x128xf32>, vector<16x128xf32> -> vector<16x128xf32>
    %c0_240 = arith.constant 0 : index
    %c0_241 = arith.constant 0 : index
    %517 = vector.load %arg19[%c0_240, %c0_241] : memref<1x128xf32, #tpu.memory_space<vmem>>, vector<1x128xf32>
    %518 = vector.broadcast %517 : vector<1x128xf32> to vector<16x128xf32>
    %519 = arith.addf %516, %518 : vector<16x128xf32>
    %c0_242 = arith.constant 0 : index
    %c0_243 = arith.constant 0 : index
    %520 = vector.load %arg20[%c0_242, %c0_243] : memref<16x128xf32, #tpu.memory_space<vmem>>, vector<16x128xf32>
    tpu.vector_store %arg20[%c0_242, %c0_243], %519 {strides = array<i32>} : memref<16x128xf32, #tpu.memory_space<vmem>>, vector<16x128xf32>,
    return
  }
  func.func @transform_0(%arg0: i32) -> (i32, i32) {
    %c0_i32 = arith.constant 0 : i32
    %c0_i32_0 = arith.constant 0 : i32
    %c0_i32_1 = arith.constant 0 : i32
    return %c0_i32, %c0_i32_0 : i32, i32
  }
  func.func @transform_1(%arg0: i32) -> (i32, i32) {
    %c0_i32 = arith.constant 0 : i32
    %c0_i32_0 = arith.constant 0 : i32
    %c0_i32_1 = arith.constant 0 : i32
    return %c0_i32, %c0_i32_0 : i32, i32
  }
  func.func @transform_2(%arg0: i32) -> (i32, i32, i32) {
    %c0_i32 = arith.constant 0 : i32
    %c0_i32_0 = arith.constant 0 : i32
    %c0_i32_1 = arith.constant 0 : i32
    %c0_i32_2 = arith.constant 0 : i32
    return %c0_i32, %c0_i32_0, %c0_i32_1 : i32, i32, i32
  }
  func.func @transform_3(%arg0: i32) -> (i32, i32, i32) {
    %c0_i32 = arith.constant 0 : i32
    %c0_i32_0 = arith.constant 0 : i32
    %c0_i32_1 = arith.constant 0 : i32
    %c0_i32_2 = arith.constant 0 : i32
    return %c0_i32, %c0_i32_0, %c0_i32_1 : i32, i32, i32
  }
  func.func @transform_4(%arg0: i32) -> (i32, i32, i32) {
    %c0_i32 = arith.constant 0 : i32
    %c0_i32_0 = arith.constant 0 : i32
    %c0_i32_1 = arith.constant 0 : i32
    %c0_i32_2 = arith.constant 0 : i32
    return %c0_i32, %c0_i32_0, %c0_i32_1 : i32, i32, i32
  }
  func.func @transform_5(%arg0: i32) -> (i32, i32, i32) {
    %c0_i32 = arith.constant 0 : i32
    %c0_i32_0 = arith.constant 0 : i32
    %c0_i32_1 = arith.constant 0 : i32
    %c0_i32_2 = arith.constant 0 : i32
    return %c0_i32, %c0_i32_0, %c0_i32_1 : i32, i32, i32
  }
  func.func @transform_6(%arg0: i32) -> (i32, i32, i32) {
    %c0_i32 = arith.constant 0 : i32
    %c0_i32_0 = arith.constant 0 : i32
    %c0_i32_1 = arith.constant 0 : i32
    %c0_i32_2 = arith.constant 0 : i32
    return %c0_i32, %c0_i32_0, %c0_i32_1 : i32, i32, i32
  }
  func.func @transform_7(%arg0: i32) -> (i32, i32, i32) {
    %c0_i32 = arith.constant 0 : i32
    %c0_i32_0 = arith.constant 0 : i32
    %c0_i32_1 = arith.constant 0 : i32
    %c0_i32_2 = arith.constant 0 : i32
    return %c0_i32, %c0_i32_0, %c0_i32_1 : i32, i32, i32
  }
  func.func @transform_8(%arg0: i32) -> (i32, i32, i32) {
    %c0_i32 = arith.constant 0 : i32
    %c0_i32_0 = arith.constant 0 : i32
    %c0_i32_1 = arith.constant 0 : i32
    %c0_i32_2 = arith.constant 0 : i32
    return %c0_i32, %c0_i32_0, %c0_i32_1 : i32, i32, i32
  }
  func.func @transform_9(%arg0: i32) -> (i32, i32, i32) {
    %c0_i32 = arith.constant 0 : i32
    %c0_i32_0 = arith.constant 0 : i32
    %c0_i32_1 = arith.constant 0 : i32
    %c0_i32_2 = arith.constant 0 : i32
    return %c0_i32, %c0_i32_0, %c0_i32_1 : i32, i32, i32
  }
  func.func @transform_10(%arg0: i32) -> (i32, i32, i32) {
    %c0_i32 = arith.constant 0 : i32
    %c0_i32_0 = arith.constant 0 : i32
    %c0_i32_1 = arith.constant 0 : i32
    %c0_i32_2 = arith.constant 0 : i32
    return %c0_i32, %c0_i32_0, %c0_i32_1 : i32, i32, i32
  }
  func.func @transform_11(%arg0: i32) -> (i32, i32, i32) {
    %c0_i32 = arith.constant 0 : i32
    %c0_i32_0 = arith.constant 0 : i32
    %c0_i32_1 = arith.constant 0 : i32
    %c0_i32_2 = arith.constant 0 : i32
    return %c0_i32, %c0_i32_0, %c0_i32_1 : i32, i32, i32
  }
  func.func @transform_12(%arg0: i32) -> (i32, i32, i32) {
    %c0_i32 = arith.constant 0 : i32
    %c0_i32_0 = arith.constant 0 : i32
    %c0_i32_1 = arith.constant 0 : i32
    %c0_i32_2 = arith.constant 0 : i32
    return %c0_i32, %c0_i32_0, %c0_i32_1 : i32, i32, i32
  }
  func.func @transform_13(%arg0: i32) -> (i32, i32, i32) {
    %c0_i32 = arith.constant 0 : i32
    %c0_i32_0 = arith.constant 0 : i32
    %c0_i32_1 = arith.constant 0 : i32
    %c0_i32_2 = arith.constant 0 : i32
    return %c0_i32, %c0_i32_0, %c0_i32_1 : i32, i32, i32
  }
  func.func @transform_14(%arg0: i32) -> (i32, i32, i32) {
    %c0_i32 = arith.constant 0 : i32
    %c0_i32_0 = arith.constant 0 : i32
    %c0_i32_1 = arith.constant 0 : i32
    %c0_i32_2 = arith.constant 0 : i32
    return %c0_i32, %c0_i32_0, %c0_i32_1 : i32, i32, i32
  }
  func.func @transform_15(%arg0: i32) -> (i32, i32) {
    %c0_i32 = arith.constant 0 : i32
    %c0_i32_0 = arith.constant 0 : i32
    %c0_i32_1 = arith.constant 0 : i32
    return %c0_i32, %c0_i32_0 : i32, i32
  }
  func.func @transform_16(%arg0: i32) -> (i32, i32) {
    %c0_i32 = arith.constant 0 : i32
    %c0_i32_0 = arith.constant 0 : i32
    %c0_i32_1 = arith.constant 0 : i32
    return %c0_i32, %c0_i32_0 : i32, i32
  }
  func.func @transform_17(%arg0: i32) -> (i32, i32) {
    %c0_i32 = arith.constant 0 : i32
    %c0_i32_0 = arith.constant 0 : i32
    %c0_i32_1 = arith.constant 0 : i32
    return %c0_i32, %c0_i32_0 : i32, i32
  }
  func.func @transform_18(%arg0: i32) -> (i32, i32) {
    %c0_i32 = arith.constant 0 : i32
    %c0_i32_0 = arith.constant 0 : i32
    %c0_i32_1 = arith.constant 0 : i32
    return %c0_i32, %c0_i32_0 : i32, i32
  }
  func.func @transform_19(%arg0: i32) -> (i32, i32) {
    %c0_i32 = arith.constant 0 : i32
    %c0_i32_0 = arith.constant 0 : i32
    %c0_i32_1 = arith.constant 0 : i32
    return %c0_i32, %c0_i32_0 : i32, i32
  }
}

</mosaic_0001>

<bundles_post_ra>
// kernel: tpu_custom_call.1
= control target key start
LH: loop header
LB: loop body
LE: loop exit
PB: predicated region body
PF: predicated region fallthrough
CT: control target
= control target key end

     0   :  { %s6654_s0 = inlined_call_operand.hbm [shape: f32[16,32], index: 0, kind: input, shape index: {}]   ;;  %s6655_s1 = inlined_call_operand.hbm [shape: f32[16,16], index: 1, kind: input, shape index: {}]   ;;  %s6656_s2 = inlined_call_operand.vmem [shape: f32[3,1,32], index: 2, kind: input, shape index: {}]   ;;  %s6657_s3 = inlined_call_operand.hbm [shape: f32[3,1,32], index: 3, kind: input, shape index: {}]   ;;  %s6658_s4 = inlined_call_operand.hbm [shape: f32[3,32,32], index: 4, kind: input, shape index: {}]   ;;  %s6659_s5 = inlined_call_operand.hbm [shape: f32[3,32,32], index: 5, kind: input, shape index: {}]   ;;  %s6660_s6 = inlined_call_operand.hbm [shape: f32[3,32,32], index: 6, kind: input, shape index: {}]   ;;  %s6661_s7 = inlined_call_operand.hbm [shape: f32[3,32,32], index: 7, kind: input, shape index: {}]   ;;  %s6662_s8 = inlined_call_operand.vmem [shape: f32[3,1,32], index: 8, kind: input, shape index: {}]   ;;  %s6663_s9 = inlined_call_operand.vmem [shape: f32[3,1,32], index: 9, kind: input, shape index: {}]   ;;  %s6664_s10 = inlined_call_operand.vmem [shape: f32[3,1,32], index: 10, kind: input, shape index: {}]   ;;  %s6665_s11 = inlined_call_operand.hbm [shape: f32[3,32,32], index: 11, kind: input, shape index: {}]   ;;  %s6666_s12 = inlined_call_operand.vmem [shape: f32[3,1,32], index: 12, kind: input, shape index: {}]   ;;  %s6667_s13 = inlined_call_operand.hbm [shape: f32[3,32,32], index: 13, kind: input, shape index: {}]   ;;  %s6668_s14 = inlined_call_operand.vmem [shape: f32[3,1,32], index: 14, kind: input, shape index: {}]   ;;  %s6669_s15 = inlined_call_operand.vmem [shape: f32[1,32], index: 15, kind: input, shape index: {}]   ;;  %s6670_s16 = inlined_call_operand.vmem [shape: f32[1,32], index: 16, kind: input, shape index: {}]   ;;  %s6671_s17 = inlined_call_operand.hbm [shape: f32[32,128], index: 17, kind: input, shape index: {}]   ;;  %s6672_s18 = inlined_call_operand.vmem [shape: f32[1,128], index: 18, kind: input, shape index: {}]   ;;  %s6673_s19 = inlined_call_operand.hbm [shape: f32[16,128], index: 19, kind: output, shape index: {}]  }
   0x1   :  { %6675 = sst [smem:[#allocation27_spill]] %s6654_s0 }
   0x2   :  { %6676 = sst [smem:[#allocation28_spill]] %s6655_s1 }
   0x3   :  { %6677 = sst [smem:[#allocation29_spill]] %s6656_s2 }
   0x4   :  { %6678 = sst [smem:[#allocation30_spill]] %s6657_s3 }
   0x5   :  { %24 = vsyncpa [#allocation3], 0 }
   0x6   :  { %25 = vsyncpa [#allocation6], 0 }
   0x7   :  { %26 = vsyncpa [#allocation9], 0 }
   0x8   :  { %27 = vsyncpa [#allocation12], 0 }
   0x9   :  { %28 = vsyncpa [#allocation15], 0 }
   0xa   :  { %29 = vsyncpa [#allocation18], 0 }
   0xb   :  { %30 = vsyncpa [#allocation4], 0  ;;  %s5859_s0 = smov [#allocation5]   ;;  %s5860_s20 = smov [#allocation8]  }
   0xc   :  { %s48_s30 = sshll.u32 %s5859_s0, 4  ;;  %s74_s21 = sshll.u32 %s5860_s20, 4  ;;  %s49_s30 = int_to_ptr.vmem [resolvable:$true] %s48_s30  ;;  %s75_s21 = int_to_ptr.vmem [resolvable:$true] %s74_s21 }
   0xd   :  { %s5633_s1 = scalar_lea.vmem %s49_s30, 256  ;;  %p5638_p1 = scmp.lt.s32.totalorder %s49_s30, %s49_s30 }
   0xe   :  { %p5634_p0 = scmp.ne.s32.totalorder %s49_s30, %s5633_s1  ;;  %p5639_p2 = scmp.lt.s32.totalorder %s5633_s1, %s5633_s1 }
  0x10   :  { %p5640_p3 = por %p5639_p2, %p5638_p1 }
  0x12   :  { %p5641_p4 = pnand %p5640_p3, %p5634_p0 }
  0x14   :  { %5644 = shalt.err (!%p5641_p4)
}
  0x15   :  { %s5861_s22 = smov 128   ;;  %s5862_s2 = smov 8  }
  0x16   :  { %s6679_s25 = sld [smem:[#allocation28_spill]]  ;;  %s5653_s3 = scalar_lea.vmem %s75_s21, 1536 }
  0x17   :  { %p5654_p5 = scmp.ne.s32.totalorder %s75_s21, %s5653_s3  ;;  %p5658_p6 = scmp.lt.s32.totalorder %s75_s21, %s75_s21 }
  0x18   :  { %p5659_p7 = scmp.lt.s32.totalorder %s5653_s3, %s5653_s3 }
  0x1a   :  { %p5660_p8 = por %p5659_p7, %p5658_p6 }
  0x1c   :  { %54 = dma.hbm_to_vmem [thread:$0]  %s6679_s25, 256, %s49_s30, [#allocation6], %s5861_s22, %s5861_s22, %s5862_s2  }
  0x1d   :  { %p5661_p9 = pnand %p5660_p8, %p5654_p5 }
  0x1f   :  { %5664 = shalt.err (!%p5661_p9)
}
  0x20   :  { %80 = dma.hbm_to_vmem [thread:$0]  %s6658_s4, 1536, %s75_s21, [#allocation9], %s5861_s22, %s5861_s22, %s5862_s2  }
  0x21   :  { %s5863_s28 = smov [#allocation11]   ;;  %s5864_s0 = smov [#allocation14]  }
  0x22   :  { %s98_s29 = sshll.u32 %s5863_s28, 4  ;;  %s128_s20 = sshll.u32 %s5864_s0, 4  ;;  %s99_s29 = int_to_ptr.vmem [resolvable:$true] %s98_s29  ;;  %s129_s20 = int_to_ptr.vmem [resolvable:$true] %s128_s20 }
  0x23   :  { %s5673_s30 = scalar_lea.vmem %s99_s29, 1536  ;;  %p5678_p11 = scmp.lt.s32.totalorder %s99_s29, %s99_s29 }
  0x24   :  { %p5674_p10 = scmp.ne.s32.totalorder %s99_s29, %s5673_s30  ;;  %p5679_p12 = scmp.lt.s32.totalorder %s5673_s30, %s5673_s30 }
  0x26   :  { %p5680_p13 = por %p5679_p12, %p5678_p11 }
  0x28   :  { %p5681_p0 = pnand %p5680_p13, %p5674_p10 }
  0x2a   :  { %5684 = shalt.err (!%p5681_p0)
}
  0x2b   :  { %104 = dma.hbm_to_vmem [thread:$0]  %s6660_s6, 1536, %s99_s29, [#allocation12], %s5861_s22, %s5861_s22, %s5862_s2  }
  0x2c   :  { %s5693_s4 = scalar_lea.vmem %s129_s20, 1536  ;;  %p5698_p2 = scmp.lt.s32.totalorder %s129_s20, %s129_s20 }
  0x2d   :  { %p5694_p1 = scmp.ne.s32.totalorder %s129_s20, %s5693_s4  ;;  %p5699_p3 = scmp.lt.s32.totalorder %s5693_s4, %s5693_s4 }
  0x2f   :  { %p5700_p4 = por %p5699_p3, %p5698_p2 }
  0x31   :  { %p5701_p5 = pnand %p5700_p4, %p5694_p1 }
  0x33   :  { %5704 = shalt.err (!%p5701_p5)
}
  0x34   :  { %134 = dma.hbm_to_vmem [thread:$0]  %s6665_s11, 1536, %s129_s20, [#allocation15], %s5861_s22, %s5861_s22, %s5862_s2  }
  0x35   :  { %s5865_s25 = smov [#allocation2]   ;;  %s5866_s26 = smov [#allocation7]  }
  0x36   :  { %s36_s3 = sshll.u32 %s5865_s25, 4  ;;  %s62_s27 = sshll.u32 %s5866_s26, 4  ;;  %s37_s3 = int_to_ptr.vmem [resolvable:$true] %s36_s3  ;;  %s63_s27 = int_to_ptr.vmem [resolvable:$true] %s62_s27 }
  0x37   :  { %s5713_s6 = scalar_lea.vmem %s37_s3, 256  ;;  %p5718_p7 = scmp.lt.s32.totalorder %s37_s3, %s37_s3 }
  0x38   :  { %p5714_p6 = scmp.ne.s32.totalorder %s37_s3, %s5713_s6  ;;  %p5719_p8 = scmp.lt.s32.totalorder %s5713_s6, %s5713_s6 }
  0x3a   :  { %p5720_p9 = por %p5719_p8, %p5718_p7 }
  0x3c   :  { %p5721_p10 = pnand %p5720_p9, %p5714_p6 }
  0x3e   :  { %5724 = shalt.err (!%p5721_p10)
}
  0x3f   :  { %s6680_s0 = sld [smem:[#allocation27_spill]]  ;;  %s5733_s11 = scalar_lea.vmem %s63_s27, 48 }
  0x40   :  { %p5734_p11 = scmp.ne.s32.totalorder %s63_s27, %s5733_s11  ;;  %s5737_s20 = scalar_lea.vmem %s63_s27, 64 }
  0x41   :  { %p5738_p12 = scmp.lt.s32.totalorder %s63_s27, %s63_s27  ;;  %p5739_p13 = scmp.lt.s32.totalorder %s5737_s20, %s5733_s11 }
  0x43   :  { %p5740_p0 = por %p5739_p13, %p5738_p12 }
  0x45   :  { %42 = dma.hbm_to_vmem [thread:$0]  %s6680_s0, 256, %s37_s3, [#allocation3], %s5861_s22, %s5861_s22, %s5862_s2  }
  0x46   :  { %p5741_p1 = pnand %p5740_p0, %p5734_p11 }
  0x48   :  { %5744 = shalt.err (!%p5741_p1)
}
  0x49   :  { %s5867_s30 = smov 16   ;;  %s5868_s1 = smov 1  }
  0x4a   :  { %s6681_s21 = sld [smem:[#allocation30_spill]]  ;;  %s5869_s24 = smov [#allocation10]  }
  0x4b   :  { %s86_s25 = sshll.u32 %s5869_s24, 4  ;;  %s5870_s26 = smov [#allocation13]   ;;  %s87_s25 = int_to_ptr.vmem [resolvable:$true] %s86_s25 }
  0x4c   :  { %s110_s3 = sshll.u32 %s5870_s26, 4  ;;  %s5753_s6 = scalar_lea.vmem %s87_s25, 1536  ;;  %s111_s3 = int_to_ptr.vmem [resolvable:$true] %s110_s3 }
  0x4d   :  { %p5754_p2 = scmp.ne.s32.totalorder %s87_s25, %s5753_s6  ;;  %p5758_p3 = scmp.lt.s32.totalorder %s87_s25, %s87_s25 }
  0x4e   :  { %p5759_p4 = scmp.lt.s32.totalorder %s5753_s6, %s5753_s6 }
  0x50   :  { %68 = dma.hbm_to_vmem [thread:$0]  %s6681_s21, 48, %s63_s27, [#allocation6], %s5867_s30, %s5867_s30, %s5868_s1  }
  0x51   :  { %p5760_p5 = por %p5759_p4, %p5758_p3 }
  0x53   :  { %p5761_p6 = pnand %p5760_p5, %p5754_p2 }
  0x55   :  { %5764 = shalt.err (!%p5761_p6)
}
  0x56   :  { %92 = dma.hbm_to_vmem [thread:$0]  %s6659_s5, 1536, %s87_s25, [#allocation9], %s5861_s22, %s5861_s22, %s5862_s2  }
  0x57   :  { %s5773_s27 = scalar_lea.vmem %s111_s3, 1536  ;;  %p5778_p8 = scmp.lt.s32.totalorder %s111_s3, %s111_s3 }
  0x58   :  { %p5774_p7 = scmp.ne.s32.totalorder %s111_s3, %s5773_s27  ;;  %p5779_p9 = scmp.lt.s32.totalorder %s5773_s27, %s5773_s27 }
  0x5a   :  { %p5780_p10 = por %p5779_p9, %p5778_p8 }
  0x5c   :  { %p5781_p11 = pnand %p5780_p10, %p5774_p7 }
  0x5e   :  { %5784 = shalt.err (!%p5781_p11)
}
  0x5f   :  { %116 = dma.hbm_to_vmem [thread:$0]  %s6661_s7, 1536, %s111_s3, [#allocation12], %s5861_s22, %s5861_s22, %s5862_s2  }
  0x60   :  { %s5871_s20 = smov [#allocation16]   ;;  %s5872_s23 = smov [#allocation17]  }
  0x61   :  { %s142_s1 = sshll.u32 %s5871_s20, 4  ;;  %s160_s4 = sshll.u32 %s5872_s23, 4  ;;  %s143_s1 = int_to_ptr.vmem [resolvable:$true] %s142_s1  ;;  %s161_s4 = int_to_ptr.vmem [resolvable:$true] %s160_s4 }
  0x62   :  { %s5793_s5 = scalar_lea.vmem %s143_s1, 1536  ;;  %p5798_p13 = scmp.lt.s32.totalorder %s143_s1, %s143_s1 }
  0x63   :  { %p5794_p12 = scmp.ne.s32.totalorder %s143_s1, %s5793_s5  ;;  %p5799_p0 = scmp.lt.s32.totalorder %s5793_s5, %s5793_s5 }
  0x65   :  { %p5800_p1 = por %p5799_p0, %p5798_p13 }
  0x67   :  { %p5801_p2 = pnand %p5800_p1, %p5794_p12 }
  0x69   :  { %5804 = shalt.err (!%p5801_p2)
}
  0x6a   :  { %148 = dma.hbm_to_vmem [thread:$0]  %s6667_s13, 1536, %s143_s1, [#allocation15], %s5861_s22, %s5861_s22, %s5862_s2  }
  0x6b   :  { %s5813_s7 = scalar_lea.vmem %s161_s4, 512  ;;  %p5818_p4 = scmp.lt.s32.totalorder %s161_s4, %s161_s4 }
  0x6c   :  { %p5814_p3 = scmp.ne.s32.totalorder %s161_s4, %s5813_s7  ;;  %p5819_p5 = scmp.lt.s32.totalorder %s5813_s7, %s5813_s7 }
  0x6e   :  { %p5820_p6 = por %p5819_p5, %p5818_p4 }
  0x70   :  { %p5821_p7 = pnand %p5820_p6, %p5814_p3 }
  0x72   :  { %5824 = shalt.err (!%p5821_p7)
}
  0x73   :  { %166 = dma.hbm_to_vmem [thread:$0]  %s6671_s17, 512, %s161_s4, [#allocation18], %s5861_s22, %s5861_s22, %s5862_s2  }
  0x74   :  { %5845 = dma.done.wait [#allocation3], 256  }
  0x75   :  { %5846 = vsyncadd [#allocation3], 4294967040 }
  0x76   :  { %5847 = dma.done.wait [#allocation6], 304  }
  0x77   :  { %5848 = vsyncadd [#allocation6], 4294966992 }
  0x78   :  { %5849 = dma.done.wait [#allocation9], 3072  }
  0x79   :  { %5850 = vsyncadd [#allocation9], 4294964224 }
  0x7a   :  { %5851 = dma.done.wait [#allocation12], 3072  }
  0x7b   :  { %5852 = vsyncadd [#allocation12], 4294964224 }
  0x7c   :  { %5853 = dma.done.wait [#allocation15], 3072  }
  0x7d   :  { %5854 = vsyncadd [#allocation15], 4294964224 }
  0x7e   :  { %5855 = dma.done.wait [#allocation18], 512  }
  0x7f   :  { %5856 = vsyncadd [#allocation18], 4294966784  ;;  %vm205_vm0 = vcmask 261120   ;;  %v6037_v0 = vld [vmem:[#allocation2] sm:$0xff]  ;;  %v6039_v1 = vld [vmem:[#allocation2 + $0x8] sm:$0xff]  ;;  %s6682_s3 = sld [smem:[#allocation29_spill]] }
  0x80   :  { %v206_v2 = vsel %vm205_vm0, %v6037_v0, 0.0  ;;  %v209_v3 = vsel %vm205_vm0, %v6039_v1, 0.0  ;;  %v252_v14 = vld [vmem:[#allocation8 + $0x18] sm:$0xff]  ;;  %v251_v16 = vld [vmem:[#allocation8 + $0x10] sm:$0xff]  ;;  %v250_v18 = vld [vmem:[#allocation8 + $0x8] sm:$0xff]  ;;  %vm492_vm1 = vcmask 64512  }
  0x81   :  { %207 = vadd.xlane.f32.xlu0 %v206_v2  ;;  %v337_v15 = vld [vmem:[#allocation10 + $0x18] sm:$0xff]  ;;  %5103 = vmatprep.subr.mxu0 %v252_v14  ;;  %v336_v17 = vld [vmem:[#allocation10 + $0x10] sm:$0xff]  ;;  %v335_v19 = vld [vmem:[#allocation10 + $0x8] sm:$0xff]  ;;  %s5873_s6 = smov 120   ;;  %vm584_vm2 = vcmask 130048   ;;  %s5874_s28 = smov 112  }
  0x82   :  { %5114 = vmatprep.subr.mxu1 %v337_v15  ;;  %5104 = vmatpush3.msra.mxu0 %v252_v14  ;;  %v249_v20 = vld [vmem:[#allocation8] sm:$0xff]  ;;  %v416_v22 = vld [vmem:[#allocation11 + $0x18] sm:$0xff]  ;;  %v415_v39 = vld [vmem:[#allocation11 + $0x10] sm:$0xff]  ;;  %s5875_s29 = smov 104   ;;  %s5876_s27 = smov 24   ;;  %vm1330_vm3 = vcmask 195584  }
  0x83   :  { %5115 = vmatpush3.msra.mxu1 %v337_v15  ;;  %5105 = vmatprep.subr.mxu0 %v251_v16  ;;  %v334_v21 = vld [vmem:[#allocation10] sm:$0xff]  ;;  %v4748_v32 = vld [vmem:[#allocation7] ss:$0 sm:$0xff]  ;;  %v414_v40 = vld [vmem:[#allocation11 + $0x8] sm:$0xff] }
  0x84   :  { %5116 = vmatprep.subr.mxu1 %v336_v17  ;;  %5106 = vmatpush3.msra.mxu0 %v251_v16  ;;  %v413_v41 = vld [vmem:[#allocation11] sm:$0xff]  ;;  %v6100_v53 = vld [vmem:[#allocation5 + $0x8] sm:$0xff]  ;;  %v6102_v56 = vld [vmem:[#allocation5] sm:$0xff] }
  0x85   :  { %210 = vadd.xlane.f32.xlu0 %v209_v3  ;;  %5117 = vmatpush3.msra.mxu1 %v336_v17  ;;  %v4747_v30 = vld [vmem:[%s6682_s3] ss:$0 sm:$0xff] }
  0x86   :  { %5107 = vmatprep.subr.mxu0 %v250_v18  ;;  %5118 = vmatprep.subr.mxu1 %v335_v19 }
  0x87   :  { %5108 = vmatpush3.msra.mxu0 %v250_v18  ;;  %5119 = vmatpush3.msra.mxu1 %v335_v19 }
  0x88   :  { %5109 = vmatprep.subr.mxu0 %v249_v20  ;;  %5120 = vmatprep.subr.mxu1 %v334_v21 }
  0x89   :  { %5110 = vmatpush3.msra.mxu0 %v249_v20  ;;  %5121 = vmatpush3.msra.mxu1 %v334_v21 }
  0x8a   :  { %5125 = vmatprep.subr.mxu0 %v416_v22 }
 0x10a   :  { %v208_v4 = vpop.xlane.xlu0 %207 }
 0x10b   :  { %v213_v5 = vmul.f32 0.03125, %v208_v4 }
 0x10d   :  { %v215_v6 = vsub.f32 %v6037_v0, %v213_v5 }
 0x10e   :  { %v211_v7 = vpop.xlane.xlu0 %210 }
 0x10f   :  { %v214_v8 = vmul.f32 0.03125, %v211_v7  ;;  %v217_v9 = vmul.f32 %v215_v6, %v215_v6 }
 0x111   :  { %v216_v10 = vsub.f32 %v6039_v1, %v214_v8  ;;  %v219_v11 = vsel %vm205_vm0, %v217_v9, 0.0 }
 0x112   :  { %220 = vadd.xlane.f32.xlu1 %v219_v11 }
 0x113   :  { %v218_v12 = vmul.f32 %v216_v10, %v216_v10 }
 0x115   :  { %v222_v13 = vsel %vm205_vm0, %v218_v12, 0.0 }
 0x116   :  { %223 = vadd.xlane.f32.xlu1 %v222_v13 }
 0x19b   :  { %v221_v23 = vpop.xlane.xlu1 %220 }
 0x19c   :  { %v225_v24 = vmul.f32 0.03125, %v221_v23 }
 0x19e   :  { %v227_v25 = vadd.f32 1e-05, %v225_v24 }
 0x19f   :  { %v224_v26 = vpop.xlane.xlu1 %223 }
 0x1a0   :  { %5499 = vrsqrt.f32 %v227_v25  ;;  %v226_v27 = vmul.f32 0.03125, %v224_v26 }
 0x1a2   :  { %v228_v28 = vadd.f32 1e-05, %v226_v27 }
 0x1a4   :  { %5501 = vrsqrt.f32 %v228_v28 }
 0x1ad   :  { %v5500_v29 = vpop.eup %5499 }
 0x1ae   :  { %v231_v31 = vmul.f32 %v5500_v29, %v215_v6 }
 0x1b0   :  { %v239_v33 = vmul.f32 %v4747_v30, %v231_v31 }
 0x1b1   :  { %v5502_v34 = vpop.eup %5501 }
 0x1b2   :  { %v232_v35 = vmul.f32 %v5502_v34, %v216_v10  ;;  %v247_v36 = vadd.f32 %v4748_v32, %v239_v33 }
 0x1b4   :  { %v240_v37 = vmul.f32 %v4747_v30, %v232_v35  ;;  %5111 = vmatprep.mubr.msk.f32.mxu0 %vm205_vm0, %v247_v36  ;;  %5122 = vmatprep.mubr.msk.f32.mxu1 %vm205_vm0, %v247_v36 }
 0x1b6   :  { %v248_v38 = vadd.f32 %v4748_v32, %v240_v37 }
 0x1b8   :  { %5112 = vmatmul.mubr.msk.f32.vlgmr.msra.gmra.mxu0 %vm205_vm0, %v248_v38  ;;  %5123 = vmatmul.mubr.msk.f32.vlgmr.msra.gmra.mxu1 %vm205_vm0, %v248_v38 }
 0x1b9   :  { %5126 = vmatpush3.msra.mxu0 %v416_v22  ;;  %5133 = vmatprep.mubr.msk.f32.mxu0 %vm205_vm0, %v247_v36 }
 0x1ba   :  { %5127 = vmatprep.subr.mxu0 %v415_v39 }
 0x1bb   :  { %5128 = vmatpush3.msra.mxu0 %v415_v39 }
 0x1bc   :  { %5129 = vmatprep.subr.mxu0 %v414_v40 }
 0x1bd   :  { %5130 = vmatpush3.msra.mxu0 %v414_v40 }
 0x1be   :  { %5131 = vmatprep.subr.mxu0 %v413_v41 }
 0x1bf   :  { %5132 = vmatpush3.msra.mxu0 %v413_v41 }
 0x1c0   :  { %5134 = vmatmul.mubr.msk.f32.vlgmr.msra.gmra.mxu0 %vm205_vm0, %v248_v38 }
 0x278   :  { %v6058_v42 = vpop.f32.mrf.mxu0  ;;  %v6060_v43 = vpop.f32.mrf.mxu1 }
 0x279   :  { %694 = vrot.lane.b32.xlu0 %v6058_v42, %s5873_s6  ;;  %5136 = vmatprep.subr.msk.mxu1 %vm492_vm1, %v6058_v42 }
 0x27a   :  { %v6066_v44 = vpop.f32.mrf.mxu0  ;;  %v6068_v45 = vpop.f32.mrf.mxu1  ;;  %5137 = vmatpush3.xpose.msk.msra.mxu1 %vm492_vm1, %v6058_v42 }
 0x27b   :  { %5140 = vmatprep.mubr.msk.f32.mxu1 %vm492_vm1, %v6068_v45  ;;  %692 = vrot.lane.b32.xlu1 %v6066_v44, %s5873_s6 }
 0x27c   :  { %5138 = vmatprep.subr.msk.mxu1 %vm492_vm1, %v6066_v44 }
 0x27e   :  { %5139 = vmatpush3.xpose.msk.msra.mxu1 %vm492_vm1, %v6066_v44 }
 0x27f   :  { %688 = vrot.lane.b32.xlu1 %v6068_v45, %s5873_s6 }
 0x280   :  { %v6082_v46 = vpop.f32.mrf.mxu0 }
 0x281   :  { %5143 = vmatprep.subr.mxu0 %v6082_v46  ;;  %5141 = vmatmul.mubr.msk.f32.vlgmr.msra.gmra.mxu1 %vm492_vm1, %v6060_v43 }
 0x282   :  { %v6087_v47 = vpop.f32.mrf.mxu0  ;;  %5144 = vmatpush3.msra.mxu0 %v6082_v46 }
 0x283   :  { %5145 = vmatprep.subr.mxu0 %v6087_v47  ;;  %690 = vrot.lane.b32.xlu1 %v6060_v43, %s5873_s6 }
 0x284   :  { %5146 = vmatpush3.msra.mxu0 %v6087_v47 }
 0x2eb   :  { %v695_v48 = vpop.permute.xlu0 %694 }
 0x2ec   :  { %5150 = vmatprep.subr.msk.mxu1 %vm492_vm1, %v695_v48 }
 0x2ed   :  { %v693_v49 = vpop.permute.xlu1 %692  ;;  %5151 = vmatpush3.xpose.msk.msra.mxu1 %vm492_vm1, %v695_v48 }
 0x2ee   :  { %5152 = vmatprep.subr.msk.mxu1 %vm492_vm1, %v693_v49 }
 0x2f1   :  { %v689_v50 = vpop.permute.xlu1 %688  ;;  %5153 = vmatpush3.xpose.msk.msra.mxu1 %vm492_vm1, %v693_v49 }
 0x2f2   :  { %5154 = vmatprep.mubr.msk.f32.mxu1 %vm492_vm1, %v689_v50 }
 0x2f5   :  { %v691_v51 = vpop.permute.xlu1 %690 }
 0x2f6   :  { %5155 = vmatmul.mubr.msk.f32.vlgmr.msra.gmra.mxu1 %vm492_vm1, %v691_v51 }
 0x341   :  { %v5142_v52 = vpop.f32.mrf.mxu1 }
 0x342   :  { %v581_v54 = vmul.f32 0.17677669, %v5142_v52 }
 0x343   :  { %v571_v55 = vpop.f32.mrf.mxu1 }
 0x344   :  { %v580_v57 = vmul.f32 0.17677669, %v571_v55  ;;  %v583_v58 = vadd.f32 %v581_v54, %v6100_v53 }
 0x346   :  { %v588_v59 = vsel %vm584_vm2, %v583_v58, -inf  ;;  %v582_v60 = vadd.f32 %v580_v57, %v6102_v56 }
 0x347   :  { %589 = vmax.xlane.f32.xlu1 %v588_v59 }
 0x348   :  { %v585_v61 = vsel %vm584_vm2, %v582_v60, -inf }
 0x349   :  { %586 = vmax.xlane.f32.xlu0 %v585_v61 }
 0x3b6   :  { %v5156_v62 = vpop.f32.mrf.mxu1 }
 0x3b7   :  { %v780_v2 = vmul.f32 0.17677669, %v5156_v62 }
 0x3b8   :  { %v770_v63 = vpop.f32.mrf.mxu1 }
 0x3b9   :  { %v779_v3 = vmul.f32 0.17677669, %v770_v63  ;;  %v782_v6 = vadd.f32 %v780_v2, %v6100_v53 }
 0x3bb   :  { %v781_v4 = vadd.f32 %v779_v3, %v6102_v56  ;;  %v786_v7 = vsel %vm584_vm2, %v782_v6, -inf }
 0x3bd   :  { %v783_v5 = vsel %vm584_vm2, %v781_v4, -inf }
 0x3be   :  { %784 = vmax.xlane.f32.xlu0 %v783_v5 }
 0x3c2   :  { %787 = vmax.xlane.f32.xlu0 %v786_v7 }
 0x3d0   :  { %v590_v8 = vpop.xlane.xlu1 %589 }
 0x3d1   :  { %v592_v9 = vsub.f32 %v583_v58, %v590_v8 }
 0x3d2   :  { %v587_v10 = vpop.xlane.xlu0 %586 }
 0x3d3   :  { %v595_v11 = vmul.f32 1.442695, %v592_v9  ;;  %v591_v12 = vsub.f32 %v582_v60, %v587_v10 }
 0x3d5   :  { %5503 = vpow2.f32 %v595_v11  ;;  %v593_v13 = vmul.f32 1.442695, %v591_v12 }
 0x3d7   :  { %5505 = vpow2.f32 %v593_v13 }
 0x3e2   :  { %v5504_v14 = vpop.eup %5503 }
 0x3e3   :  { %v600_v15 = vsel %vm584_vm2, %v5504_v14, 0.0 }
 0x3e4   :  { %v5506_v16 = vpop.eup %5505  ;;  %601 = vadd.xlane.f32.xlu1 %v600_v15 }
 0x3e5   :  { %v597_v17 = vsel %vm584_vm2, %v5506_v16, 0.0 }
 0x3e6   :  { %598 = vadd.xlane.f32.xlu0 %v597_v17 }
 0x447   :  { %v785_v18 = vpop.xlane.xlu0 %784 }
 0x448   :  { %v789_v19 = vsub.f32 %v781_v4, %v785_v18 }
 0x44a   :  { %v791_v20 = vmul.f32 1.442695, %v789_v19 }
 0x44b   :  { %v788_v21 = vpop.xlane.xlu0 %787 }
 0x44c   :  { %5507 = vpow2.f32 %v791_v20  ;;  %v790_v22 = vsub.f32 %v782_v6, %v788_v21 }
 0x44e   :  { %v793_v23 = vmul.f32 1.442695, %v790_v22 }
 0x450   :  { %5509 = vpow2.f32 %v793_v23 }
 0x459   :  { %v5508_v24 = vpop.eup %5507 }
 0x45a   :  { %v795_v25 = vsel %vm584_vm2, %v5508_v24, 0.0 }
 0x45b   :  { %796 = vadd.xlane.f32.xlu0 %v795_v25 }
 0x45d   :  { %v5510_v26 = vpop.eup %5509 }
 0x45e   :  { %v798_v27 = vsel %vm584_vm2, %v5510_v26, 0.0 }
 0x45f   :  { %799 = vadd.xlane.f32.xlu1 %v798_v27 }
 0x46d   :  { %v602_v28 = vpop.xlane.xlu1 %601 }
 0x46e   :  { %5511 = vrcp.f32 %v602_v28 }
 0x46f   :  { %v599_v29 = vpop.xlane.xlu0 %598 }
 0x470   :  { %5513 = vrcp.f32 %v599_v29  ;;  %807 = vrot.lane.b32.xlu1 %v6087_v47, %s5873_s6 }
 0x471   :  { %809 = vrot.lane.b32.xlu0 %v6082_v46, %s5873_s6 }
 0x474   :  { %900 = vrot.lane.b32.xlu1 %v6058_v42, %s5874_s28 }
 0x475   :  { %894 = vrot.lane.b32.xlu0 %v6068_v45, %s5874_s28 }
 0x478   :  { %898 = vrot.lane.b32.xlu1 %v6066_v44, %s5874_s28 }
 0x47b   :  { %v5512_v30 = vpop.eup %5511 }
 0x47c   :  { %896 = vrot.lane.b32.xlu1 %v6060_v43, %s5874_s28  ;;  %v606_v33 = vmul.f32 %v5512_v30, %v5504_v14 }
 0x47d   :  { %v5514_v31 = vpop.eup %5513 }
 0x47e   :  { %v605_v32 = vmul.f32 %v5514_v31, %v5506_v16 }
 0x480   :  { %5147 = vmatprep.mubr.msk.f32.mxu0 %vm584_vm2, %v605_v32 }
 0x481   :  { %5148 = vmatmul.mubr.msk.f32.vlgmr.msra.gmra.mxu0 %vm584_vm2, %v606_v33 }
 0x4e4   :  { %v797_v34 = vpop.xlane.xlu0 %796 }
 0x4e5   :  { %5515 = vrcp.f32 %v797_v34 }
 0x4e8   :  { %v800_v35 = vpop.xlane.xlu1 %799  ;;  %v810_v36 = vpop.permute.xlu0 %809 }
 0x4e9   :  { %5517 = vrcp.f32 %v800_v35  ;;  %5157 = vmatprep.subr.mxu0 %v810_v36 }
 0x4ea   :  { %5158 = vmatpush3.msra.mxu0 %v810_v36 }
 0x4ec   :  { %v808_v37 = vpop.permute.xlu1 %807  ;;  %v895_v49 = vpop.permute.xlu0 %894 }
 0x4ed   :  { %5159 = vmatprep.subr.mxu0 %v808_v37 }
 0x4ee   :  { %5160 = vmatpush3.msra.mxu0 %v808_v37 }
 0x4f0   :  { %v901_v38 = vpop.permute.xlu1 %900 }
 0x4f1   :  { %5164 = vmatprep.subr.msk.mxu0 %vm492_vm1, %v901_v38 }
 0x4f2   :  { %v5516_v39 = vpop.eup %5515 }
 0x4f3   :  { %v803_v40 = vmul.f32 %v5516_v39, %v5508_v24 }
 0x4f4   :  { %v899_v50 = vpop.permute.xlu1 %898 }
 0x4f5   :  { %5161 = vmatprep.mubr.msk.f32.mxu0 %vm584_vm2, %v803_v40 }
 0x4f6   :  { %v5518_v41 = vpop.eup %5517 }
 0x4f7   :  { %v804_v48 = vmul.f32 %v5518_v41, %v5510_v26 }
 0x4f8   :  { %v897_v51 = vpop.permute.xlu1 %896 }
 0x4f9   :  { %5162 = vmatmul.mubr.msk.f32.vlgmr.msra.gmra.mxu0 %vm584_vm2, %v804_v48 }
 0x4fa   :  { %5165 = vmatpush3.xpose.msk.msra.mxu0 %vm492_vm1, %v901_v38  ;;  %5168 = vmatprep.mubr.msk.f32.mxu0 %vm492_vm1, %v895_v49 }
 0x4fb   :  { %5166 = vmatprep.subr.msk.mxu0 %vm492_vm1, %v899_v50 }
 0x4fe   :  { %5167 = vmatpush3.xpose.msk.msra.mxu0 %vm492_vm1, %v899_v50 }
 0x501   :  { %5169 = vmatmul.mubr.msk.f32.vlgmr.msra.gmra.mxu0 %vm492_vm1, %v897_v51 }
 0x541   :  { %v6138_v52 = vpop.f32.mrf.mxu0 }
 0x543   :  { %v6140_v54 = vpop.f32.mrf.mxu0 }
 0x5b9   :  { %v6142_v55 = vpop.f32.mrf.mxu0 }
 0x5bb   :  { %v6144_v57 = vpop.f32.mrf.mxu0 }
 0x5c1   :  { %v5170_v58 = vpop.f32.mrf.mxu0 }
 0x5c2   :  { %v986_v59 = vmul.f32 0.17677669, %v5170_v58 }
 0x5c3   :  { %v976_v60 = vpop.f32.mrf.mxu0 }
 0x5c4   :  { %v985_v61 = vmul.f32 0.17677669, %v976_v60  ;;  %v988_v62 = vadd.f32 %v986_v59, %v6100_v53  ;;  %v1335_v59 = vld [vmem:[#allocation13 + $0x10] sm:$0xff]  ;;  %v1334_v60 = vld [vmem:[#allocation13 + $0x8] sm:$0xff] }
 0x5c6   :  { %v992_v63 = vsel %vm584_vm2, %v988_v62, -inf  ;;  %v987_v2 = vadd.f32 %v985_v61, %v6102_v56  ;;  %v1333_v61 = vld [vmem:[#allocation13] sm:$0xff] }
 0x5c7   :  { %993 = vmax.xlane.f32.xlu1 %v992_v63 }
 0x5c8   :  { %v989_v3 = vsel %vm584_vm2, %v987_v2, -inf }
 0x5c9   :  { %990 = vmax.xlane.f32.xlu0 %v989_v3 }
 0x5d8   :  { %1011 = vrot.lane.b32.xlu1 %v6087_v47, %s5874_s28 }
 0x5dc   :  { %1104 = vrot.lane.b32.xlu1 %v6058_v42, %s5875_s29 }
 0x5e0   :  { %1102 = vrot.lane.b32.xlu1 %v6066_v44, %s5875_s29 }
 0x5e4   :  { %1100 = vrot.lane.b32.xlu1 %v6060_v43, %s5875_s29 }
 0x650   :  { %v994_v4 = vpop.xlane.xlu1 %993 }
 0x651   :  { %v996_v5 = vsub.f32 %v988_v62, %v994_v4 }
 0x652   :  { %v991_v6 = vpop.xlane.xlu0 %990 }
 0x653   :  { %v999_v7 = vmul.f32 1.442695, %v996_v5  ;;  %v995_v8 = vsub.f32 %v987_v2, %v991_v6 }
 0x654   :  { %v1012_v13 = vpop.permute.xlu1 %1011 }
 0x655   :  { %5519 = vpow2.f32 %v999_v7  ;;  %v997_v9 = vmul.f32 1.442695, %v995_v8 }
 0x657   :  { %5521 = vpow2.f32 %v997_v9 }
 0x658   :  { %v1105_v15 = vpop.permute.xlu1 %1104 }
 0x65c   :  { %v1103_v20 = vpop.permute.xlu1 %1102 }
 0x660   :  { %v1101_v21 = vpop.permute.xlu1 %1100 }
 0x662   :  { %v5520_v10 = vpop.eup %5519 }
 0x663   :  { %v1004_v11 = vsel %vm584_vm2, %v5520_v10, 0.0 }
 0x664   :  { %v5522_v12 = vpop.eup %5521  ;;  %1005 = vadd.xlane.f32.xlu0 %v1004_v11 }
 0x665   :  { %v1001_v42 = vsel %vm584_vm2, %v5522_v12, 0.0 }
 0x668   :  { %1002 = vadd.xlane.f32.xlu0 %v1001_v42 }
 0x67e   :  { %1013 = vrot.lane.b32.xlu0 %v6082_v46, %s5874_s28 }
 0x682   :  { %1098 = vrot.lane.b32.xlu0 %v6068_v45, %s5875_s29 }
 0x6ed   :  { %v1006_v43 = vpop.xlane.xlu0 %1005 }
 0x6ee   :  { %5523 = vrcp.f32 %v1006_v43 }
 0x6f1   :  { %v1003_v44 = vpop.xlane.xlu0 %1002 }
 0x6f2   :  { %5525 = vrcp.f32 %v1003_v44 }
 0x6f5   :  { %v1014_v14 = vpop.permute.xlu0 %1013 }
 0x6f6   :  { %5171 = vmatprep.subr.mxu1 %v1014_v14 }
 0x6f7   :  { %5172 = vmatpush3.msra.mxu1 %v1014_v14 }
 0x6f8   :  { %5173 = vmatprep.subr.mxu1 %v1012_v13 }
 0x6f9   :  { %5174 = vmatpush3.msra.mxu1 %v1012_v13  ;;  %v1099_v45 = vpop.permute.xlu0 %1098 }
 0x6fa   :  { %5178 = vmatprep.subr.msk.mxu1 %vm492_vm1, %v1105_v15 }
 0x6fb   :  { %v5524_v16 = vpop.eup %5523 }
 0x6fc   :  { %v1010_v19 = vmul.f32 %v5524_v16, %v5520_v10 }
 0x6ff   :  { %v5526_v17 = vpop.eup %5525 }
 0x700   :  { %v1009_v18 = vmul.f32 %v5526_v17, %v5522_v12 }
 0x702   :  { %5175 = vmatprep.mubr.msk.f32.mxu1 %vm584_vm2, %v1009_v18 }
 0x703   :  { %5176 = vmatmul.mubr.msk.f32.vlgmr.msra.gmra.mxu1 %vm584_vm2, %v1010_v19 }
 0x704   :  { %5179 = vmatpush3.xpose.msk.msra.mxu1 %vm492_vm1, %v1105_v15  ;;  %5182 = vmatprep.mubr.msk.f32.mxu1 %vm492_vm1, %v1099_v45 }
 0x705   :  { %5180 = vmatprep.subr.msk.mxu1 %vm492_vm1, %v1103_v20 }
 0x708   :  { %5181 = vmatpush3.xpose.msk.msra.mxu1 %vm492_vm1, %v1103_v20 }
 0x70b   :  { %5183 = vmatmul.mubr.msk.f32.vlgmr.msra.gmra.mxu1 %vm492_vm1, %v1101_v21 }
 0x7c3   :  { %v5177_v22 = vpop.f32.mrf.mxu1 }
 0x7c5   :  { %v1089_v23 = vpop.f32.mrf.mxu1 }
 0x7cb   :  { %v5184_v24 = vpop.f32.mrf.mxu1 }
 0x7cc   :  { %v1190_v25 = vmul.f32 0.17677669, %v5184_v24 }
 0x7cd   :  { %v1180_v26 = vpop.f32.mrf.mxu1 }
 0x7ce   :  { %v1189_v27 = vmul.f32 0.17677669, %v1180_v26  ;;  %v1192_v28 = vadd.f32 %v1190_v25, %v6100_v53  ;;  %v1474_v25 = vld [vmem:[#allocation14 + $0x18] sm:$0xff]  ;;  %v1473_v26 = vld [vmem:[#allocation14 + $0x10] sm:$0xff] }
 0x7cf   :  { %5203 = vmatprep.subr.mxu1 %v1474_v25 }
 0x7d0   :  { %v1196_v29 = vsel %vm584_vm2, %v1192_v28, -inf  ;;  %v1191_v30 = vadd.f32 %v1189_v27, %v6102_v56  ;;  %5204 = vmatpush3.msra.mxu1 %v1474_v25  ;;  %v1472_v27 = vld [vmem:[#allocation14 + $0x8] sm:$0xff] }
 0x7d1   :  { %1197 = vmax.xlane.f32.xlu1 %v1196_v29  ;;  %5205 = vmatprep.subr.mxu1 %v1473_v26 }
 0x7d2   :  { %v1193_v31 = vsel %vm584_vm2, %v1191_v30, -inf  ;;  %5206 = vmatpush3.msra.mxu1 %v1473_v26 }
 0x7d3   :  { %1194 = vmax.xlane.f32.xlu0 %v1193_v31  ;;  %5207 = vmatprep.subr.mxu1 %v1472_v27 }
 0x7d4   :  { %5208 = vmatpush3.msra.mxu1 %v1472_v27 }
 0x7e2   :  { %1215 = vrot.lane.b32.xlu1 %v6087_v47, %s5875_s29 }
 0x7e6   :  { %1304 = vrot.lane.b32.xlu1 %v6144_v57, %s5862_s2 }
 0x7ea   :  { %1306 = vrot.lane.b32.xlu1 %v6142_v55, %s5862_s2 }
 0x7ee   :  { %1314 = vrot.lane.b32.xlu1 %v5177_v22, %s5867_s30 }
 0x85a   :  { %v1198_v32 = vpop.xlane.xlu1 %1197 }
 0x85b   :  { %v1200_v33 = vsub.f32 %v1192_v28, %v1198_v32  ;;  %v1471_v28 = vld [vmem:[#allocation14] sm:$0xff] }
 0x85c   :  { %v1195_v34 = vpop.xlane.xlu0 %1194  ;;  %5209 = vmatprep.subr.mxu1 %v1471_v28 }
 0x85d   :  { %v1203_v35 = vmul.f32 1.442695, %v1200_v33  ;;  %v1199_v36 = vsub.f32 %v1191_v30, %v1195_v34  ;;  %5210 = vmatpush3.msra.mxu1 %v1471_v28 }
 0x85e   :  { %v1216_v50 = vpop.permute.xlu1 %1215 }
 0x85f   :  { %5527 = vpow2.f32 %v1203_v35  ;;  %v1201_v37 = vmul.f32 1.442695, %v1199_v36  ;;  %v4782_v36 = vld [vmem:[%s6663_s9] ss:$0 sm:$0xff] }
 0x861   :  { %5529 = vpow2.f32 %v1201_v37 }
 0x862   :  { %v1305_v2 = vpop.permute.xlu1 %1304 }
 0x863   :  { %v1326_v6 = vsel %vm492_vm1, %v6140_v54, %v1305_v2  ;;  %v4779_v54 = vld [vmem:[%s6662_s8] ss:$0 sm:$0xff] }
 0x864   :  { %v4787_v2 = vld [vmem:[%s6668_s14] ss:$0 sm:$0xff] }
 0x866   :  { %v1307_v3 = vpop.permute.xlu1 %1306 }
 0x867   :  { %v1327_v8 = vsel %vm492_vm1, %v6138_v52, %v1307_v3 }
 0x86a   :  { %v1315_v4 = vpop.permute.xlu1 %1314 }
 0x86b   :  { %v1329_v11 = vsel %vm584_vm2, %v1327_v8, %v1315_v4 }
 0x86c   :  { %v5528_v38 = vpop.eup %5527 }
 0x86d   :  { %v1208_v39 = vsel %vm584_vm2, %v5528_v38, 0.0 }
 0x86e   :  { %v5530_v47 = vpop.eup %5529  ;;  %1209 = vadd.xlane.f32.xlu0 %v1208_v39 }
 0x86f   :  { %v1205_v40 = vsel %vm584_vm2, %v5530_v47, 0.0 }
 0x872   :  { %1206 = vadd.xlane.f32.xlu0 %v1205_v40 }
 0x888   :  { %1217 = vrot.lane.b32.xlu0 %v6082_v46, %s5875_s29  ;;  %v1336_v46 = vld [vmem:[#allocation13 + $0x18] sm:$0xff] }
 0x88c   :  { %1312 = vrot.lane.b32.xlu0 %v1089_v23, %s5867_s30 }
 0x8f7   :  { %v1210_v41 = vpop.xlane.xlu0 %1209 }
 0x8f8   :  { %5531 = vrcp.f32 %v1210_v41 }
 0x8fb   :  { %v1207_v48 = vpop.xlane.xlu0 %1206 }
 0x8fc   :  { %5533 = vrcp.f32 %v1207_v48 }
 0x8ff   :  { %v1218_v49 = vpop.permute.xlu0 %1217 }
 0x900   :  { %5185 = vmatprep.subr.mxu0 %v1218_v49 }
 0x901   :  { %5186 = vmatpush3.msra.mxu0 %v1218_v49 }
 0x902   :  { %5187 = vmatprep.subr.mxu0 %v1216_v50 }
 0x903   :  { %5188 = vmatpush3.msra.mxu0 %v1216_v50  ;;  %v1313_v5 = vpop.permute.xlu0 %1312  ;;  %v1568_v50 = vld [vmem:[#allocation16 + $0x18] sm:$0xff] }
 0x904   :  { %5192 = vmatprep.subr.mxu0 %v1336_v46  ;;  %v1328_v9 = vsel %vm584_vm2, %v1326_v6, %v1313_v5 }
 0x905   :  { %v5532_v51 = vpop.eup %5531 }
 0x906   :  { %v1214_v58 = vmul.f32 %v5532_v51, %v5528_v38  ;;  %v4783_v38 = vld [vmem:[%s6664_s10] ss:$0 sm:$0xff]  ;;  %v1567_v51 = vld [vmem:[#allocation16 + $0x10] sm:$0xff] }
 0x909   :  { %v5534_v55 = vpop.eup %5533 }
 0x90a   :  { %v1213_v57 = vmul.f32 %v5534_v55, %v5530_v47  ;;  %v1566_v55 = vld [vmem:[#allocation16 + $0x8] sm:$0xff] }
 0x90c   :  { %5189 = vmatprep.mubr.msk.f32.mxu0 %vm584_vm2, %v1213_v57  ;;  %v1565_v57 = vld [vmem:[#allocation16] sm:$0xff] }
 0x90d   :  { %5190 = vmatmul.mubr.msk.f32.vlgmr.msra.gmra.mxu0 %vm584_vm2, %v1214_v58  ;;  %v4784_v58 = vld [vmem:[%s6666_s12] ss:$0 sm:$0xff] }
 0x90e   :  { %5193 = vmatpush3.msra.mxu0 %v1336_v46 }
 0x90f   :  { %5194 = vmatprep.subr.mxu0 %v1335_v59 }
 0x910   :  { %5195 = vmatpush3.msra.mxu0 %v1335_v59 }
 0x911   :  { %5196 = vmatprep.subr.mxu0 %v1334_v60 }
 0x912   :  { %5197 = vmatpush3.msra.mxu0 %v1334_v60 }
 0x913   :  { %5198 = vmatprep.subr.mxu0 %v1333_v61 }
 0x914   :  { %5199 = vmatpush3.msra.mxu0 %v1333_v61 }
 0x915   :  { %5214 = vmatprep.subr.mxu0 %v1568_v50 }
 0x9cd   :  { %v5191_v62 = vpop.f32.mrf.mxu0 }
 0x9ce   :  { %1322 = vrot.lane.b32.xlu1 %v5191_v62, %s5876_s27 }
 0x9cf   :  { %v1293_v63 = vpop.f32.mrf.mxu0 }
 0x9d0   :  { %1320 = vrot.lane.b32.xlu0 %v1293_v63, %s5876_s27 }
 0xa40   :  { %v1323_v7 = vpop.permute.xlu1 %1322 }
 0xa41   :  { %v1332_v42 = vsel %vm1330_vm3, %v1329_v11, %v1323_v7 }
 0xa42   :  { %v1321_v10 = vpop.permute.xlu0 %1320 }
 0xa43   :  { %v1331_v12 = vsel %vm1330_vm3, %v1328_v9, %v1321_v10 }
 0xa44   :  { %5200 = vmatprep.mubr.msk.f32.mxu0 %vm205_vm0, %v1331_v12 }
 0xa45   :  { %5201 = vmatmul.mubr.msk.f32.vlgmr.msra.gmra.mxu0 %vm205_vm0, %v1332_v42 }
 0xa46   :  { %5215 = vmatpush3.msra.mxu0 %v1568_v50 }
 0xa47   :  { %5216 = vmatprep.subr.mxu0 %v1567_v51 }
 0xa48   :  { %5217 = vmatpush3.msra.mxu0 %v1567_v51 }
 0xa49   :  { %5218 = vmatprep.subr.mxu0 %v1566_v55 }
 0xa4a   :  { %5219 = vmatpush3.msra.mxu0 %v1566_v55 }
 0xa4b   :  { %5220 = vmatprep.subr.mxu0 %v1565_v57 }
 0xa4c   :  { %5221 = vmatpush3.msra.mxu0 %v1565_v57 }
 0xb05   :  { %v5202_v43 = vpop.f32.mrf.mxu0 }
 0xb06   :  { %v1422_v44 = vadd.f32 %v5202_v43, %v4779_v54 }
 0xb07   :  { %v1416_v52 = vpop.f32.mrf.mxu0 }
 0xb08   :  { %v6206_v13 = vadd.f32 %v1422_v44, %v6039_v1  ;;  %v1417_v14 = vadd.f32 %v4779_v54, %v1416_v52 }
 0xb0a   :  { %v6209_v15 = vadd.f32 %v1417_v14, %v6037_v0  ;;  %v1432_v16 = vsel %vm205_vm0, %v6206_v13, 0.0 }
 0xb0b   :  { %1433 = vadd.xlane.f32.xlu1 %v1432_v16  ;;  %v1709_v16 = vld [vmem:[#allocation8 + $0x38] sm:$0xff] }
 0xb0c   :  { %v1429_v17 = vsel %vm205_vm0, %v6209_v15, 0.0  ;;  %5225 = vmatprep.subr.mxu1 %v1709_v16 }
 0xb0d   :  { %1430 = vadd.xlane.f32.xlu0 %v1429_v17  ;;  %v1795_v17 = vld [vmem:[#allocation10 + $0x38] sm:$0xff] }
 0xb0e   :  { %5236 = vmatprep.subr.mxu0 %v1795_v17 }
 0xb94   :  { %v1434_v18 = vpop.xlane.xlu1 %1433 }
 0xb95   :  { %v1436_v19 = vmul.f32 0.03125, %v1434_v18  ;;  %v1708_v18 = vld [vmem:[#allocation8 + $0x30] sm:$0xff] }
 0xb96   :  { %v1431_v45 = vpop.xlane.xlu0 %1430 }
 0xb97   :  { %v1435_v20 = vmul.f32 0.03125, %v1431_v45  ;;  %v1438_v21 = vsub.f32 %v6206_v13, %v1436_v19  ;;  %v1794_v19 = vld [vmem:[#allocation10 + $0x30] sm:$0xff]  ;;  %v1707_v45 = vld [vmem:[#allocation8 + $0x28] sm:$0xff] }
 0xb99   :  { %v1437_v1 = vsub.f32 %v6209_v15, %v1435_v20  ;;  %v1440_v23 = vmul.f32 %v1438_v21, %v1438_v21  ;;  %v1793_v20 = vld [vmem:[#allocation10 + $0x28] sm:$0xff] }
 0xb9b   :  { %v1439_v22 = vmul.f32 %v1437_v1, %v1437_v1  ;;  %v1444_v24 = vsel %vm205_vm0, %v1440_v23, 0.0 }
 0xb9d   :  { %v1441_v0 = vsel %vm205_vm0, %v1439_v22, 0.0  ;;  %v1875_v22 = vld [vmem:[#allocation11 + $0x38] sm:$0xff] }
 0xb9e   :  { %1442 = vadd.xlane.f32.xlu0 %v1441_v0 }
 0xba2   :  { %1445 = vadd.xlane.f32.xlu0 %v1444_v24 }
 0xc27   :  { %v1443_v29 = vpop.xlane.xlu0 %1442 }
 0xc28   :  { %v1447_v30 = vmul.f32 0.03125, %v1443_v29  ;;  %v4791_v29 = vld [vmem:[%s6682_s3 + $0x1] ss:$0 sm:$0xff] }
 0xc2a   :  { %v1449_v31 = vadd.f32 1e-05, %v1447_v30 }
 0xc2b   :  { %v1446_v32 = vpop.xlane.xlu0 %1445 }
 0xc2c   :  { %5535 = vrsqrt.f32 %v1449_v31  ;;  %v1448_v33 = vmul.f32 0.03125, %v1446_v32 }
 0xc2e   :  { %v1450_v34 = vadd.f32 1e-05, %v1448_v33 }
 0xc30   :  { %5537 = vrsqrt.f32 %v1450_v34  ;;  %v4792_v34 = vld [vmem:[#allocation7 + $0x1] ss:$0 sm:$0xff] }
 0xc39   :  { %v5536_v35 = vpop.eup %5535 }
 0xc3a   :  { %v1453_v37 = vmul.f32 %v5536_v35, %v1437_v1  ;;  %v1792_v1 = vld [vmem:[#allocation10 + $0x20] sm:$0xff] }
 0xc3c   :  { %v1461_v39 = vmul.f32 %v4782_v36, %v1453_v37 }
 0xc3d   :  { %v5538_v47 = vpop.eup %5537 }
 0xc3e   :  { %v1454_v40 = vmul.f32 %v5538_v47, %v1438_v21  ;;  %v1469_v41 = vadd.f32 %v4783_v38, %v1461_v39  ;;  %v1706_v21 = vld [vmem:[#allocation8 + $0x20] sm:$0xff]  ;;  %v1873_v39 = vld [vmem:[#allocation11 + $0x28] sm:$0xff] }
 0xc3f   :  { %v1872_v47 = vld [vmem:[#allocation11 + $0x20] sm:$0xff] }
 0xc40   :  { %v1462_v48 = vmul.f32 %v4782_v36, %v1454_v40  ;;  %5211 = vmatprep.mubr.msk.f32.mxu1 %vm205_vm0, %v1469_v41 }
 0xc42   :  { %v1470_v49 = vadd.f32 %v4783_v38, %v1462_v48  ;;  %v1874_v38 = vld [vmem:[#allocation11 + $0x30] sm:$0xff] }
 0xc44   :  { %5212 = vmatmul.mubr.msk.f32.vlgmr.msra.gmra.mxu1 %vm205_vm0, %v1470_v49 }
 0xc45   :  { %5226 = vmatpush3.msra.mxu1 %v1709_v16 }
 0xc46   :  { %5227 = vmatprep.subr.mxu1 %v1708_v18 }
 0xc47   :  { %5228 = vmatpush3.msra.mxu1 %v1708_v18 }
 0xc48   :  { %5229 = vmatprep.subr.mxu1 %v1707_v45 }
 0xc49   :  { %5230 = vmatpush3.msra.mxu1 %v1707_v45 }
 0xc4a   :  { %5231 = vmatprep.subr.mxu1 %v1706_v21 }
 0xc4b   :  { %5232 = vmatpush3.msra.mxu1 %v1706_v21 }
 0xc4c   :  { %5247 = vmatprep.subr.mxu1 %v1875_v22 }
 0xd04   :  { %v5213_v46 = vpop.f32.mrf.mxu1 }
 0xd05   :  { %v1560_v59 = vadd.f32 %v5213_v46, %v4784_v58 }
 0xd06   :  { %v1554_v60 = vpop.f32.mrf.mxu1 }
 0xd07   :  { %v1555_v61 = vadd.f32 %v4784_v58, %v1554_v60  ;;  %v1564_v63 = vmax.f32 %v1560_v59, 0.0 }
 0xd09   :  { %v1563_v62 = vmax.f32 %v1555_v61, 0.0 }
 0xd0b   :  { %5222 = vmatprep.mubr.msk.f32.mxu0 %vm205_vm0, %v1563_v62 }
 0xd0c   :  { %5223 = vmatmul.mubr.msk.f32.vlgmr.msra.gmra.mxu0 %vm205_vm0, %v1564_v63 }
 0xd0d   :  { %5237 = vmatpush3.msra.mxu0 %v1795_v17 }
 0xd0e   :  { %5238 = vmatprep.subr.mxu0 %v1794_v19 }
 0xd0f   :  { %5239 = vmatpush3.msra.mxu0 %v1794_v19 }
 0xd10   :  { %5240 = vmatprep.subr.mxu0 %v1793_v20 }
 0xd11   :  { %5241 = vmatpush3.msra.mxu0 %v1793_v20 }
 0xd12   :  { %5242 = vmatprep.subr.mxu0 %v1792_v1 }
 0xd13   :  { %5243 = vmatpush3.msra.mxu0 %v1792_v1 }
 0xdcc   :  { %v5224_v3 = vpop.f32.mrf.mxu0 }
 0xdcd   :  { %v1654_v4 = vadd.f32 %v5224_v3, %v4787_v2 }
 0xdce   :  { %v1648_v5 = vpop.f32.mrf.mxu0 }
 0xdcf   :  { %v6236_v6 = vadd.f32 %v1654_v4, %v6206_v13  ;;  %v1649_v7 = vadd.f32 %v4787_v2, %v1648_v5 }
 0xdd1   :  { %v6239_v8 = vadd.f32 %v1649_v7, %v6209_v15  ;;  %v1666_v9 = vsel %vm205_vm0, %v6236_v6, 0.0 }
 0xdd2   :  { %1667 = vadd.xlane.f32.xlu1 %v1666_v9 }
 0xdd3   :  { %v1663_v10 = vsel %vm205_vm0, %v6239_v8, 0.0 }
 0xdd4   :  { %1664 = vadd.xlane.f32.xlu0 %v1663_v10 }
 0xe5b   :  { %v1668_v11 = vpop.xlane.xlu1 %1667 }
 0xe5c   :  { %v1670_v12 = vmul.f32 0.03125, %v1668_v11 }
 0xe5d   :  { %v1665_v42 = vpop.xlane.xlu0 %1664 }
 0xe5e   :  { %v1672_v54 = vsub.f32 %v6236_v6, %v1670_v12  ;;  %v1669_v43 = vmul.f32 0.03125, %v1665_v42 }
 0xe60   :  { %v1671_v44 = vsub.f32 %v6239_v8, %v1669_v43  ;;  %v1674_v52 = vmul.f32 %v1672_v54, %v1672_v54 }
 0xe62   :  { %v1678_v13 = vsel %vm205_vm0, %v1674_v52, 0.0  ;;  %v1673_v14 = vmul.f32 %v1671_v44, %v1671_v44 }
 0xe63   :  { %1679 = vadd.xlane.f32.xlu1 %v1678_v13 }
 0xe64   :  { %v1675_v15 = vsel %vm205_vm0, %v1673_v14, 0.0 }
 0xe65   :  { %1676 = vadd.xlane.f32.xlu0 %v1675_v15 }
 0xeec   :  { %v1680_v0 = vpop.xlane.xlu1 %1679 }
 0xeed   :  { %v1682_v23 = vmul.f32 0.03125, %v1680_v0 }
 0xeee   :  { %v1677_v24 = vpop.xlane.xlu0 %1676 }
 0xeef   :  { %v1684_v25 = vadd.f32 1e-05, %v1682_v23  ;;  %v1681_v26 = vmul.f32 0.03125, %v1677_v24 }
 0xef1   :  { %5539 = vrsqrt.f32 %v1684_v25  ;;  %v1683_v27 = vadd.f32 1e-05, %v1681_v26 }
 0xef3   :  { %5541 = vrsqrt.f32 %v1683_v27 }
 0xefe   :  { %v5540_v28 = vpop.eup %5539 }
 0xeff   :  { %v1688_v30 = vmul.f32 %v5540_v28, %v1672_v54 }
 0xf00   :  { %v5542_v31 = vpop.eup %5541 }
 0xf01   :  { %v1687_v32 = vmul.f32 %v5542_v31, %v1671_v44  ;;  %v1696_v33 = vmul.f32 %v4791_v29, %v1688_v30 }
 0xf03   :  { %v1695_v35 = vmul.f32 %v4791_v29, %v1687_v32  ;;  %v1704_v37 = vadd.f32 %v4792_v34, %v1696_v33 }
 0xf05   :  { %v1703_v36 = vadd.f32 %v4792_v34, %v1695_v35 }
 0xf07   :  { %5233 = vmatprep.mubr.msk.f32.mxu1 %vm205_vm0, %v1703_v36  ;;  %5244 = vmatprep.mubr.msk.f32.mxu0 %vm205_vm0, %v1703_v36 }
 0xf08   :  { %5234 = vmatmul.mubr.msk.f32.vlgmr.msra.gmra.mxu1 %vm205_vm0, %v1704_v37  ;;  %5245 = vmatmul.mubr.msk.f32.vlgmr.msra.gmra.mxu0 %vm205_vm0, %v1704_v37 }
 0xf09   :  { %5248 = vmatpush3.msra.mxu1 %v1875_v22  ;;  %5255 = vmatprep.mubr.msk.f32.mxu1 %vm205_vm0, %v1703_v36 }
 0xf0a   :  { %5249 = vmatprep.subr.mxu1 %v1874_v38 }
 0xf0b   :  { %5250 = vmatpush3.msra.mxu1 %v1874_v38 }
 0xf0c   :  { %5251 = vmatprep.subr.mxu1 %v1873_v39 }
 0xf0d   :  { %5252 = vmatpush3.msra.mxu1 %v1873_v39 }
 0xf0e   :  { %5253 = vmatprep.subr.mxu1 %v1872_v47 }
 0xf0f   :  { %5254 = vmatpush3.msra.mxu1 %v1872_v47 }
 0xf10   :  { %5256 = vmatmul.mubr.msk.f32.vlgmr.msra.gmra.mxu1 %vm205_vm0, %v1704_v37 }
 0xfc8   :  { %v6258_v40 = vpop.f32.mrf.mxu1  ;;  %v6260_v41 = vpop.f32.mrf.mxu0 }
 0xfc9   :  { %5258 = vmatprep.subr.msk.mxu0 %vm492_vm1, %v6258_v40 }
 0xfca   :  { %v6264_v48 = vpop.f32.mrf.mxu1  ;;  %v6266_v49 = vpop.f32.mrf.mxu0  ;;  %5259 = vmatpush3.xpose.msk.msra.mxu0 %vm492_vm1, %v6258_v40 }
 0xfcb   :  { %5260 = vmatprep.subr.msk.mxu0 %vm492_vm1, %v6264_v48  ;;  %5262 = vmatprep.mubr.msk.f32.mxu0 %vm492_vm1, %v6266_v49 }
 0xfce   :  { %5261 = vmatpush3.xpose.msk.msra.mxu0 %vm492_vm1, %v6264_v48 }
 0xfd0   :  { %v6276_v50 = vpop.f32.mrf.mxu1 }
 0xfd1   :  { %5265 = vmatprep.subr.mxu1 %v6276_v50  ;;  %5263 = vmatmul.mubr.msk.f32.vlgmr.msra.gmra.mxu0 %vm492_vm1, %v6260_v41 }
 0xfd2   :  { %v6281_v51 = vpop.f32.mrf.mxu1  ;;  %5266 = vmatpush3.msra.mxu1 %v6276_v50 }
 0xfd3   :  { %5267 = vmatprep.subr.mxu1 %v6281_v51 }
 0xfd4   :  { %5268 = vmatpush3.msra.mxu1 %v6281_v51 }
0x1091   :  { %v5264_v55 = vpop.f32.mrf.mxu0 }
0x1092   :  { %v2039_v57 = vmul.f32 0.17677669, %v5264_v55 }
0x1093   :  { %v2029_v58 = vpop.f32.mrf.mxu0 }
0x1094   :  { %v2038_v46 = vmul.f32 0.17677669, %v2029_v58  ;;  %v2041_v59 = vadd.f32 %v2039_v57, %v6100_v53 }
0x1096   :  { %v2045_v60 = vsel %vm584_vm2, %v2041_v59, -inf  ;;  %v2040_v61 = vadd.f32 %v2038_v46, %v6102_v56 }
0x1097   :  { %2046 = vmax.xlane.f32.xlu1 %v2045_v60 }
0x1098   :  { %v2042_v62 = vsel %vm584_vm2, %v2040_v61, -inf }
0x1099   :  { %2043 = vmax.xlane.f32.xlu0 %v2042_v62 }
0x1120   :  { %v2047_v63 = vpop.xlane.xlu1 %2046 }
0x1121   :  { %v2049_v2 = vsub.f32 %v2041_v59, %v2047_v63 }
0x1122   :  { %v2044_v3 = vpop.xlane.xlu0 %2043 }
0x1123   :  { %v2052_v4 = vmul.f32 1.442695, %v2049_v2  ;;  %v2048_v5 = vsub.f32 %v2040_v61, %v2044_v3  ;;  %v6342_v3 = vld [vmem:[#allocation5 + $0x8] sm:$0xff] }
0x1125   :  { %5543 = vpow2.f32 %v2052_v4  ;;  %v2050_v7 = vmul.f32 1.442695, %v2048_v5 }
0x1127   :  { %5545 = vpow2.f32 %v2050_v7  ;;  %v6346_v7 = vld [vmem:[#allocation5] sm:$0xff] }
0x1132   :  { %v5544_v9 = vpop.eup %5543 }
0x1133   :  { %v2057_v10 = vsel %vm584_vm2, %v5544_v9, 0.0 }
0x1134   :  { %v5546_v11 = vpop.eup %5545  ;;  %2058 = vadd.xlane.f32.xlu1 %v2057_v10 }
0x1135   :  { %v2054_v12 = vsel %vm584_vm2, %v5546_v11, 0.0 }
0x1136   :  { %2055 = vadd.xlane.f32.xlu0 %v2054_v12 }
0x1145   :  { %2149 = vrot.lane.b32.xlu1 %v6264_v48, %s5873_s6 }
0x1149   :  { %2145 = vrot.lane.b32.xlu1 %v6266_v49, %s5873_s6 }
0x114c   :  { %2151 = vrot.lane.b32.xlu0 %v6258_v40, %s5873_s6 }
0x114d   :  { %2147 = vrot.lane.b32.xlu1 %v6260_v41, %s5873_s6 }
0x11bd   :  { %v2059_v42 = vpop.xlane.xlu1 %2058 }
0x11be   :  { %5547 = vrcp.f32 %v2059_v42 }
0x11bf   :  { %v2056_v54 = vpop.xlane.xlu0 %2055 }
0x11c0   :  { %5549 = vrcp.f32 %v2056_v54 }
0x11c1   :  { %v2150_v44 = vpop.permute.xlu1 %2149 }
0x11c3   :  { %v2152_v43 = vpop.permute.xlu0 %2151 }
0x11c4   :  { %5272 = vmatprep.subr.msk.mxu1 %vm492_vm1, %v2152_v43 }
0x11c5   :  { %v2146_v16 = vpop.permute.xlu1 %2145 }
0x11c9   :  { %v2148_v17 = vpop.permute.xlu1 %2147 }
0x11cb   :  { %v5548_v52 = vpop.eup %5547 }
0x11cc   :  { %v2063_v15 = vmul.f32 %v5548_v52, %v5544_v9 }
0x11cd   :  { %v5550_v13 = vpop.eup %5549 }
0x11ce   :  { %v2062_v14 = vmul.f32 %v5550_v13, %v5546_v11 }
0x11d0   :  { %5269 = vmatprep.mubr.msk.f32.mxu1 %vm584_vm2, %v2062_v14 }
0x11d1   :  { %5270 = vmatmul.mubr.msk.f32.vlgmr.msra.gmra.mxu1 %vm584_vm2, %v2063_v15 }
0x11d2   :  { %5273 = vmatpush3.xpose.msk.msra.mxu1 %vm492_vm1, %v2152_v43  ;;  %5276 = vmatprep.mubr.msk.f32.mxu1 %vm492_vm1, %v2146_v16 }
0x11d3   :  { %5274 = vmatprep.subr.msk.mxu1 %vm492_vm1, %v2150_v44 }
0x11d6   :  { %5275 = vmatpush3.xpose.msk.msra.mxu1 %vm492_vm1, %v2150_v44 }
0x11d9   :  { %5277 = vmatmul.mubr.msk.f32.vlgmr.msra.gmra.mxu1 %vm492_vm1, %v2148_v17 }
0x1291   :  { %v6308_v18 = vpop.f32.mrf.mxu1 }
0x1293   :  { %v6310_v19 = vpop.f32.mrf.mxu1 }
0x1299   :  { %v5278_v45 = vpop.f32.mrf.mxu1 }
0x129a   :  { %v2237_v20 = vmul.f32 0.17677669, %v5278_v45 }
0x129b   :  { %v2227_v21 = vpop.f32.mrf.mxu1 }
0x129c   :  { %v2236_v1 = vmul.f32 0.17677669, %v2227_v21  ;;  %v2239_v22 = vadd.f32 %v2237_v20, %v6100_v53 }
0x129e   :  { %v2243_v0 = vsel %vm584_vm2, %v2239_v22, -inf  ;;  %v2238_v23 = vadd.f32 %v2236_v1, %v6102_v56 }
0x129f   :  { %2244 = vmax.xlane.f32.xlu1 %v2243_v0 }
0x12a0   :  { %v2240_v24 = vsel %vm584_vm2, %v2238_v23, -inf }
0x12a1   :  { %2241 = vmax.xlane.f32.xlu0 %v2240_v24 }
0x12b0   :  { %2264 = vrot.lane.b32.xlu1 %v6281_v51, %s5873_s6 }
0x12b4   :  { %2357 = vrot.lane.b32.xlu1 %v6258_v40, %s5874_s28 }
0x12b8   :  { %2355 = vrot.lane.b32.xlu1 %v6264_v48, %s5874_s28 }
0x12bc   :  { %2353 = vrot.lane.b32.xlu1 %v6260_v41, %s5874_s28 }
0x1328   :  { %v2245_v53 = vpop.xlane.xlu1 %2244 }
0x1329   :  { %v2247_v25 = vsub.f32 %v2239_v22, %v2245_v53 }
0x132a   :  { %v2242_v26 = vpop.xlane.xlu0 %2241 }
0x132b   :  { %v2250_v56 = vmul.f32 1.442695, %v2247_v25  ;;  %v2246_v27 = vsub.f32 %v2238_v23, %v2242_v26 }
0x132c   :  { %v2265_v35 = vpop.permute.xlu1 %2264 }
0x132d   :  { %5551 = vpow2.f32 %v2250_v56  ;;  %v2248_v28 = vmul.f32 1.442695, %v2246_v27 }
0x132f   :  { %5553 = vpow2.f32 %v2248_v28 }
0x1330   :  { %v2358_v37 = vpop.permute.xlu1 %2357 }
0x1334   :  { %v2356_v58 = vpop.permute.xlu1 %2355 }
0x1338   :  { %v2354_v46 = vpop.permute.xlu1 %2353 }
0x133a   :  { %v5552_v29 = vpop.eup %5551 }
0x133b   :  { %v2255_v30 = vsel %vm584_vm2, %v5552_v29, 0.0 }
0x133c   :  { %v5554_v31 = vpop.eup %5553  ;;  %2256 = vadd.xlane.f32.xlu0 %v2255_v30 }
0x133d   :  { %v2252_v32 = vsel %vm584_vm2, %v5554_v31, 0.0 }
0x1340   :  { %2253 = vadd.xlane.f32.xlu0 %v2252_v32 }
0x1356   :  { %2266 = vrot.lane.b32.xlu0 %v6276_v50, %s5873_s6 }
0x135a   :  { %2351 = vrot.lane.b32.xlu0 %v6266_v49, %s5874_s28 }
0x13c5   :  { %v2257_v33 = vpop.xlane.xlu0 %2256 }
0x13c6   :  { %5555 = vrcp.f32 %v2257_v33 }
0x13c9   :  { %v2254_v34 = vpop.xlane.xlu0 %2253 }
0x13ca   :  { %5557 = vrcp.f32 %v2254_v34 }
0x13cd   :  { %v2267_v36 = vpop.permute.xlu0 %2266 }
0x13ce   :  { %5279 = vmatprep.subr.mxu0 %v2267_v36 }
0x13cf   :  { %5280 = vmatpush3.msra.mxu0 %v2267_v36 }
0x13d0   :  { %5281 = vmatprep.subr.mxu0 %v2265_v35 }
0x13d1   :  { %5282 = vmatpush3.msra.mxu0 %v2265_v35  ;;  %v2352_v57 = vpop.permute.xlu0 %2351 }
0x13d2   :  { %5286 = vmatprep.subr.msk.mxu0 %vm492_vm1, %v2358_v37 }
0x13d3   :  { %v5556_v38 = vpop.eup %5555 }
0x13d4   :  { %v2261_v55 = vmul.f32 %v5556_v38, %v5552_v29 }
0x13d7   :  { %v5558_v39 = vpop.eup %5557 }
0x13d8   :  { %v2260_v47 = vmul.f32 %v5558_v39, %v5554_v31 }
0x13da   :  { %5283 = vmatprep.mubr.msk.f32.mxu0 %vm584_vm2, %v2260_v47 }
0x13db   :  { %5284 = vmatmul.mubr.msk.f32.vlgmr.msra.gmra.mxu0 %vm584_vm2, %v2261_v55 }
0x13dc   :  { %5287 = vmatpush3.xpose.msk.msra.mxu0 %vm492_vm1, %v2358_v37  ;;  %5290 = vmatprep.mubr.msk.f32.mxu0 %vm492_vm1, %v2352_v57 }
0x13dd   :  { %5288 = vmatprep.subr.msk.mxu0 %vm492_vm1, %v2356_v58 }
0x13e0   :  { %5289 = vmatpush3.xpose.msk.msra.mxu0 %vm492_vm1, %v2356_v58 }
0x13e3   :  { %5291 = vmatmul.mubr.msk.f32.vlgmr.msra.gmra.mxu0 %vm492_vm1, %v2354_v46 }
0x149b   :  { %v6338_v59 = vpop.f32.mrf.mxu0 }
0x149d   :  { %v6340_v60 = vpop.f32.mrf.mxu0 }
0x14a3   :  { %v5292_v61 = vpop.f32.mrf.mxu0 }
0x14a4   :  { %v2443_v62 = vmul.f32 0.17677669, %v5292_v61 }
0x14a5   :  { %v2433_v63 = vpop.f32.mrf.mxu0 }
0x14a6   :  { %v2442_v2 = vmul.f32 0.17677669, %v2433_v63  ;;  %v2445_v4 = vadd.f32 %v6342_v3, %v2443_v62  ;;  %v2792_v62 = vld [vmem:[#allocation13 + $0x30] sm:$0xff]  ;;  %v2791_v63 = vld [vmem:[#allocation13 + $0x28] sm:$0xff] }
0x14a8   :  { %v2449_v5 = vsel %vm584_vm2, %v2445_v4, -inf  ;;  %v2444_v9 = vadd.f32 %v6346_v7, %v2442_v2  ;;  %v2790_v2 = vld [vmem:[#allocation13 + $0x20] sm:$0xff] }
0x14a9   :  { %2450 = vmax.xlane.f32.xlu1 %v2449_v5 }
0x14aa   :  { %v2446_v10 = vsel %vm584_vm2, %v2444_v9, -inf }
0x14ab   :  { %2447 = vmax.xlane.f32.xlu0 %v2446_v10 }
0x14ba   :  { %2468 = vrot.lane.b32.xlu1 %v6281_v51, %s5874_s28 }
0x14be   :  { %2561 = vrot.lane.b32.xlu1 %v6258_v40, %s5875_s29 }
0x14c2   :  { %2559 = vrot.lane.b32.xlu1 %v6264_v48, %s5875_s29 }
0x14c6   :  { %2557 = vrot.lane.b32.xlu1 %v6260_v41, %s5875_s29 }
0x1532   :  { %v2451_v11 = vpop.xlane.xlu1 %2450 }
0x1533   :  { %v2453_v12 = vsub.f32 %v2445_v4, %v2451_v11 }
0x1534   :  { %v2448_v42 = vpop.xlane.xlu0 %2447 }
0x1535   :  { %v2456_v54 = vmul.f32 1.442695, %v2453_v12  ;;  %v2452_v43 = vsub.f32 %v2444_v9, %v2448_v42 }
0x1536   :  { %v2469_v15 = vpop.permute.xlu1 %2468 }
0x1537   :  { %5559 = vpow2.f32 %v2456_v54  ;;  %v2454_v44 = vmul.f32 1.442695, %v2452_v43 }
0x1539   :  { %5561 = vpow2.f32 %v2454_v44 }
0x153a   :  { %v2562_v17 = vpop.permute.xlu1 %2561 }
0x153e   :  { %v2560_v22 = vpop.permute.xlu1 %2559 }
0x1542   :  { %v2558_v0 = vpop.permute.xlu1 %2557 }
0x1544   :  { %v5560_v52 = vpop.eup %5559 }
0x1545   :  { %v2461_v13 = vsel %vm584_vm2, %v5560_v52, 0.0 }
0x1546   :  { %v5562_v14 = vpop.eup %5561  ;;  %2462 = vadd.xlane.f32.xlu0 %v2461_v13 }
0x1547   :  { %v2458_v40 = vsel %vm584_vm2, %v5562_v14, 0.0 }
0x154a   :  { %2459 = vadd.xlane.f32.xlu0 %v2458_v40 }
0x1560   :  { %2470 = vrot.lane.b32.xlu0 %v6276_v50, %s5874_s28 }
0x1564   :  { %2555 = vrot.lane.b32.xlu0 %v6266_v49, %s5875_s29 }
0x15cf   :  { %v2463_v41 = vpop.xlane.xlu0 %2462 }
0x15d0   :  { %5563 = vrcp.f32 %v2463_v41 }
0x15d3   :  { %v2460_v48 = vpop.xlane.xlu0 %2459 }
0x15d4   :  { %5565 = vrcp.f32 %v2460_v48 }
0x15d7   :  { %v2471_v16 = vpop.permute.xlu0 %2470 }
0x15d8   :  { %5293 = vmatprep.subr.mxu1 %v2471_v16 }
0x15d9   :  { %5294 = vmatpush3.msra.mxu1 %v2471_v16 }
0x15da   :  { %5295 = vmatprep.subr.mxu1 %v2469_v15 }
0x15db   :  { %5296 = vmatpush3.msra.mxu1 %v2469_v15  ;;  %v2556_v49 = vpop.permute.xlu0 %2555 }
0x15dc   :  { %5300 = vmatprep.subr.msk.mxu1 %vm492_vm1, %v2562_v17 }
0x15dd   :  { %v5564_v45 = vpop.eup %5563 }
0x15de   :  { %v2467_v1 = vmul.f32 %v5564_v45, %v5560_v52 }
0x15e1   :  { %v5566_v20 = vpop.eup %5565 }
0x15e2   :  { %v2466_v21 = vmul.f32 %v5566_v20, %v5562_v14 }
0x15e4   :  { %5297 = vmatprep.mubr.msk.f32.mxu1 %vm584_vm2, %v2466_v21 }
0x15e5   :  { %5298 = vmatmul.mubr.msk.f32.vlgmr.msra.gmra.mxu1 %vm584_vm2, %v2467_v1 }
0x15e6   :  { %5301 = vmatpush3.xpose.msk.msra.mxu1 %vm492_vm1, %v2562_v17  ;;  %5304 = vmatprep.mubr.msk.f32.mxu1 %vm492_vm1, %v2556_v49 }
0x15e7   :  { %5302 = vmatprep.subr.msk.mxu1 %vm492_vm1, %v2560_v22 }
0x15ea   :  { %5303 = vmatpush3.xpose.msk.msra.mxu1 %vm492_vm1, %v2560_v22 }
0x15ed   :  { %5305 = vmatmul.mubr.msk.f32.vlgmr.msra.gmra.mxu1 %vm492_vm1, %v2558_v0 }
0x16a5   :  { %v5299_v23 = vpop.f32.mrf.mxu1 }
0x16a7   :  { %v2546_v24 = vpop.f32.mrf.mxu1 }
0x16ad   :  { %v5306_v53 = vpop.f32.mrf.mxu1 }
0x16ae   :  { %v2647_v25 = vmul.f32 0.17677669, %v5306_v53 }
0x16af   :  { %v2637_v26 = vpop.f32.mrf.mxu1 }
0x16b0   :  { %v2646_v56 = vmul.f32 0.17677669, %v2637_v26  ;;  %v2649_v27 = vadd.f32 %v6342_v3, %v2647_v25  ;;  %v2935_v25 = vld [vmem:[#allocation14 + $0x38] sm:$0xff]  ;;  %v2934_v26 = vld [vmem:[#allocation14 + $0x30] sm:$0xff] }
0x16b1   :  { %5325 = vmatprep.subr.mxu1 %v2935_v25 }
0x16b2   :  { %v2653_v28 = vsel %vm584_vm2, %v2649_v27, -inf  ;;  %v2648_v29 = vadd.f32 %v6346_v7, %v2646_v56  ;;  %5326 = vmatpush3.msra.mxu1 %v2935_v25  ;;  %v2933_v56 = vld [vmem:[#allocation14 + $0x28] sm:$0xff] }
0x16b3   :  { %2654 = vmax.xlane.f32.xlu1 %v2653_v28  ;;  %5327 = vmatprep.subr.mxu1 %v2934_v26 }
0x16b4   :  { %v2650_v30 = vsel %vm584_vm2, %v2648_v29, -inf  ;;  %5328 = vmatpush3.msra.mxu1 %v2934_v26 }
0x16b5   :  { %2651 = vmax.xlane.f32.xlu0 %v2650_v30  ;;  %5329 = vmatprep.subr.mxu1 %v2933_v56 }
0x16b6   :  { %5330 = vmatpush3.msra.mxu1 %v2933_v56 }
0x16c4   :  { %2672 = vrot.lane.b32.xlu1 %v6281_v51, %s5875_s29 }
0x16c8   :  { %2761 = vrot.lane.b32.xlu1 %v6340_v60, %s5862_s2 }
0x16cc   :  { %2763 = vrot.lane.b32.xlu1 %v6338_v59, %s5862_s2 }
0x16d0   :  { %2771 = vrot.lane.b32.xlu1 %v5299_v23, %s5867_s30 }
0x173c   :  { %v2655_v31 = vpop.xlane.xlu1 %2654 }
0x173d   :  { %v2657_v32 = vsub.f32 %v2649_v27, %v2655_v31  ;;  %v2932_v27 = vld [vmem:[#allocation14 + $0x20] sm:$0xff] }
0x173e   :  { %v2652_v33 = vpop.xlane.xlu0 %2651  ;;  %5331 = vmatprep.subr.mxu1 %v2932_v27 }
0x173f   :  { %v2660_v34 = vmul.f32 1.442695, %v2657_v32  ;;  %v2656_v35 = vsub.f32 %v2648_v29, %v2652_v33  ;;  %5332 = vmatpush3.msra.mxu1 %v2932_v27 }
0x1740   :  { %v2673_v58 = vpop.permute.xlu1 %2672 }
0x1741   :  { %5567 = vpow2.f32 %v2660_v34  ;;  %v2658_v36 = vmul.f32 1.442695, %v2656_v35  ;;  %v4829_v35 = vld [vmem:[%s6663_s9 + $0x1] ss:$0 sm:$0xff] }
0x1743   :  { %5569 = vpow2.f32 %v2658_v36 }
0x1744   :  { %v2762_v9 = vpop.permute.xlu1 %2761 }
0x1745   :  { %v2783_v42 = vsel %vm492_vm1, %v6310_v19, %v2762_v9  ;;  %v4824_v19 = vld [vmem:[%s6662_s8 + $0x1] ss:$0 sm:$0xff] }
0x1746   :  { %v4836_v9 = vld [vmem:[%s6668_s14 + $0x1] ss:$0 sm:$0xff] }
0x1748   :  { %v2764_v10 = vpop.permute.xlu1 %2763 }
0x1749   :  { %v2784_v43 = vsel %vm492_vm1, %v6308_v18, %v2764_v10 }
0x174c   :  { %v2772_v11 = vpop.permute.xlu1 %2771 }
0x174d   :  { %v2786_v13 = vsel %vm584_vm2, %v2784_v43, %v2772_v11 }
0x174e   :  { %v5568_v37 = vpop.eup %5567 }
0x174f   :  { %v2665_v38 = vsel %vm584_vm2, %v5568_v37, 0.0 }
0x1750   :  { %v5570_v51 = vpop.eup %5569  ;;  %2666 = vadd.xlane.f32.xlu0 %v2665_v38 }
0x1751   :  { %v2662_v39 = vsel %vm584_vm2, %v5570_v51, 0.0 }
0x1754   :  { %2663 = vadd.xlane.f32.xlu0 %v2662_v39 }
0x176a   :  { %2674 = vrot.lane.b32.xlu0 %v6276_v50, %s5875_s29  ;;  %v2793_v50 = vld [vmem:[#allocation13 + $0x38] sm:$0xff] }
0x176e   :  { %2769 = vrot.lane.b32.xlu0 %v2546_v24, %s5867_s30 }
0x17d9   :  { %v2667_v47 = vpop.xlane.xlu0 %2666 }
0x17da   :  { %5571 = vrcp.f32 %v2667_v47 }
0x17dd   :  { %v2664_v55 = vpop.xlane.xlu0 %2663 }
0x17de   :  { %5573 = vrcp.f32 %v2664_v55 }
0x17e1   :  { %v2675_v57 = vpop.permute.xlu0 %2674 }
0x17e2   :  { %5307 = vmatprep.subr.mxu0 %v2675_v57 }
0x17e3   :  { %5308 = vmatpush3.msra.mxu0 %v2675_v57 }
0x17e4   :  { %5309 = vmatprep.subr.mxu0 %v2673_v58 }
0x17e5   :  { %5310 = vmatpush3.msra.mxu0 %v2673_v58  ;;  %v2770_v12 = vpop.permute.xlu0 %2769  ;;  %v3031_v58 = vld [vmem:[#allocation16 + $0x38] sm:$0xff] }
0x17e6   :  { %5314 = vmatprep.subr.mxu0 %v2793_v50  ;;  %v2785_v44 = vsel %vm584_vm2, %v2783_v42, %v2770_v12 }
0x17e7   :  { %v5572_v46 = vpop.eup %5571 }
0x17e8   :  { %v2671_v61 = vmul.f32 %v5572_v46, %v5568_v37  ;;  %v4830_v37 = vld [vmem:[%s6664_s10 + $0x1] ss:$0 sm:$0xff]  ;;  %v3030_v46 = vld [vmem:[#allocation16 + $0x30] sm:$0xff] }
0x17eb   :  { %v5574_v59 = vpop.eup %5573 }
0x17ec   :  { %v2670_v60 = vmul.f32 %v5574_v59, %v5570_v51  ;;  %v3029_v59 = vld [vmem:[#allocation16 + $0x28] sm:$0xff] }
0x17ee   :  { %5311 = vmatprep.mubr.msk.f32.mxu0 %vm584_vm2, %v2670_v60  ;;  %v3028_v60 = vld [vmem:[#allocation16 + $0x20] sm:$0xff] }
0x17ef   :  { %5312 = vmatmul.mubr.msk.f32.vlgmr.msra.gmra.mxu0 %vm584_vm2, %v2671_v61  ;;  %v4832_v61 = vld [vmem:[%s6666_s12 + $0x1] ss:$0 sm:$0xff] }
0x17f0   :  { %5315 = vmatpush3.msra.mxu0 %v2793_v50 }
0x17f1   :  { %5316 = vmatprep.subr.mxu0 %v2792_v62 }
0x17f2   :  { %5317 = vmatpush3.msra.mxu0 %v2792_v62 }
0x17f3   :  { %5318 = vmatprep.subr.mxu0 %v2791_v63 }
0x17f4   :  { %5319 = vmatpush3.msra.mxu0 %v2791_v63 }
0x17f5   :  { %5320 = vmatprep.subr.mxu0 %v2790_v2 }
0x17f6   :  { %5321 = vmatpush3.msra.mxu0 %v2790_v2 }
0x17f7   :  { %5336 = vmatprep.subr.mxu0 %v3031_v58 }
0x18af   :  { %v5313_v4 = vpop.f32.mrf.mxu0 }
0x18b0   :  { %2779 = vrot.lane.b32.xlu1 %v5313_v4, %s5876_s27 }
0x18b1   :  { %v2750_v5 = vpop.f32.mrf.mxu0 }
0x18b2   :  { %2777 = vrot.lane.b32.xlu0 %v2750_v5, %s5876_s27 }
0x1922   :  { %v2780_v54 = vpop.permute.xlu1 %2779 }
0x1923   :  { %v2788_v40 = vsel %vm1330_vm3, %v2786_v13, %v2780_v54 }
0x1924   :  { %v2778_v52 = vpop.permute.xlu0 %2777 }
0x1925   :  { %v2787_v14 = vsel %vm1330_vm3, %v2785_v44, %v2778_v52 }
0x1926   :  { %5322 = vmatprep.mubr.msk.f32.mxu0 %vm205_vm0, %v2787_v14 }
0x1927   :  { %5323 = vmatmul.mubr.msk.f32.vlgmr.msra.gmra.mxu0 %vm205_vm0, %v2788_v40 }
0x1928   :  { %5337 = vmatpush3.msra.mxu0 %v3031_v58 }
0x1929   :  { %5338 = vmatprep.subr.mxu0 %v3030_v46 }
0x192a   :  { %5339 = vmatpush3.msra.mxu0 %v3030_v46 }
0x192b   :  { %5340 = vmatprep.subr.mxu0 %v3029_v59 }
0x192c   :  { %5341 = vmatpush3.msra.mxu0 %v3029_v59 }
0x192d   :  { %5342 = vmatprep.subr.mxu0 %v3028_v60 }
0x192e   :  { %5343 = vmatpush3.msra.mxu0 %v3028_v60 }
0x19e7   :  { %v5324_v41 = vpop.f32.mrf.mxu0 }
0x19e8   :  { %v2880_v48 = vadd.f32 %v5324_v41, %v4824_v19 }
0x19e9   :  { %v2874_v18 = vpop.f32.mrf.mxu0 }
0x19ea   :  { %v6406_v15 = vadd.f32 %v2880_v48, %v6236_v6  ;;  %v2875_v16 = vadd.f32 %v4824_v19, %v2874_v18 }
0x19ec   :  { %v6409_v17 = vadd.f32 %v2875_v16, %v6239_v8  ;;  %v2892_v45 = vsel %vm205_vm0, %v6406_v15, 0.0 }
0x19ed   :  { %2893 = vadd.xlane.f32.xlu1 %v2892_v45  ;;  %v3173_v45 = vld [vmem:[#allocation8 + $0x58] sm:$0xff] }
0x19ee   :  { %v2889_v20 = vsel %vm205_vm0, %v6409_v17, 0.0  ;;  %5347 = vmatprep.subr.mxu1 %v3173_v45 }
0x19ef   :  { %2890 = vadd.xlane.f32.xlu0 %v2889_v20  ;;  %v3259_v20 = vld [vmem:[#allocation10 + $0x58] sm:$0xff] }
0x19f0   :  { %5358 = vmatprep.subr.mxu0 %v3259_v20 }
0x1a76   :  { %v2894_v21 = vpop.xlane.xlu1 %2893 }
0x1a77   :  { %v2896_v1 = vmul.f32 0.03125, %v2894_v21  ;;  %v3172_v21 = vld [vmem:[#allocation8 + $0x50] sm:$0xff] }
0x1a78   :  { %v2891_v49 = vpop.xlane.xlu0 %2890 }
0x1a79   :  { %v2895_v22 = vmul.f32 0.03125, %v2891_v49  ;;  %v2898_v0 = vsub.f32 %v6406_v15, %v2896_v1  ;;  %v3258_v1 = vld [vmem:[#allocation10 + $0x50] sm:$0xff]  ;;  %v3171_v49 = vld [vmem:[#allocation8 + $0x48] sm:$0xff] }
0x1a7b   :  { %v2897_v6 = vsub.f32 %v6409_v17, %v2895_v22  ;;  %v2900_v24 = vmul.f32 %v2898_v0, %v2898_v0  ;;  %v3257_v22 = vld [vmem:[#allocation10 + $0x48] sm:$0xff] }
0x1a7d   :  { %v2899_v23 = vmul.f32 %v2897_v6, %v2897_v6  ;;  %v2904_v53 = vsel %vm205_vm0, %v2900_v24, 0.0 }
0x1a7f   :  { %v2901_v8 = vsel %vm205_vm0, %v2899_v23, 0.0  ;;  %v3339_v23 = vld [vmem:[#allocation11 + $0x58] sm:$0xff] }
0x1a80   :  { %2902 = vadd.xlane.f32.xlu0 %v2901_v8 }
0x1a84   :  { %2905 = vadd.xlane.f32.xlu0 %v2904_v53 }
0x1b09   :  { %v2903_v28 = vpop.xlane.xlu0 %2902 }
0x1b0a   :  { %v2907_v29 = vmul.f32 0.03125, %v2903_v28  ;;  %v4840_v28 = vld [vmem:[%s6682_s3 + $0x2] ss:$0 sm:$0xff] }
0x1b0c   :  { %v2909_v30 = vadd.f32 1e-05, %v2907_v29 }
0x1b0d   :  { %v2906_v31 = vpop.xlane.xlu0 %2905 }
0x1b0e   :  { %5575 = vrsqrt.f32 %v2909_v30  ;;  %v2908_v32 = vmul.f32 0.03125, %v2906_v31 }
0x1b10   :  { %v2910_v33 = vadd.f32 1e-05, %v2908_v32 }
0x1b12   :  { %5577 = vrsqrt.f32 %v2910_v33  ;;  %v4841_v33 = vld [vmem:[#allocation7 + $0x2] ss:$0 sm:$0xff] }
0x1b1b   :  { %v5576_v34 = vpop.eup %5575 }
0x1b1c   :  { %v2913_v36 = vmul.f32 %v5576_v34, %v2897_v6  ;;  %v3256_v6 = vld [vmem:[#allocation10 + $0x40] sm:$0xff] }
0x1b1e   :  { %v2921_v38 = vmul.f32 %v4829_v35, %v2913_v36 }
0x1b1f   :  { %v5578_v51 = vpop.eup %5577 }
0x1b20   :  { %v2914_v39 = vmul.f32 %v5578_v51, %v2898_v0  ;;  %v2929_v47 = vadd.f32 %v4830_v37, %v2921_v38  ;;  %v3170_v0 = vld [vmem:[#allocation8 + $0x40] sm:$0xff]  ;;  %v3337_v38 = vld [vmem:[#allocation11 + $0x48] sm:$0xff] }
0x1b21   :  { %v3336_v51 = vld [vmem:[#allocation11 + $0x40] sm:$0xff] }
0x1b22   :  { %v2922_v55 = vmul.f32 %v4829_v35, %v2914_v39  ;;  %5333 = vmatprep.mubr.msk.f32.mxu1 %vm205_vm0, %v2929_v47 }
0x1b24   :  { %v2930_v57 = vadd.f32 %v4830_v37, %v2922_v55  ;;  %v3338_v37 = vld [vmem:[#allocation11 + $0x50] sm:$0xff] }
0x1b26   :  { %5334 = vmatmul.mubr.msk.f32.vlgmr.msra.gmra.mxu1 %vm205_vm0, %v2930_v57 }
0x1b27   :  { %5348 = vmatpush3.msra.mxu1 %v3173_v45 }
0x1b28   :  { %5349 = vmatprep.subr.mxu1 %v3172_v21 }
0x1b29   :  { %5350 = vmatpush3.msra.mxu1 %v3172_v21 }
0x1b2a   :  { %5351 = vmatprep.subr.mxu1 %v3171_v49 }
0x1b2b   :  { %5352 = vmatpush3.msra.mxu1 %v3171_v49 }
0x1b2c   :  { %5353 = vmatprep.subr.mxu1 %v3170_v0 }
0x1b2d   :  { %5354 = vmatpush3.msra.mxu1 %v3170_v0 }
0x1b2e   :  { %5369 = vmatprep.subr.mxu1 %v3339_v23 }
0x1be6   :  { %v5335_v50 = vpop.f32.mrf.mxu1 }
0x1be7   :  { %v3022_v62 = vadd.f32 %v5335_v50, %v4832_v61 }
0x1be8   :  { %v3016_v63 = vpop.f32.mrf.mxu1 }
0x1be9   :  { %v3017_v2 = vadd.f32 %v4832_v61, %v3016_v63  ;;  %v3026_v5 = vmax.f32 %v3022_v62, 0.0 }
0x1beb   :  { %v3025_v4 = vmax.f32 %v3017_v2, 0.0 }
0x1bed   :  { %5344 = vmatprep.mubr.msk.f32.mxu0 %vm205_vm0, %v3025_v4 }
0x1bee   :  { %5345 = vmatmul.mubr.msk.f32.vlgmr.msra.gmra.mxu0 %vm205_vm0, %v3026_v5 }
0x1bef   :  { %5359 = vmatpush3.msra.mxu0 %v3259_v20 }
0x1bf0   :  { %5360 = vmatprep.subr.mxu0 %v3258_v1 }
0x1bf1   :  { %5361 = vmatpush3.msra.mxu0 %v3258_v1 }
0x1bf2   :  { %5362 = vmatprep.subr.mxu0 %v3257_v22 }
0x1bf3   :  { %5363 = vmatpush3.msra.mxu0 %v3257_v22 }
0x1bf4   :  { %5364 = vmatprep.subr.mxu0 %v3256_v6 }
0x1bf5   :  { %5365 = vmatpush3.msra.mxu0 %v3256_v6 }
0x1cae   :  { %v5346_v10 = vpop.f32.mrf.mxu0 }
0x1caf   :  { %v3118_v11 = vadd.f32 %v5346_v10, %v4836_v9 }
0x1cb0   :  { %v3112_v12 = vpop.f32.mrf.mxu0 }
0x1cb1   :  { %v6436_v42 = vadd.f32 %v3118_v11, %v6406_v15  ;;  %v3113_v54 = vadd.f32 %v4836_v9, %v3112_v12 }
0x1cb3   :  { %v6439_v43 = vadd.f32 %v3113_v54, %v6409_v17  ;;  %v3130_v44 = vsel %vm205_vm0, %v6436_v42, 0.0 }
0x1cb4   :  { %3131 = vadd.xlane.f32.xlu1 %v3130_v44 }
0x1cb5   :  { %v3127_v52 = vsel %vm205_vm0, %v6439_v43, 0.0 }
0x1cb6   :  { %3128 = vadd.xlane.f32.xlu0 %v3127_v52 }
0x1d3d   :  { %v3132_v13 = vpop.xlane.xlu1 %3131 }
0x1d3e   :  { %v3134_v14 = vmul.f32 0.03125, %v3132_v13 }
0x1d3f   :  { %v3129_v40 = vpop.xlane.xlu0 %3128 }
0x1d40   :  { %v3136_v19 = vsub.f32 %v6436_v42, %v3134_v14  ;;  %v3133_v41 = vmul.f32 0.03125, %v3129_v40 }
0x1d42   :  { %v3135_v48 = vsub.f32 %v6439_v43, %v3133_v41  ;;  %v3138_v18 = vmul.f32 %v3136_v19, %v3136_v19 }
0x1d44   :  { %v3142_v15 = vsel %vm205_vm0, %v3138_v18, 0.0  ;;  %v3137_v16 = vmul.f32 %v3135_v48, %v3135_v48 }
0x1d45   :  { %3143 = vadd.xlane.f32.xlu1 %v3142_v15 }
0x1d46   :  { %v3139_v17 = vsel %vm205_vm0, %v3137_v16, 0.0 }
0x1d47   :  { %3140 = vadd.xlane.f32.xlu0 %v3139_v17 }
0x1dce   :  { %v3144_v8 = vpop.xlane.xlu1 %3143 }
0x1dcf   :  { %v3146_v24 = vmul.f32 0.03125, %v3144_v8 }
0x1dd0   :  { %v3141_v53 = vpop.xlane.xlu0 %3140 }
0x1dd1   :  { %v3148_v25 = vadd.f32 1e-05, %v3146_v24  ;;  %v3145_v26 = vmul.f32 0.03125, %v3141_v53 }
0x1dd3   :  { %5579 = vrsqrt.f32 %v3148_v25  ;;  %v3147_v56 = vadd.f32 1e-05, %v3145_v26 }
0x1dd5   :  { %5581 = vrsqrt.f32 %v3147_v56 }
0x1de0   :  { %v5580_v27 = vpop.eup %5579 }
0x1de1   :  { %v3152_v29 = vmul.f32 %v5580_v27, %v3136_v19 }
0x1de2   :  { %v5582_v30 = vpop.eup %5581 }
0x1de3   :  { %v3151_v31 = vmul.f32 %v5582_v30, %v3135_v48  ;;  %v3160_v32 = vmul.f32 %v4840_v28, %v3152_v29 }
0x1de5   :  { %v3159_v34 = vmul.f32 %v4840_v28, %v3151_v31  ;;  %v3168_v36 = vadd.f32 %v4841_v33, %v3160_v32 }
0x1de7   :  { %v3167_v35 = vadd.f32 %v4841_v33, %v3159_v34 }
0x1de9   :  { %5355 = vmatprep.mubr.msk.f32.mxu1 %vm205_vm0, %v3167_v35  ;;  %5366 = vmatprep.mubr.msk.f32.mxu0 %vm205_vm0, %v3167_v35 }
0x1dea   :  { %5356 = vmatmul.mubr.msk.f32.vlgmr.msra.gmra.mxu1 %vm205_vm0, %v3168_v36  ;;  %5367 = vmatmul.mubr.msk.f32.vlgmr.msra.gmra.mxu0 %vm205_vm0, %v3168_v36 }
0x1deb   :  { %5370 = vmatpush3.msra.mxu1 %v3339_v23  ;;  %5377 = vmatprep.mubr.msk.f32.mxu1 %vm205_vm0, %v3167_v35 }
0x1dec   :  { %5371 = vmatprep.subr.mxu1 %v3338_v37 }
0x1ded   :  { %5372 = vmatpush3.msra.mxu1 %v3338_v37 }
0x1dee   :  { %5373 = vmatprep.subr.mxu1 %v3337_v38 }
0x1def   :  { %5374 = vmatpush3.msra.mxu1 %v3337_v38 }
0x1df0   :  { %5375 = vmatprep.subr.mxu1 %v3336_v51 }
0x1df1   :  { %5376 = vmatpush3.msra.mxu1 %v3336_v51 }
0x1df2   :  { %5378 = vmatmul.mubr.msk.f32.vlgmr.msra.gmra.mxu1 %vm205_vm0, %v3168_v36 }
0x1eaa   :  { %v6458_v39 = vpop.f32.mrf.mxu1  ;;  %v6460_v47 = vpop.f32.mrf.mxu0 }
0x1eab   :  { %5380 = vmatprep.subr.msk.mxu0 %vm492_vm1, %v6458_v39 }
0x1eac   :  { %v6464_v55 = vpop.f32.mrf.mxu1  ;;  %v6466_v57 = vpop.f32.mrf.mxu0  ;;  %5381 = vmatpush3.xpose.msk.msra.mxu0 %vm492_vm1, %v6458_v39 }
0x1ead   :  { %5382 = vmatprep.subr.msk.mxu0 %vm492_vm1, %v6464_v55  ;;  %5384 = vmatprep.mubr.msk.f32.mxu0 %vm492_vm1, %v6466_v57 }
0x1eb0   :  { %5383 = vmatpush3.xpose.msk.msra.mxu0 %vm492_vm1, %v6464_v55 }
0x1eb2   :  { %v6476_v58 = vpop.f32.mrf.mxu1 }
0x1eb3   :  { %5387 = vmatprep.subr.mxu1 %v6476_v58  ;;  %5385 = vmatmul.mubr.msk.f32.vlgmr.msra.gmra.mxu0 %vm492_vm1, %v6460_v47 }
0x1eb4   :  { %v6481_v46 = vpop.f32.mrf.mxu1  ;;  %5388 = vmatpush3.msra.mxu1 %v6476_v58 }
0x1eb5   :  { %5389 = vmatprep.subr.mxu1 %v6481_v46 }
0x1eb6   :  { %5390 = vmatpush3.msra.mxu1 %v6481_v46 }
0x1f73   :  { %v5386_v59 = vpop.f32.mrf.mxu0 }
0x1f74   :  { %v3503_v60 = vmul.f32 0.17677669, %v5386_v59 }
0x1f75   :  { %v3493_v61 = vpop.f32.mrf.mxu0 }
0x1f76   :  { %v3505_v50 = vadd.f32 %v6342_v3, %v3503_v60  ;;  %v3502_v62 = vmul.f32 0.17677669, %v3493_v61 }
0x1f78   :  { %v3504_v63 = vadd.f32 %v6346_v7, %v3502_v62  ;;  %v3509_v2 = vsel %vm584_vm2, %v3505_v50, -inf }
0x1f79   :  { %3510 = vmax.xlane.f32.xlu1 %v3509_v2 }
0x1f7a   :  { %v3506_v4 = vsel %vm584_vm2, %v3504_v63, -inf }
0x1f7b   :  { %3507 = vmax.xlane.f32.xlu0 %v3506_v4 }
0x2002   :  { %v3511_v5 = vpop.xlane.xlu1 %3510 }
0x2003   :  { %v3513_v9 = vsub.f32 %v3505_v50, %v3511_v5 }
0x2004   :  { %v3508_v10 = vpop.xlane.xlu0 %3507 }
0x2005   :  { %v3516_v11 = vmul.f32 1.442695, %v3513_v9  ;;  %v3512_v12 = vsub.f32 %v3504_v63, %v3508_v10 }
0x2007   :  { %5583 = vpow2.f32 %v3516_v11  ;;  %v3514_v54 = vmul.f32 1.442695, %v3512_v12 }
0x2009   :  { %5585 = vpow2.f32 %v3514_v54 }
0x2014   :  { %v5584_v44 = vpop.eup %5583 }
0x2015   :  { %v3521_v52 = vsel %vm584_vm2, %v5584_v44, 0.0 }
0x2016   :  { %v5586_v13 = vpop.eup %5585  ;;  %3522 = vadd.xlane.f32.xlu1 %v3521_v52 }
0x2017   :  { %v3518_v14 = vsel %vm584_vm2, %v5586_v13, 0.0 }
0x2018   :  { %3519 = vadd.xlane.f32.xlu0 %v3518_v14 }
0x2027   :  { %3613 = vrot.lane.b32.xlu1 %v6464_v55, %s5873_s6 }
0x202b   :  { %3609 = vrot.lane.b32.xlu1 %v6466_v57, %s5873_s6 }
0x202e   :  { %3615 = vrot.lane.b32.xlu0 %v6458_v39, %s5873_s6 }
0x202f   :  { %3611 = vrot.lane.b32.xlu1 %v6460_v47, %s5873_s6 }
0x209f   :  { %v3523_v40 = vpop.xlane.xlu1 %3522 }
0x20a0   :  { %5587 = vrcp.f32 %v3523_v40 }
0x20a1   :  { %v3520_v19 = vpop.xlane.xlu0 %3519 }
0x20a2   :  { %5589 = vrcp.f32 %v3520_v19 }
0x20a3   :  { %v3614_v48 = vpop.permute.xlu1 %3613 }
0x20a5   :  { %v3616_v41 = vpop.permute.xlu0 %3615 }
0x20a6   :  { %5394 = vmatprep.subr.msk.mxu1 %vm492_vm1, %v3616_v41 }
0x20a7   :  { %v3610_v45 = vpop.permute.xlu1 %3609 }
0x20ab   :  { %v3612_v20 = vpop.permute.xlu1 %3611 }
0x20ad   :  { %v5588_v18 = vpop.eup %5587 }
0x20ae   :  { %v3527_v17 = vmul.f32 %v5588_v18, %v5584_v44 }
0x20af   :  { %v5590_v15 = vpop.eup %5589 }
0x20b0   :  { %v3526_v16 = vmul.f32 %v5590_v15, %v5586_v13 }
0x20b2   :  { %5391 = vmatprep.mubr.msk.f32.mxu1 %vm584_vm2, %v3526_v16 }
0x20b3   :  { %5392 = vmatmul.mubr.msk.f32.vlgmr.msra.gmra.mxu1 %vm584_vm2, %v3527_v17 }
0x20b4   :  { %5395 = vmatpush3.xpose.msk.msra.mxu1 %vm492_vm1, %v3616_v41  ;;  %5398 = vmatprep.mubr.msk.f32.mxu1 %vm492_vm1, %v3610_v45 }
0x20b5   :  { %5396 = vmatprep.subr.msk.mxu1 %vm492_vm1, %v3614_v48 }
0x20b8   :  { %5397 = vmatpush3.xpose.msk.msra.mxu1 %vm492_vm1, %v3614_v48 }
0x20bb   :  { %5399 = vmatmul.mubr.msk.f32.vlgmr.msra.gmra.mxu1 %vm492_vm1, %v3612_v20 }
0x2173   :  { %v6508_v21 = vpop.f32.mrf.mxu1 }
0x2175   :  { %v6510_v1 = vpop.f32.mrf.mxu1 }
0x217b   :  { %v5400_v49 = vpop.f32.mrf.mxu1 }
0x217c   :  { %v3701_v22 = vmul.f32 0.17677669, %v5400_v49 }
0x217d   :  { %v3691_v0 = vpop.f32.mrf.mxu1 }
0x217e   :  { %v3703_v6 = vadd.f32 %v6342_v3, %v3701_v22  ;;  %v3700_v23 = vmul.f32 0.17677669, %v3691_v0 }
0x2180   :  { %v3702_v8 = vadd.f32 %v6346_v7, %v3700_v23  ;;  %v3707_v24 = vsel %vm584_vm2, %v3703_v6, -inf }
0x2181   :  { %3708 = vmax.xlane.f32.xlu1 %v3707_v24 }
0x2182   :  { %v3704_v53 = vsel %vm584_vm2, %v3702_v8, -inf }
0x2183   :  { %3705 = vmax.xlane.f32.xlu0 %v3704_v53 }
0x2192   :  { %3728 = vrot.lane.b32.xlu1 %v6481_v46, %s5873_s6 }
0x2196   :  { %3821 = vrot.lane.b32.xlu1 %v6458_v39, %s5874_s28 }
0x219a   :  { %3819 = vrot.lane.b32.xlu1 %v6464_v55, %s5874_s28 }
0x219e   :  { %3817 = vrot.lane.b32.xlu1 %v6460_v47, %s5874_s28 }
0x220a   :  { %v3709_v25 = vpop.xlane.xlu1 %3708 }
0x220b   :  { %v3711_v26 = vsub.f32 %v3703_v6, %v3709_v25 }
0x220c   :  { %v3706_v56 = vpop.xlane.xlu0 %3705 }
0x220d   :  { %v3714_v27 = vmul.f32 1.442695, %v3711_v26  ;;  %v3710_v28 = vsub.f32 %v3702_v8, %v3706_v56 }
0x220e   :  { %v3729_v36 = vpop.permute.xlu1 %3728 }
0x220f   :  { %5591 = vpow2.f32 %v3714_v27  ;;  %v3712_v29 = vmul.f32 1.442695, %v3710_v28 }
0x2211   :  { %5593 = vpow2.f32 %v3712_v29 }
0x2212   :  { %v3822_v38 = vpop.permute.xlu1 %3821 }
0x2216   :  { %v3820_v62 = vpop.permute.xlu1 %3819 }
0x221a   :  { %v3818_v63 = vpop.permute.xlu1 %3817 }
0x221c   :  { %v5592_v30 = vpop.eup %5591 }
0x221d   :  { %v3719_v31 = vsel %vm584_vm2, %v5592_v30, 0.0 }
0x221e   :  { %v5594_v32 = vpop.eup %5593  ;;  %3720 = vadd.xlane.f32.xlu0 %v3719_v31 }
0x221f   :  { %v3716_v33 = vsel %vm584_vm2, %v5594_v32, 0.0 }
0x2222   :  { %3717 = vadd.xlane.f32.xlu0 %v3716_v33 }
0x2238   :  { %3730 = vrot.lane.b32.xlu0 %v6476_v58, %s5873_s6 }
0x223c   :  { %3815 = vrot.lane.b32.xlu0 %v6466_v57, %s5874_s28 }
0x22a7   :  { %v3721_v34 = vpop.xlane.xlu0 %3720 }
0x22a8   :  { %5595 = vrcp.f32 %v3721_v34 }
0x22ab   :  { %v3718_v35 = vpop.xlane.xlu0 %3717 }
0x22ac   :  { %5597 = vrcp.f32 %v3718_v35 }
0x22af   :  { %v3731_v37 = vpop.permute.xlu0 %3730 }
0x22b0   :  { %5401 = vmatprep.subr.mxu0 %v3731_v37 }
0x22b1   :  { %5402 = vmatpush3.msra.mxu0 %v3731_v37 }
0x22b2   :  { %5403 = vmatprep.subr.mxu0 %v3729_v36 }
0x22b3   :  { %5404 = vmatpush3.msra.mxu0 %v3729_v36  ;;  %v3816_v50 = vpop.permute.xlu0 %3815 }
0x22b4   :  { %5408 = vmatprep.subr.msk.mxu0 %vm492_vm1, %v3822_v38 }
0x22b5   :  { %v5596_v51 = vpop.eup %5595 }
0x22b6   :  { %v3725_v61 = vmul.f32 %v5596_v51, %v5592_v30 }
0x22b9   :  { %v5598_v59 = vpop.eup %5597 }
0x22ba   :  { %v3724_v60 = vmul.f32 %v5598_v59, %v5594_v32 }
0x22bc   :  { %5405 = vmatprep.mubr.msk.f32.mxu0 %vm584_vm2, %v3724_v60 }
0x22bd   :  { %5406 = vmatmul.mubr.msk.f32.vlgmr.msra.gmra.mxu0 %vm584_vm2, %v3725_v61 }
0x22be   :  { %5409 = vmatpush3.xpose.msk.msra.mxu0 %vm492_vm1, %v3822_v38  ;;  %5412 = vmatprep.mubr.msk.f32.mxu0 %vm492_vm1, %v3816_v50 }
0x22bf   :  { %5410 = vmatprep.subr.msk.mxu0 %vm492_vm1, %v3820_v62 }
0x22c2   :  { %5411 = vmatpush3.xpose.msk.msra.mxu0 %vm492_vm1, %v3820_v62 }
0x22c5   :  { %5413 = vmatmul.mubr.msk.f32.vlgmr.msra.gmra.mxu0 %vm492_vm1, %v3818_v63 }
0x237d   :  { %v6538_v2 = vpop.f32.mrf.mxu0 }
0x237f   :  { %v6540_v4 = vpop.f32.mrf.mxu0 }
0x2385   :  { %v5414_v5 = vpop.f32.mrf.mxu0 }
0x2386   :  { %v3907_v9 = vmul.f32 0.17677669, %v5414_v5  ;;  %v4255_v5 = vld [vmem:[#allocation13 + $0x48] sm:$0xff] }
0x2387   :  { %v3897_v10 = vpop.f32.mrf.mxu0 }
0x2388   :  { %v3909_v11 = vadd.f32 %v6342_v3, %v3907_v9  ;;  %v3906_v12 = vmul.f32 0.17677669, %v3897_v10  ;;  %v4254_v9 = vld [vmem:[#allocation13 + $0x40] sm:$0xff] }
0x238a   :  { %v3908_v54 = vadd.f32 %v6346_v7, %v3906_v12  ;;  %v3913_v44 = vsel %vm584_vm2, %v3909_v11, -inf }
0x238b   :  { %3914 = vmax.xlane.f32.xlu1 %v3913_v44 }
0x238c   :  { %v3910_v52 = vsel %vm584_vm2, %v3908_v54, -inf }
0x238d   :  { %3911 = vmax.xlane.f32.xlu0 %v3910_v52 }
0x239c   :  { %3932 = vrot.lane.b32.xlu1 %v6481_v46, %s5874_s28 }
0x23a0   :  { %4025 = vrot.lane.b32.xlu1 %v6458_v39, %s5875_s29 }
0x23a4   :  { %4023 = vrot.lane.b32.xlu1 %v6464_v55, %s5875_s29 }
0x23a8   :  { %4021 = vrot.lane.b32.xlu1 %v6460_v47, %s5875_s29 }
0x2414   :  { %v3915_v13 = vpop.xlane.xlu1 %3914 }
0x2415   :  { %v3917_v14 = vsub.f32 %v3909_v11, %v3915_v13 }
0x2416   :  { %v3912_v40 = vpop.xlane.xlu0 %3911 }
0x2417   :  { %v3920_v19 = vmul.f32 1.442695, %v3917_v14  ;;  %v3916_v41 = vsub.f32 %v3908_v54, %v3912_v40 }
0x2418   :  { %v3933_v17 = vpop.permute.xlu1 %3932 }
0x2419   :  { %5599 = vpow2.f32 %v3920_v19  ;;  %v3918_v48 = vmul.f32 1.442695, %v3916_v41 }
0x241b   :  { %5601 = vpow2.f32 %v3918_v48 }
0x241c   :  { %v4026_v20 = vpop.permute.xlu1 %4025 }
0x2420   :  { %v4024_v23 = vpop.permute.xlu1 %4023 }
0x2424   :  { %v4022_v8 = vpop.permute.xlu1 %4021 }
0x2426   :  { %v5600_v18 = vpop.eup %5599 }
0x2427   :  { %v3925_v15 = vsel %vm584_vm2, %v5600_v18, 0.0 }
0x2428   :  { %v5602_v16 = vpop.eup %5601  ;;  %3926 = vadd.xlane.f32.xlu0 %v3925_v15 }
0x2429   :  { %v3922_v39 = vsel %vm584_vm2, %v5602_v16, 0.0 }
0x242c   :  { %3923 = vadd.xlane.f32.xlu0 %v3922_v39 }
0x2442   :  { %3934 = vrot.lane.b32.xlu0 %v6476_v58, %s5874_s28 }
0x2446   :  { %4019 = vrot.lane.b32.xlu0 %v6466_v57, %s5875_s29 }
0x24b1   :  { %v3927_v47 = vpop.xlane.xlu0 %3926 }
0x24b2   :  { %5603 = vrcp.f32 %v3927_v47 }
0x24b5   :  { %v3924_v55 = vpop.xlane.xlu0 %3923 }
0x24b6   :  { %5605 = vrcp.f32 %v3924_v55 }
0x24b9   :  { %v3935_v45 = vpop.permute.xlu0 %3934 }
0x24ba   :  { %5415 = vmatprep.subr.mxu1 %v3935_v45 }
0x24bb   :  { %5416 = vmatpush3.msra.mxu1 %v3935_v45 }
0x24bc   :  { %5417 = vmatprep.subr.mxu1 %v3933_v17 }
0x24bd   :  { %5418 = vmatpush3.msra.mxu1 %v3933_v17  ;;  %v4020_v57 = vpop.permute.xlu0 %4019 }
0x24be   :  { %5422 = vmatprep.subr.msk.mxu1 %vm492_vm1, %v4026_v20 }
0x24bf   :  { %v5604_v49 = vpop.eup %5603 }
0x24c0   :  { %v3931_v6 = vmul.f32 %v5604_v49, %v5600_v18 }
0x24c3   :  { %v5606_v22 = vpop.eup %5605 }
0x24c4   :  { %v3930_v0 = vmul.f32 %v5606_v22, %v5602_v16 }
0x24c6   :  { %5419 = vmatprep.mubr.msk.f32.mxu1 %vm584_vm2, %v3930_v0 }
0x24c7   :  { %5420 = vmatmul.mubr.msk.f32.vlgmr.msra.gmra.mxu1 %vm584_vm2, %v3931_v6 }
0x24c8   :  { %5423 = vmatpush3.xpose.msk.msra.mxu1 %vm492_vm1, %v4026_v20  ;;  %5426 = vmatprep.mubr.msk.f32.mxu1 %vm492_vm1, %v4020_v57 }
0x24c9   :  { %5424 = vmatprep.subr.msk.mxu1 %vm492_vm1, %v4024_v23 }
0x24cc   :  { %5425 = vmatpush3.xpose.msk.msra.mxu1 %vm492_vm1, %v4024_v23 }
0x24cf   :  { %5427 = vmatmul.mubr.msk.f32.vlgmr.msra.gmra.mxu1 %vm492_vm1, %v4022_v8 }
0x2587   :  { %v5421_v24 = vpop.f32.mrf.mxu1 }
0x2589   :  { %v4010_v53 = vpop.f32.mrf.mxu1 }
0x258f   :  { %v5428_v25 = vpop.f32.mrf.mxu1 }
0x2590   :  { %v4111_v26 = vmul.f32 0.17677669, %v5428_v25  ;;  %v4398_v25 = vld [vmem:[#allocation14 + $0x50] sm:$0xff] }
0x2591   :  { %v4101_v56 = vpop.f32.mrf.mxu1 }
0x2592   :  { %v4113_v27 = vadd.f32 %v6342_v3, %v4111_v26  ;;  %v4110_v28 = vmul.f32 0.17677669, %v4101_v56  ;;  %v4397_v26 = vld [vmem:[#allocation14 + $0x48] sm:$0xff]  ;;  %v4396_v56 = vld [vmem:[#allocation14 + $0x40] sm:$0xff] }
0x2594   :  { %v4112_v29 = vadd.f32 %v6346_v7, %v4110_v28  ;;  %v4117_v30 = vsel %vm584_vm2, %v4113_v27, -inf }
0x2595   :  { %4118 = vmax.xlane.f32.xlu1 %v4117_v30 }
0x2596   :  { %v4114_v31 = vsel %vm584_vm2, %v4112_v29, -inf }
0x2597   :  { %4115 = vmax.xlane.f32.xlu0 %v4114_v31 }
0x25a6   :  { %4136 = vrot.lane.b32.xlu1 %v6481_v46, %s5875_s29 }
0x25aa   :  { %4225 = vrot.lane.b32.xlu1 %v6540_v4, %s5862_s2  ;;  %v4256_v4 = vld [vmem:[#allocation13 + $0x50] sm:$0xff] }
0x25ae   :  { %4227 = vrot.lane.b32.xlu1 %v6538_v2, %s5862_s2 }
0x25b2   :  { %4235 = vrot.lane.b32.xlu1 %v5421_v24, %s5867_s30 }
0x261e   :  { %v4119_v3 = vpop.xlane.xlu1 %4118 }
0x261f   :  { %v4121_v32 = vsub.f32 %v4113_v27, %v4119_v3 }
0x2620   :  { %v4116_v7 = vpop.xlane.xlu0 %4115 }
0x2621   :  { %v4124_v33 = vmul.f32 1.442695, %v4121_v32  ;;  %v4120_v34 = vsub.f32 %v4112_v29, %v4116_v7  ;;  %v4878_v7 = vld [vmem:[%s6663_s9 + $0x2] ss:$0 sm:$0xff] }
0x2622   :  { %v4137_v61 = vpop.permute.xlu1 %4136 }
0x2623   :  { %5607 = vpow2.f32 %v4124_v33  ;;  %v4122_v35 = vmul.f32 1.442695, %v4120_v34  ;;  %v4879_v34 = vld [vmem:[%s6664_s10 + $0x2] ss:$0 sm:$0xff] }
0x2625   :  { %5609 = vpow2.f32 %v4122_v35 }
0x2626   :  { %v4226_v12 = vpop.permute.xlu1 %4225 }
0x2627   :  { %v4247_v13 = vsel %vm492_vm1, %v6510_v1, %v4226_v12  ;;  %v4873_v1 = vld [vmem:[%s6662_s8 + $0x2] ss:$0 sm:$0xff] }
0x262a   :  { %v4228_v54 = vpop.permute.xlu1 %4227 }
0x262b   :  { %v4248_v40 = vsel %vm492_vm1, %v6508_v21, %v4228_v54 }
0x262e   :  { %v4236_v44 = vpop.permute.xlu1 %4235 }
0x262f   :  { %v4250_v48 = vsel %vm584_vm2, %v4248_v40, %v4236_v44 }
0x2630   :  { %v5608_v36 = vpop.eup %5607 }
0x2631   :  { %v4129_v37 = vsel %vm584_vm2, %v5608_v36, 0.0 }
0x2632   :  { %v5610_v46 = vpop.eup %5609  ;;  %4130 = vadd.xlane.f32.xlu0 %v4129_v37 }
0x2633   :  { %v4126_v38 = vsel %vm584_vm2, %v5610_v46, 0.0 }
0x2636   :  { %4127 = vadd.xlane.f32.xlu0 %v4126_v38 }
0x264c   :  { %4138 = vrot.lane.b32.xlu0 %v6476_v58, %s5875_s29  ;;  %v4257_v58 = vld [vmem:[#allocation13 + $0x58] sm:$0xff] }
0x2650   :  { %4233 = vrot.lane.b32.xlu0 %v4010_v53, %s5867_s30  ;;  %v4399_v53 = vld [vmem:[#allocation14 + $0x58] sm:$0xff] }
0x2651   :  { %5447 = vmatprep.subr.mxu1 %v4399_v53 }
0x2652   :  { %5448 = vmatpush3.msra.mxu1 %v4399_v53 }
0x2653   :  { %5449 = vmatprep.subr.mxu1 %v4398_v25 }
0x2654   :  { %5450 = vmatpush3.msra.mxu1 %v4398_v25 }
0x2655   :  { %5451 = vmatprep.subr.mxu1 %v4397_v26 }
0x2656   :  { %5452 = vmatpush3.msra.mxu1 %v4397_v26  ;;  %v4889_v26 = vld [vmem:[%s6670_s16] ss:$0 sm:$0xff] }
0x2657   :  { %5453 = vmatprep.subr.mxu1 %v4396_v56 }
0x2658   :  { %5454 = vmatpush3.msra.mxu1 %v4396_v56 }
0x26bb   :  { %v4131_v51 = vpop.xlane.xlu0 %4130 }
0x26bc   :  { %5611 = vrcp.f32 %v4131_v51 }
0x26bf   :  { %v4128_v59 = vpop.xlane.xlu0 %4127 }
0x26c0   :  { %5613 = vrcp.f32 %v4128_v59  ;;  %v4495_v59 = vld [vmem:[#allocation16 + $0x58] sm:$0xff] }
0x26c3   :  { %v4139_v60 = vpop.permute.xlu0 %4138 }
0x26c4   :  { %5429 = vmatprep.subr.mxu0 %v4139_v60 }
0x26c5   :  { %5430 = vmatpush3.msra.mxu0 %v4139_v60  ;;  %v4494_v60 = vld [vmem:[#allocation16 + $0x50] sm:$0xff] }
0x26c6   :  { %5431 = vmatprep.subr.mxu0 %v4137_v61 }
0x26c7   :  { %5432 = vmatpush3.msra.mxu0 %v4137_v61  ;;  %v4234_v52 = vpop.permute.xlu0 %4233  ;;  %v4493_v61 = vld [vmem:[#allocation16 + $0x48] sm:$0xff] }
0x26c8   :  { %5436 = vmatprep.subr.mxu0 %v4257_v58  ;;  %v4249_v19 = vsel %vm584_vm2, %v4247_v13, %v4234_v52 }
0x26c9   :  { %v5612_v50 = vpop.eup %5611 }
0x26ca   :  { %v4135_v2 = vmul.f32 %v5612_v50, %v5608_v36  ;;  %v4492_v50 = vld [vmem:[#allocation16 + $0x40] sm:$0xff] }
0x26cd   :  { %v5614_v62 = vpop.eup %5613 }
0x26ce   :  { %v4134_v63 = vmul.f32 %v5614_v62, %v5610_v46  ;;  %v4881_v62 = vld [vmem:[%s6666_s12 + $0x2] ss:$0 sm:$0xff] }
0x26d0   :  { %5433 = vmatprep.mubr.msk.f32.mxu0 %vm584_vm2, %v4134_v63 }
0x26d1   :  { %5434 = vmatmul.mubr.msk.f32.vlgmr.msra.gmra.mxu0 %vm584_vm2, %v4135_v2 }
0x26d2   :  { %5437 = vmatpush3.msra.mxu0 %v4257_v58 }
0x26d3   :  { %5438 = vmatprep.subr.mxu0 %v4256_v4 }
0x26d4   :  { %5439 = vmatpush3.msra.mxu0 %v4256_v4 }
0x26d5   :  { %5440 = vmatprep.subr.mxu0 %v4255_v5 }
0x26d6   :  { %5441 = vmatpush3.msra.mxu0 %v4255_v5 }
0x26d7   :  { %5442 = vmatprep.subr.mxu0 %v4254_v9 }
0x26d8   :  { %5443 = vmatpush3.msra.mxu0 %v4254_v9 }
0x26d9   :  { %5458 = vmatprep.subr.mxu0 %v4495_v59 }
0x2791   :  { %v5435_v10 = vpop.f32.mrf.mxu0 }
0x2792   :  { %4243 = vrot.lane.b32.xlu1 %v5435_v10, %s5876_s27  ;;  %v4885_v10 = vld [vmem:[%s6668_s14 + $0x2] ss:$0 sm:$0xff] }
0x2793   :  { %v4214_v11 = vpop.f32.mrf.mxu0 }
0x2794   :  { %4241 = vrot.lane.b32.xlu0 %v4214_v11, %s5876_s27 }
0x2804   :  { %v4244_v14 = vpop.permute.xlu1 %4243 }
0x2805   :  { %v4252_v15 = vsel %vm1330_vm3, %v4250_v48, %v4244_v14 }
0x2806   :  { %v4242_v41 = vpop.permute.xlu0 %4241 }
0x2807   :  { %v4251_v18 = vsel %vm1330_vm3, %v4249_v19, %v4242_v41 }
0x2808   :  { %5444 = vmatprep.mubr.msk.f32.mxu0 %vm205_vm0, %v4251_v18 }
0x2809   :  { %5445 = vmatmul.mubr.msk.f32.vlgmr.msra.gmra.mxu0 %vm205_vm0, %v4252_v15 }
0x280a   :  { %5459 = vmatpush3.msra.mxu0 %v4495_v59 }
0x280b   :  { %5460 = vmatprep.subr.mxu0 %v4494_v60 }
0x280c   :  { %5461 = vmatpush3.msra.mxu0 %v4494_v60 }
0x280d   :  { %5462 = vmatprep.subr.mxu0 %v4493_v61 }
0x280e   :  { %5463 = vmatpush3.msra.mxu0 %v4493_v61 }
0x280f   :  { %5464 = vmatprep.subr.mxu0 %v4492_v50 }
0x2810   :  { %5465 = vmatpush3.msra.mxu0 %v4492_v50 }
0x28c9   :  { %v5446_v16 = vpop.f32.mrf.mxu0 }
0x28ca   :  { %v4344_v39 = vadd.f32 %v5446_v16, %v4873_v1 }
0x28cb   :  { %v4338_v21 = vpop.f32.mrf.mxu0 }
0x28cc   :  { %v6602_v47 = vadd.f32 %v4344_v39, %v6436_v42  ;;  %v4339_v55 = vadd.f32 %v4873_v1, %v4338_v21 }
0x28ce   :  { %v6605_v17 = vadd.f32 %v4339_v55, %v6439_v43  ;;  %v4356_v45 = vsel %vm205_vm0, %v6602_v47, 0.0  ;;  %v4634_v55 = vld [vmem:[#allocation17 + $0x18] sm:$0xff] }
0x28cf   :  { %4357 = vadd.xlane.f32.xlu1 %v4356_v45  ;;  %5469 = vmatprep.subr.mxu1 %v4634_v55  ;;  %v4632_v45 = vld [vmem:[#allocation17 + $0x8] sm:$0xff] }
0x28d0   :  { %v4353_v20 = vsel %vm205_vm0, %v6605_v17, 0.0 }
0x28d1   :  { %4354 = vadd.xlane.f32.xlu0 %v4353_v20  ;;  %v4631_v20 = vld [vmem:[#allocation17] sm:$0xff] }
0x2958   :  { %v4358_v49 = vpop.xlane.xlu1 %4357 }
0x2959   :  { %v4360_v22 = vmul.f32 0.03125, %v4358_v49 }
0x295a   :  { %v4355_v0 = vpop.xlane.xlu0 %4354 }
0x295b   :  { %v4359_v6 = vmul.f32 0.03125, %v4355_v0  ;;  %v4362_v57 = vsub.f32 %v6602_v47, %v4360_v22 }
0x295d   :  { %v4361_v42 = vsub.f32 %v6605_v17, %v4359_v6  ;;  %v4364_v8 = vmul.f32 %v4362_v57, %v4362_v57 }
0x295f   :  { %v4363_v23 = vmul.f32 %v4361_v42, %v4361_v42  ;;  %v4368_v24 = vsel %vm205_vm0, %v4364_v8, 0.0 }
0x2961   :  { %v4365_v43 = vsel %vm205_vm0, %v4363_v23, 0.0 }
0x2962   :  { %4366 = vadd.xlane.f32.xlu0 %v4365_v43  ;;  %v4888_v43 = vld [vmem:[%s6669_s15] ss:$0 sm:$0xff]  ;;  %s5877_s15 = smov [#allocation19]  }
0x2963   :  { %s4730_s11 = sshll.u32 %s5877_s15, 4  ;;  %s4731_s11 = int_to_ptr.vmem [resolvable:$true] %s4730_s11 }
0x2964   :  { %s5825_s16 = scalar_lea.vmem %s4731_s11, 256  ;;  %p5830_p9 = scmp.lt.s32.totalorder %s4731_s11, %s4731_s11 }
0x2965   :  { %p5826_p8 = scmp.ne.s32.totalorder %s4731_s11, %s5825_s16  ;;  %p5831_p10 = scmp.lt.s32.totalorder %s5825_s16, %s5825_s16 }
0x2966   :  { %4369 = vadd.xlane.f32.xlu0 %v4368_v24 }
0x2967   :  { %p5832_p11 = por %p5831_p10, %p5830_p9 }
0x2969   :  { %p5833_p12 = pnand %p5832_p11, %p5826_p8 }
0x29eb   :  { %v4367_v27 = vpop.xlane.xlu0 %4366 }
0x29ec   :  { %v4371_v28 = vmul.f32 0.03125, %v4367_v27 }
0x29ee   :  { %v4373_v29 = vadd.f32 1e-05, %v4371_v28 }
0x29ef   :  { %v4370_v30 = vpop.xlane.xlu0 %4369 }
0x29f0   :  { %5615 = vrsqrt.f32 %v4373_v29  ;;  %v4372_v31 = vmul.f32 0.03125, %v4370_v30  ;;  %v4890_v29 = vld [vmem:[%s6672_s18] ss:$0 sm:$0xff] }
0x29f2   :  { %v4374_v3 = vadd.f32 1e-05, %v4372_v31 }
0x29f4   :  { %5617 = vrsqrt.f32 %v4374_v3 }
0x29fd   :  { %v5616_v32 = vpop.eup %5615 }
0x29fe   :  { %v4377_v33 = vmul.f32 %v5616_v32, %v4361_v42 }
0x2a00   :  { %v4385_v35 = vmul.f32 %v4878_v7, %v4377_v33 }
0x2a01   :  { %v5618_v36 = vpop.eup %5617 }
0x2a02   :  { %v4378_v37 = vmul.f32 %v5618_v36, %v4362_v57  ;;  %v4393_v46 = vadd.f32 %v4879_v34, %v4385_v35 }
0x2a04   :  { %v4386_v38 = vmul.f32 %v4878_v7, %v4378_v37  ;;  %5455 = vmatprep.mubr.msk.f32.mxu1 %vm205_vm0, %v4393_v46 }
0x2a06   :  { %v4394_v51 = vadd.f32 %v4879_v34, %v4386_v38 }
0x2a08   :  { %5456 = vmatmul.mubr.msk.f32.vlgmr.msra.gmra.mxu1 %vm205_vm0, %v4394_v51 }
0x2a09   :  { %5470 = vmatpush3.msra.mxu1 %v4634_v55 }
0x2ac8   :  { %v5457_v63 = vpop.f32.mrf.mxu1 }
0x2ac9   :  { %v4486_v2 = vadd.f32 %v5457_v63, %v4881_v62 }
0x2aca   :  { %v4480_v58 = vpop.f32.mrf.mxu1 }
0x2acb   :  { %v4481_v4 = vadd.f32 %v4881_v62, %v4480_v58  ;;  %v4490_v9 = vmax.f32 %v4486_v2, 0.0 }
0x2acd   :  { %v4489_v5 = vmax.f32 %v4481_v4, 0.0 }
0x2acf   :  { %5466 = vmatprep.mubr.msk.f32.mxu0 %vm205_vm0, %v4489_v5 }
0x2ad0   :  { %5467 = vmatmul.mubr.msk.f32.vlgmr.msra.gmra.mxu0 %vm205_vm0, %v4490_v9 }
0x2b90   :  { %v5468_v11 = vpop.f32.mrf.mxu0 }
0x2b91   :  { %v4582_v12 = vadd.f32 %v5468_v11, %v4885_v10 }
0x2b92   :  { %v4576_v54 = vpop.f32.mrf.mxu0 }
0x2b93   :  { %v4586_v44 = vadd.f32 %v4582_v12, %v6602_v47  ;;  %v4577_v52 = vadd.f32 %v4885_v10, %v4576_v54 }
0x2b95   :  { %v4585_v13 = vadd.f32 %v4577_v52, %v6605_v17  ;;  %v4592_v14 = vsel %vm205_vm0, %v4586_v44, 0.0  ;;  %v4633_v17 = vld [vmem:[#allocation17 + $0x10] sm:$0xff] }
0x2b96   :  { %4593 = vadd.xlane.f32.xlu1 %v4592_v14  ;;  %5471 = vmatprep.subr.mxu1 %v4633_v17 }
0x2b97   :  { %v4589_v40 = vsel %vm205_vm0, %v4585_v13, 0.0  ;;  %5472 = vmatpush3.msra.mxu1 %v4633_v17 }
0x2b98   :  { %4590 = vadd.xlane.f32.xlu0 %v4589_v40  ;;  %5473 = vmatprep.subr.mxu1 %v4632_v45 }
0x2b99   :  { %5474 = vmatpush3.msra.mxu1 %v4632_v45 }
0x2b9a   :  { %5475 = vmatprep.subr.mxu1 %v4631_v20 }
0x2b9b   :  { %5476 = vmatpush3.msra.mxu1 %v4631_v20 }
0x2c1f   :  { %v4594_v19 = vpop.xlane.xlu1 %4593 }
0x2c20   :  { %v4596_v41 = vmul.f32 0.03125, %v4594_v19 }
0x2c21   :  { %v4591_v48 = vpop.xlane.xlu0 %4590 }
0x2c22   :  { %v4598_v18 = vsub.f32 %v4586_v44, %v4596_v41  ;;  %v4595_v15 = vmul.f32 0.03125, %v4591_v48 }
0x2c24   :  { %v4597_v1 = vsub.f32 %v4585_v13, %v4595_v15  ;;  %v4600_v16 = vmul.f32 %v4598_v18, %v4598_v18 }
0x2c26   :  { %v4604_v39 = vsel %vm205_vm0, %v4600_v16, 0.0  ;;  %v4599_v21 = vmul.f32 %v4597_v1, %v4597_v1 }
0x2c27   :  { %4605 = vadd.xlane.f32.xlu1 %v4604_v39 }
0x2c28   :  { %v4601_v47 = vsel %vm205_vm0, %v4599_v21, 0.0 }
0x2c29   :  { %4602 = vadd.xlane.f32.xlu0 %v4601_v47 }
0x2cb0   :  { %v4606_v49 = vpop.xlane.xlu1 %4605 }
0x2cb1   :  { %v4608_v22 = vmul.f32 0.03125, %v4606_v49 }
0x2cb2   :  { %v4603_v0 = vpop.xlane.xlu0 %4602 }
0x2cb3   :  { %v4610_v6 = vadd.f32 1e-05, %v4608_v22  ;;  %v4607_v57 = vmul.f32 0.03125, %v4603_v0 }
0x2cb5   :  { %5619 = vrsqrt.f32 %v4610_v6  ;;  %v4609_v42 = vadd.f32 1e-05, %v4607_v57 }
0x2cb7   :  { %5621 = vrsqrt.f32 %v4609_v42 }
0x2cc2   :  { %v5620_v23 = vpop.eup %5619 }
0x2cc3   :  { %v4614_v8 = vmul.f32 %v5620_v23, %v4598_v18 }
0x2cc4   :  { %v5622_v24 = vpop.eup %5621 }
0x2cc5   :  { %v4613_v53 = vmul.f32 %v5622_v24, %v4597_v1  ;;  %v4622_v25 = vmul.f32 %v4888_v43, %v4614_v8 }
0x2cc7   :  { %v4621_v56 = vmul.f32 %v4888_v43, %v4613_v53  ;;  %v4630_v28 = vadd.f32 %v4889_v26, %v4622_v25 }
0x2cc9   :  { %v4629_v27 = vadd.f32 %v4889_v26, %v4621_v56 }
0x2ccb   :  { %5477 = vmatprep.mubr.msk.f32.mxu1 %vm205_vm0, %v4629_v27 }
0x2ccc   :  { %5478 = vmatmul.mubr.msk.f32.vlgmr.msra.gmra.mxu1 %vm205_vm0, %v4630_v28 }
0x2d8c   :  { %v5479_v30 = vpop.f32.mrf.mxu1 }
0x2d8d   :  { %v4720_v31 = vadd.f32 %v5479_v30, %v4890_v29 }
0x2d8e   :  { %v4714_v3 = vpop.f32.mrf.mxu1 }
0x2d8f   :  { %4724 = vst [vmem:[#allocation19 + $0x8] sm:$0xff] %v4720_v31  ;;  %v4715_v32 = vadd.f32 %v4890_v29, %v4714_v3 }
0x2d91   :  { %4723 = vst [vmem:[#allocation19] sm:$0xff] %v4715_v32 }
0x2d92   :  { %5836 = shalt.err (!%p5833_p12)
}
0x2d93   :  { %4736 = dma.vmem_to_hbm [thread:$0]  %s4731_s11, 256, %s6673_s19, [#allocation4], %s5861_s22, %s5861_s22, %s5862_s2  }
0x2d94   :  { %5857 = dma.done.wait [#allocation4], 256  }
0x2d95   :  { %5858 = vsyncadd [#allocation4], 4294967040 }
0x2d96   :  { %4740 = vsyncpa [#allocation3], 1 }
0x2d97   :  { %4741 = vsyncpa [#allocation6], 1 }
0x2d98   :  { %4742 = vsyncpa [#allocation9], 1 }
0x2d99   :  { %4743 = vsyncpa [#allocation12], 1 }
0x2d9a   :  { %4744 = vsyncpa [#allocation15], 1 }
0x2d9b   :  { %4745 = vsyncpa [#allocation18], 1 }
0x2d9c   :  { %4746 = vsyncpa [#allocation4], 1 }

</bundles_post_ra>
